<compile_context>
chip_gen: v5e
topology: v5e:2x2
jax: 0.10.0
libtpu: 0.0.40
codegen_flags: <defaults>
</compile_context>

<pallas_src>
import functools
import math

import jax
import jax.numpy as jnp
from jax import lax
from jax.experimental import pallas as pl
from jax.experimental.pallas import tpu as pltpu

# Make the pure-JAX reference (and the in-kernel dots) use full-f32 matmuls so
# the correctness check can use a tight tolerance.
jax.config.update("jax_default_matmul_precision", "highest")


# ----------------------------------------------------------------------------
# Fused EncoderLayer kernel (one grid step = `block_b` batch elements).
# ----------------------------------------------------------------------------
def _encoder_layer_kernel(
    seq_ref, mask_ref,
    ln1_g_ref, ln1_b_ref,
    w_qkv_ref, b_qkv_ref,
    w_o_ref, b_o_ref,
    ln2_g_ref, ln2_b_ref,
    w_ff1_ref, b_ff1_ref,
    w_ff2_ref, b_ff2_ref,
    out_ref,
    *, num_heads, eps):
    bt, S, D = seq_ref.shape
    dk = D // num_heads
    inv_sqrt_dk = 1.0 / math.sqrt(dk)

    # Flatten (batch_tile, seq) -> rows; lanes = feature dim D.
    x = seq_ref[...].astype(jnp.float32).reshape(bt * S, D)

    def layer_norm(v, g, b):
        # Annotated-Transformer LayerNorm: unbiased std, eps added to std.
        mean = jnp.mean(v, axis=-1, keepdims=True)
        d = v - mean
        var = jnp.sum(d * d, axis=-1, keepdims=True) * (1.0 / (D - 1))
        inv = pl.reciprocal(jnp.sqrt(var) + jnp.float32(eps), approx=False)
        return g * (d * inv) + b

    # ---- Sublayer 1: pre-norm multi-head self-attention + residual --------
    ln1 = layer_norm(x, ln1_g_ref[...].astype(jnp.float32),
                     ln1_b_ref[...].astype(jnp.float32))

    # Fused q/k/v projection: (bt*S, D) @ (D, 3D)
    qkv = jnp.dot(ln1, w_qkv_ref[...],
                  preferred_element_type=jnp.float32) + b_qkv_ref[...]

    per_batch = []
    for b in range(bt):                               # static unroll (small bt)
        rows = qkv[b * S:(b + 1) * S, :]
        q = rows[:, 0 * D:1 * D]
        k = rows[:, 1 * D:2 * D]
        v = rows[:, 2 * D:3 * D]
        m = mask_ref[b].astype(jnp.float32)           # (1, S) key mask
        heads = []
        for h in range(num_heads):                    # static unroll
            qh = q[:, h * dk:(h + 1) * dk]
            kh = k[:, h * dk:(h + 1) * dk]
            vh = v[:, h * dk:(h + 1) * dk]
            # scores = qh @ kh^T / sqrt(dk)
            s = lax.dot_general(qh, kh, (((1,), (1,)), ((), ())),
                                preferred_element_type=jnp.float32)
            s = s * jnp.float32(inv_sqrt_dk)
            s = jnp.where(m > 0.0, s, jnp.float32(-1e9))
            smax = jnp.max(s, axis=-1, keepdims=True)
            p = jnp.exp(s - smax)
            p = p * pl.reciprocal(jnp.sum(p, axis=-1, keepdims=True),
                                  approx=False)
            heads.append(jnp.dot(p, vh, preferred_element_type=jnp.float32))
        per_batch.append(jnp.concatenate(heads, axis=-1))   # (S, D)
    attn = per_batch[0] if bt == 1 else jnp.concatenate(per_batch, axis=0)

    attn_out = jnp.dot(attn, w_o_ref[...],
                       preferred_element_type=jnp.float32) + b_o_ref[...]
    x1 = x + attn_out                                   # residual 1 (dropout=id)

    # ---- Sublayer 2: pre-norm position-wise FFN + residual -----------------
    ln2 = layer_norm(x1, ln2_g_ref[...].astype(jnp.float32),
                     ln2_b_ref[...].astype(jnp.float32))
    h1 = jnp.maximum(
        jnp.dot(ln2, w_ff1_ref[...], preferred_element_type=jnp.float32)
        + b_ff1_ref[...], 0.0)
    h2 = jnp.dot(h1, w_ff2_ref[...],
                 preferred_element_type=jnp.float32) + b_ff2_ref[...]
    out = x1 + h2                                       # residual 2 (dropout=id)

    out_ref[...] = out.reshape(bt, S, D).astype(out_ref.dtype)


# ----------------------------------------------------------------------------
# Wrapper: one fused pallas_call for the whole encoder layer.
# ----------------------------------------------------------------------------
def encoder_layer_forward(seq, seq_mask, params, *, num_heads, eps=1e-6,
                          block_b=None):
    B, S, D = seq.shape
    if block_b is None:
        block_b = min(B, 4)
        while B % block_b:          # pick a divisor of B (no HBM padding copy)
            block_b -= 1
    assert B % block_b == 0

    mask = jnp.asarray(seq_mask)
    if mask.ndim == 2:
        mask = mask[:, None, :]
    mask = (mask != 0).astype(jnp.float32)              # (B, 1, S)

    (ln1_g, ln1_b, w_qkv, b_qkv, w_o, b_o,
     ln2_g, ln2_b, w_ff1, b_ff1, w_ff2, b_ff2) = params
    d_ff = w_ff1.shape[1]

    kernel = functools.partial(_encoder_layer_kernel,
                               num_heads=num_heads, eps=eps)

    def bcast(shape):
        nd = len(shape)
        return pl.BlockSpec(shape, lambda i, _nd=nd: (0,) * _nd)

    grid = (B // block_b,)
    out = pl.pallas_call(
        kernel,
        out_shape=jax.ShapeDtypeStruct((B, S, D), seq.dtype),
        grid_spec=pltpu.PrefetchScalarGridSpec(
            num_scalar_prefetch=0,
            grid=grid,
            in_specs=[
                pl.BlockSpec((block_b, S, D), lambda i: (i, 0, 0)),   # seq
                pl.BlockSpec((block_b, 1, S), lambda i: (i, 0, 0)),   # mask
                bcast((1, D)), bcast((1, D)),                         # LN1
                bcast((D, 3 * D)), bcast((1, 3 * D)),                 # W_qkv
                bcast((D, D)), bcast((1, D)),                         # W_o
                bcast((1, D)), bcast((1, D)),                         # LN2
                bcast((D, d_ff)), bcast((1, d_ff)),                   # W_ff1
                bcast((d_ff, D)), bcast((1, D)),                      # W_ff2
            ],
            out_specs=pl.BlockSpec((block_b, S, D), lambda i: (i, 0, 0)),
        ),
        compiler_params=pltpu.CompilerParams(
            dimension_semantics=("parallel",),
        ),
    )(seq, mask,
      ln1_g.reshape(1, D), ln1_b.reshape(1, D),
      w_qkv, b_qkv.reshape(1, 3 * D),
      w_o, b_o.reshape(1, D),
      ln2_g.reshape(1, D), ln2_b.reshape(1, D),
      w_ff1, b_ff1.reshape(1, d_ff),
      w_ff2, b_ff2.reshape(1, D))
    return out


class PallasEncoderLayer:
    """Mirrors EncoderLayer(size, self_attn, ff1, dropout).forward(seq, seq_mask)."""

    def __init__(self, size, num_heads, d_ff, key):
        self.size = size
        self.num_heads = num_heads
        self.params = init_encoder_layer_params(key, size, d_ff)

    def __call__(self, seq, seq_mask):
        return encoder_layer_forward(seq, seq_mask, self.params,
                                     num_heads=self.num_heads)


def init_encoder_layer_params(key, size, d_ff, scale=0.1):
    D = size
    ks = jax.random.split(key, 12)
    ln1_g = 1.0 + 0.05 * jax.random.normal(ks[0], (D,), jnp.float32)
    ln1_b = 0.05 * jax.random.normal(ks[1], (D,), jnp.float32)
    w_qkv = scale * jax.random.normal(ks[2], (D, 3 * D), jnp.float32)
    b_qkv = scale * jax.random.normal(ks[3], (3 * D,), jnp.float32)
    w_o = scale * jax.random.normal(ks[4], (D, D), jnp.float32)
    b_o = scale * jax.random.normal(ks[5], (D,), jnp.float32)
    ln2_g = 1.0 + 0.05 * jax.random.normal(ks[6], (D,), jnp.float32)
    ln2_b = 0.05 * jax.random.normal(ks[7], (D,), jnp.float32)
    w_ff1 = scale * jax.random.normal(ks[8], (D, d_ff), jnp.float32)
    b_ff1 = scale * jax.random.normal(ks[9], (d_ff,), jnp.float32)
    w_ff2 = scale * jax.random.normal(ks[10], (d_ff, D), jnp.float32)
    b_ff2 = scale * jax.random.normal(ks[11], (D,), jnp.float32)
    return (ln1_g, ln1_b, w_qkv, b_qkv, w_o, b_o,
            ln2_g, ln2_b, w_ff1, b_ff1, w_ff2, b_ff2)


# ----------------------------------------------------------------------------
# Pure-JAX reference (mirrors the PyTorch module, dropout in eval mode).
# ----------------------------------------------------------------------------
def _encoder_layer_ref(seq, seq_mask, params, *, num_heads, eps=1e-6):
    (ln1_g, ln1_b, w_qkv, b_qkv, w_o, b_o,
     ln2_g, ln2_b, w_ff1, b_ff1, w_ff2, b_ff2) = params
    B, S, D = seq.shape
    dk = D // num_heads
    x = seq.astype(jnp.float32)

    def layer_norm(v, g, b):
        mean = jnp.mean(v, -1, keepdims=True)
        d = v - mean
        var = jnp.sum(d * d, -1, keepdims=True) / (D - 1)   # unbiased
        return g * d / (jnp.sqrt(var) + eps) + b

    mask = jnp.asarray(seq_mask)
    if mask.ndim == 2:
        mask = mask[:, None, :]
    mask = (mask != 0)                                       # (B, 1, S)

    ln1 = layer_norm(x, ln1_g, ln1_b)
    qkv = ln1 @ w_qkv + b_qkv
    q, k, v = jnp.split(qkv, 3, axis=-1)
    q = q.reshape(B, S, num_heads, dk).transpose(0, 2, 1, 3)
    k = k.reshape(B, S, num_heads, dk).transpose(0, 2, 1, 3)
    v = v.reshape(B, S, num_heads, dk).transpose(0, 2, 1, 3)
    scores = jnp.einsum("bhqd,bhkd->bhqk", q, k) / math.sqrt(dk)
    scores = jnp.where(mask[:, None, :, :], scores, -1e9)
    p = jax.nn.softmax(scores, axis=-1)
    attn = jnp.einsum("bhqk,bhkd->bhqd", p, v)
    attn = attn.transpose(0, 2, 1, 3).reshape(B, S, D)
    x1 = x + (attn @ w_o + b_o)

    ln2 = layer_norm(x1, ln2_g, ln2_b)
    ff = jnp.maximum(ln2 @ w_ff1 + b_ff1, 0.0) @ w_ff2 + b_ff2
    return (x1 + ff).astype(seq.dtype)


if __name__ == "__main__":
    size = 32          # d_model
    num_heads = 4
    d_ff = 128
    batch, seq_len = 2, 8

    key = jax.random.PRNGKey(0)
    k_params, k_seq = jax.random.split(key, 2)

    layer = PallasEncoderLayer(size, num_heads, d_ff, k_params)

    seq = jax.random.normal(k_seq, (batch, seq_len, size), jnp.float32)
    # Non-trivial padding mask (src_mask style, shape (B, 1, S)).
    lengths = jnp.array([seq_len, seq_len - 3])
    seq_mask = (jnp.arange(seq_len)[None, :] < lengths[:, None]).astype(
        jnp.float32)[:, None, :]

    out = layer(seq, seq_mask)
    jax.block_until_ready(out)

    ref = _encoder_layer_ref(seq, seq_mask, layer.params, num_heads=num_heads)
    assert out.shape == seq.shape
    assert jnp.allclose(out, ref, atol=2e-3, rtol=2e-3), (
        "mismatch vs reference: max abs err = %e"
        % float(jnp.max(jnp.abs(out - ref))))

    print("KERNEL_OK")
</pallas_src>

<mosaic_0001>
module attributes {stable_mosaic.version = 11 : i64} {
  func.func @_encoder_layer_kernel(%arg0: i32, %arg1: memref<2x8x32xf32, #tpu.memory_space<vmem>>, %arg2: memref<2x1x8xf32, #tpu.memory_space<vmem>>, %arg3: memref<1x32xf32, #tpu.memory_space<vmem>>, %arg4: memref<1x32xf32, #tpu.memory_space<vmem>>, %arg5: memref<32x96xf32, #tpu.memory_space<vmem>>, %arg6: memref<1x96xf32, #tpu.memory_space<vmem>>, %arg7: memref<32x32xf32, #tpu.memory_space<vmem>>, %arg8: memref<1x32xf32, #tpu.memory_space<vmem>>, %arg9: memref<1x32xf32, #tpu.memory_space<vmem>>, %arg10: memref<1x32xf32, #tpu.memory_space<vmem>>, %arg11: memref<32x128xf32, #tpu.memory_space<vmem>>, %arg12: memref<1x128xf32, #tpu.memory_space<vmem>>, %arg13: memref<128x32xf32, #tpu.memory_space<vmem>>, %arg14: memref<1x32xf32, #tpu.memory_space<vmem>>, %arg15: memref<2x8x32xf32, #tpu.memory_space<vmem>>) attributes {dimension_semantics = [#tpu.dimension_semantics<parallel>], iteration_bounds = array<i64: 1>, scalar_prefetch = 0 : i64, scratch_operands = 0 : i64, tpu.core_type = #tpu.core_type<tc>, window_params = [{transform_indices = @transform_0, window_bounds = array<i64: 2, 8, 32>}, {transform_indices = @transform_1, window_bounds = array<i64: 2, 1, 8>}, {pipeline_mode = #tpu.pipeline_mode<synchronous>, transform_indices = @transform_2, window_bounds = array<i64: 1, 32>}, {pipeline_mode = #tpu.pipeline_mode<synchronous>, transform_indices = @transform_3, window_bounds = array<i64: 1, 32>}, {pipeline_mode = #tpu.pipeline_mode<synchronous>, transform_indices = @transform_4, window_bounds = array<i64: 32, 96>}, {pipeline_mode = #tpu.pipeline_mode<synchronous>, transform_indices = @transform_5, window_bounds = array<i64: 1, 96>}, {pipeline_mode = #tpu.pipeline_mode<synchronous>, transform_indices = @transform_6, window_bounds = array<i64: 32, 32>}, {pipeline_mode = #tpu.pipeline_mode<synchronous>, transform_indices = @transform_7, window_bounds = array<i64: 1, 32>}, {pipeline_mode = #tpu.pipeline_mode<synchronous>, transform_indices = @transform_8, window_bounds = array<i64: 1, 32>}, {pipeline_mode = #tpu.pipeline_mode<synchronous>, transform_indices = @transform_9, window_bounds = array<i64: 1, 32>}, {pipeline_mode = #tpu.pipeline_mode<synchronous>, transform_indices = @transform_10, window_bounds = array<i64: 32, 128>}, {pipeline_mode = #tpu.pipeline_mode<synchronous>, transform_indices = @transform_11, window_bounds = array<i64: 1, 128>}, {pipeline_mode = #tpu.pipeline_mode<synchronous>, transform_indices = @transform_12, window_bounds = array<i64: 128, 32>}, {pipeline_mode = #tpu.pipeline_mode<synchronous>, transform_indices = @transform_13, window_bounds = array<i64: 1, 32>}, {transform_indices = @transform_14, window_bounds = array<i64: 2, 8, 32>}]} {
    %c0 = arith.constant 0 : index
    %c0_0 = arith.constant 0 : index
    %c0_1 = arith.constant 0 : index
    %0 = vector.load %arg1[%c0, %c0_0, %c0_1] : memref<2x8x32xf32, #tpu.memory_space<vmem>>, vector<2x8x32xf32>
    %1 = vector.shape_cast %0 : vector<2x8x32xf32> to vector<16x32xf32>
    %c0_2 = arith.constant 0 : index
    %c0_3 = arith.constant 0 : index
    %2 = vector.load %arg3[%c0_2, %c0_3] : memref<1x32xf32, #tpu.memory_space<vmem>>, vector<1x32xf32>
    %c0_4 = arith.constant 0 : index
    %c0_5 = arith.constant 0 : index
    %3 = vector.load %arg4[%c0_4, %c0_5] : memref<1x32xf32, #tpu.memory_space<vmem>>, vector<1x32xf32>
    %cst = arith.constant dense<0.000000e+00> : vector<16xf32>
    %4 = vector.multi_reduction <add>, %1, %cst [1] : vector<16x32xf32> to vector<16xf32>
    %5 = vector.shape_cast %4 : vector<16xf32> to vector<16x1xf32>
    %cst_6 = arith.constant 3.200000e+01 : f32
    %6 = vector.broadcast %cst_6 : f32 to vector<16x1xf32>
    %7 = arith.divf %5, %6 : vector<16x1xf32>
    %8 = vector.broadcast %7 : vector<16x1xf32> to vector<16x32xf32>
    %9 = arith.subf %1, %8 : vector<16x32xf32>
    %10 = arith.mulf %9, %9 : vector<16x32xf32>
    %cst_7 = arith.constant dense<0.000000e+00> : vector<16xf32>
    %11 = vector.multi_reduction <add>, %10, %cst_7 [1] : vector<16x32xf32> to vector<16xf32>
    %12 = vector.shape_cast %11 : vector<16xf32> to vector<16x1xf32>
    %cst_8 = arith.constant 0.0322580636 : f32
    %13 = vector.broadcast %cst_8 : f32 to vector<16x1xf32>
    %14 = arith.mulf %12, %13 : vector<16x1xf32>
    %15 = math.sqrt %14 : vector<16x1xf32>
    %cst_9 = arith.constant 9.99999997E-7 : f32
    %16 = vector.broadcast %cst_9 : f32 to vector<16x1xf32>
    %17 = arith.addf %15, %16 : vector<16x1xf32>
    %18 = tpu.reciprocal %17 : vector<16x1xf32> -> vector<16x1xf32>
    %19 = vector.broadcast %18 : vector<16x1xf32> to vector<16x32xf32>
    %20 = arith.mulf %9, %19 : vector<16x32xf32>
    %21 = vector.broadcast %2 : vector<1x32xf32> to vector<16x32xf32>
    %22 = arith.mulf %21, %20 : vector<16x32xf32>
    %23 = vector.broadcast %3 : vector<1x32xf32> to vector<16x32xf32>
    %24 = arith.addf %22, %23 : vector<16x32xf32>
    %c0_10 = arith.constant 0 : index
    %c0_11 = arith.constant 0 : index
    %25 = vector.load %arg5[%c0_10, %c0_11] : memref<32x96xf32, #tpu.memory_space<vmem>>, vector<32x96xf32>
    %cst_12 = arith.constant dense<0.000000e+00> : vector<16x96xf32>
    %26 = tpu.matmul %24, %25, %cst_12 {dimension_numbers = #tpu.dot_dimension_numbers<[1], [0], [0], [1], [0, 0, 1, 1], [], []>, precision = #tpu.contract_precision<fp32>} : vector<16x32xf32>, vector<32x96xf32>, vector<16x96xf32> -> vector<16x96xf32>
    %c0_13 = arith.constant 0 : index
    %c0_14 = arith.constant 0 : index
    %27 = vector.load %arg6[%c0_13, %c0_14] : memref<1x96xf32, #tpu.memory_space<vmem>>, vector<1x96xf32>
    %28 = vector.broadcast %27 : vector<1x96xf32> to vector<16x96xf32>
    %29 = arith.addf %26, %28 : vector<16x96xf32>
    %30 = vector.extract_strided_slice %29 {offsets = [0, 0], sizes = [8, 96], strides = [1, 1]} : vector<16x96xf32> to vector<8x96xf32>
    %31 = vector.extract_strided_slice %30 {offsets = [0, 0], sizes = [8, 32], strides = [1, 1]} : vector<8x96xf32> to vector<8x32xf32>
    %32 = vector.extract_strided_slice %30 {offsets = [0, 32], sizes = [8, 32], strides = [1, 1]} : vector<8x96xf32> to vector<8x32xf32>
    %33 = vector.extract_strided_slice %30 {offsets = [0, 64], sizes = [8, 32], strides = [1, 1]} : vector<8x96xf32> to vector<8x32xf32>
    %c0_15 = arith.constant 0 : index
    %c0_16 = arith.constant 0 : index
    %c0_17 = arith.constant 0 : index
    %34 = vector.load %arg2[%c0_15, %c0_16, %c0_17] : memref<2x1x8xf32, #tpu.memory_space<vmem>>, vector<1x1x8xf32>
    %35 = vector.shape_cast %34 : vector<1x1x8xf32> to vector<1x8xf32>
    %36 = vector.extract_strided_slice %31 {offsets = [0, 0], sizes = [8, 8], strides = [1, 1]} : vector<8x32xf32> to vector<8x8xf32>
    %37 = vector.extract_strided_slice %32 {offsets = [0, 0], sizes = [8, 8], strides = [1, 1]} : vector<8x32xf32> to vector<8x8xf32>
    %38 = vector.extract_strided_slice %33 {offsets = [0, 0], sizes = [8, 8], strides = [1, 1]} : vector<8x32xf32> to vector<8x8xf32>
    %cst_18 = arith.constant dense<0.000000e+00> : vector<8x8xf32>
    %39 = tpu.matmul %36, %37, %cst_18 {dimension_numbers = #tpu.dot_dimension_numbers<[1], [1], [0], [0], [0, 0, 1, 0], [], []>, precision = #tpu.contract_precision<fp32>} : vector<8x8xf32>, vector<8x8xf32>, vector<8x8xf32> -> vector<8x8xf32>
    %cst_19 = arith.constant 0.353553385 : f32
    %40 = vector.broadcast %cst_19 : f32 to vector<8x8xf32>
    %41 = arith.mulf %39, %40 : vector<8x8xf32>
    %cst_20 = arith.constant 0.000000e+00 : f32
    %42 = vector.broadcast %cst_20 : f32 to vector<1x8xf32>
    %43 = arith.cmpf ogt, %35, %42 : vector<1x8xf32>
    %cst_21 = arith.constant -1.000000e+09 : f32
    %44 = vector.shape_cast %43 : vector<1x8xi1> to vector<1x8xi1>
    %45 = vector.broadcast %44 : vector<1x8xi1> to vector<8x8xi1>
    %46 = vector.broadcast %cst_21 : f32 to vector<8x8xf32>
    %47 = arith.select %45, %41, %46 : vector<8x8xi1>, vector<8x8xf32>
    %cst_22 = arith.constant dense<0xFF800000> : vector<8xf32>
    %48 = vector.multi_reduction <maximumf>, %47, %cst_22 [1] : vector<8x8xf32> to vector<8xf32>
    %49 = vector.shape_cast %48 : vector<8xf32> to vector<8x1xf32>
    %50 = vector.broadcast %49 : vector<8x1xf32> to vector<8x8xf32>
    %51 = arith.subf %47, %50 : vector<8x8xf32>
    %52 = math.exp %51 : vector<8x8xf32>
    %cst_23 = arith.constant dense<0.000000e+00> : vector<8xf32>
    %53 = vector.multi_reduction <add>, %52, %cst_23 [1] : vector<8x8xf32> to vector<8xf32>
    %54 = vector.shape_cast %53 : vector<8xf32> to vector<8x1xf32>
    %55 = tpu.reciprocal %54 : vector<8x1xf32> -> vector<8x1xf32>
    %56 = vector.broadcast %55 : vector<8x1xf32> to vector<8x8xf32>
    %57 = arith.mulf %52, %56 : vector<8x8xf32>
    %cst_24 = arith.constant dense<0.000000e+00> : vector<8x8xf32>
    %58 = tpu.matmul %57, %38, %cst_24 {dimension_numbers = #tpu.dot_dimension_numbers<[1], [0], [0], [1], [0, 0, 1, 1], [], []>, precision = #tpu.contract_precision<fp32>} : vector<8x8xf32>, vector<8x8xf32>, vector<8x8xf32> -> vector<8x8xf32>
    %59 = vector.extract_strided_slice %31 {offsets = [0, 8], sizes = [8, 8], strides = [1, 1]} : vector<8x32xf32> to vector<8x8xf32>
    %60 = vector.extract_strided_slice %32 {offsets = [0, 8], sizes = [8, 8], strides = [1, 1]} : vector<8x32xf32> to vector<8x8xf32>
    %61 = vector.extract_strided_slice %33 {offsets = [0, 8], sizes = [8, 8], strides = [1, 1]} : vector<8x32xf32> to vector<8x8xf32>
    %cst_25 = arith.constant dense<0.000000e+00> : vector<8x8xf32>
    %62 = tpu.matmul %59, %60, %cst_25 {dimension_numbers = #tpu.dot_dimension_numbers<[1], [1], [0], [0], [0, 0, 1, 0], [], []>, precision = #tpu.contract_precision<fp32>} : vector<8x8xf32>, vector<8x8xf32>, vector<8x8xf32> -> vector<8x8xf32>
    %cst_26 = arith.constant 0.353553385 : f32
    %63 = vector.broadcast %cst_26 : f32 to vector<8x8xf32>
    %64 = arith.mulf %62, %63 : vector<8x8xf32>
    %cst_27 = arith.constant 0.000000e+00 : f32
    %65 = vector.broadcast %cst_27 : f32 to vector<1x8xf32>
    %66 = arith.cmpf ogt, %35, %65 : vector<1x8xf32>
    %cst_28 = arith.constant -1.000000e+09 : f32
    %67 = vector.shape_cast %66 : vector<1x8xi1> to vector<1x8xi1>
    %68 = vector.broadcast %67 : vector<1x8xi1> to vector<8x8xi1>
    %69 = vector.broadcast %cst_28 : f32 to vector<8x8xf32>
    %70 = arith.select %68, %64, %69 : vector<8x8xi1>, vector<8x8xf32>
    %cst_29 = arith.constant dense<0xFF800000> : vector<8xf32>
    %71 = vector.multi_reduction <maximumf>, %70, %cst_29 [1] : vector<8x8xf32> to vector<8xf32>
    %72 = vector.shape_cast %71 : vector<8xf32> to vector<8x1xf32>
    %73 = vector.broadcast %72 : vector<8x1xf32> to vector<8x8xf32>
    %74 = arith.subf %70, %73 : vector<8x8xf32>
    %75 = math.exp %74 : vector<8x8xf32>
    %cst_30 = arith.constant dense<0.000000e+00> : vector<8xf32>
    %76 = vector.multi_reduction <add>, %75, %cst_30 [1] : vector<8x8xf32> to vector<8xf32>
    %77 = vector.shape_cast %76 : vector<8xf32> to vector<8x1xf32>
    %78 = tpu.reciprocal %77 : vector<8x1xf32> -> vector<8x1xf32>
    %79 = vector.broadcast %78 : vector<8x1xf32> to vector<8x8xf32>
    %80 = arith.mulf %75, %79 : vector<8x8xf32>
    %cst_31 = arith.constant dense<0.000000e+00> : vector<8x8xf32>
    %81 = tpu.matmul %80, %61, %cst_31 {dimension_numbers = #tpu.dot_dimension_numbers<[1], [0], [0], [1], [0, 0, 1, 1], [], []>, precision = #tpu.contract_precision<fp32>} : vector<8x8xf32>, vector<8x8xf32>, vector<8x8xf32> -> vector<8x8xf32>
    %82 = vector.extract_strided_slice %31 {offsets = [0, 16], sizes = [8, 8], strides = [1, 1]} : vector<8x32xf32> to vector<8x8xf32>
    %83 = vector.extract_strided_slice %32 {offsets = [0, 16], sizes = [8, 8], strides = [1, 1]} : vector<8x32xf32> to vector<8x8xf32>
    %84 = vector.extract_strided_slice %33 {offsets = [0, 16], sizes = [8, 8], strides = [1, 1]} : vector<8x32xf32> to vector<8x8xf32>
    %cst_32 = arith.constant dense<0.000000e+00> : vector<8x8xf32>
    %85 = tpu.matmul %82, %83, %cst_32 {dimension_numbers = #tpu.dot_dimension_numbers<[1], [1], [0], [0], [0, 0, 1, 0], [], []>, precision = #tpu.contract_precision<fp32>} : vector<8x8xf32>, vector<8x8xf32>, vector<8x8xf32> -> vector<8x8xf32>
    %cst_33 = arith.constant 0.353553385 : f32
    %86 = vector.broadcast %cst_33 : f32 to vector<8x8xf32>
    %87 = arith.mulf %85, %86 : vector<8x8xf32>
    %cst_34 = arith.constant 0.000000e+00 : f32
    %88 = vector.broadcast %cst_34 : f32 to vector<1x8xf32>
    %89 = arith.cmpf ogt, %35, %88 : vector<1x8xf32>
    %cst_35 = arith.constant -1.000000e+09 : f32
    %90 = vector.shape_cast %89 : vector<1x8xi1> to vector<1x8xi1>
    %91 = vector.broadcast %90 : vector<1x8xi1> to vector<8x8xi1>
    %92 = vector.broadcast %cst_35 : f32 to vector<8x8xf32>
    %93 = arith.select %91, %87, %92 : vector<8x8xi1>, vector<8x8xf32>
    %cst_36 = arith.constant dense<0xFF800000> : vector<8xf32>
    %94 = vector.multi_reduction <maximumf>, %93, %cst_36 [1] : vector<8x8xf32> to vector<8xf32>
    %95 = vector.shape_cast %94 : vector<8xf32> to vector<8x1xf32>
    %96 = vector.broadcast %95 : vector<8x1xf32> to vector<8x8xf32>
    %97 = arith.subf %93, %96 : vector<8x8xf32>
    %98 = math.exp %97 : vector<8x8xf32>
    %cst_37 = arith.constant dense<0.000000e+00> : vector<8xf32>
    %99 = vector.multi_reduction <add>, %98, %cst_37 [1] : vector<8x8xf32> to vector<8xf32>
    %100 = vector.shape_cast %99 : vector<8xf32> to vector<8x1xf32>
    %101 = tpu.reciprocal %100 : vector<8x1xf32> -> vector<8x1xf32>
    %102 = vector.broadcast %101 : vector<8x1xf32> to vector<8x8xf32>
    %103 = arith.mulf %98, %102 : vector<8x8xf32>
    %cst_38 = arith.constant dense<0.000000e+00> : vector<8x8xf32>
    %104 = tpu.matmul %103, %84, %cst_38 {dimension_numbers = #tpu.dot_dimension_numbers<[1], [0], [0], [1], [0, 0, 1, 1], [], []>, precision = #tpu.contract_precision<fp32>} : vector<8x8xf32>, vector<8x8xf32>, vector<8x8xf32> -> vector<8x8xf32>
    %105 = vector.extract_strided_slice %31 {offsets = [0, 24], sizes = [8, 8], strides = [1, 1]} : vector<8x32xf32> to vector<8x8xf32>
    %106 = vector.extract_strided_slice %32 {offsets = [0, 24], sizes = [8, 8], strides = [1, 1]} : vector<8x32xf32> to vector<8x8xf32>
    %107 = vector.extract_strided_slice %33 {offsets = [0, 24], sizes = [8, 8], strides = [1, 1]} : vector<8x32xf32> to vector<8x8xf32>
    %cst_39 = arith.constant dense<0.000000e+00> : vector<8x8xf32>
    %108 = tpu.matmul %105, %106, %cst_39 {dimension_numbers = #tpu.dot_dimension_numbers<[1], [1], [0], [0], [0, 0, 1, 0], [], []>, precision = #tpu.contract_precision<fp32>} : vector<8x8xf32>, vector<8x8xf32>, vector<8x8xf32> -> vector<8x8xf32>
    %cst_40 = arith.constant 0.353553385 : f32
    %109 = vector.broadcast %cst_40 : f32 to vector<8x8xf32>
    %110 = arith.mulf %108, %109 : vector<8x8xf32>
    %cst_41 = arith.constant 0.000000e+00 : f32
    %111 = vector.broadcast %cst_41 : f32 to vector<1x8xf32>
    %112 = arith.cmpf ogt, %35, %111 : vector<1x8xf32>
    %cst_42 = arith.constant -1.000000e+09 : f32
    %113 = vector.shape_cast %112 : vector<1x8xi1> to vector<1x8xi1>
    %114 = vector.broadcast %113 : vector<1x8xi1> to vector<8x8xi1>
    %115 = vector.broadcast %cst_42 : f32 to vector<8x8xf32>
    %116 = arith.select %114, %110, %115 : vector<8x8xi1>, vector<8x8xf32>
    %cst_43 = arith.constant dense<0xFF800000> : vector<8xf32>
    %117 = vector.multi_reduction <maximumf>, %116, %cst_43 [1] : vector<8x8xf32> to vector<8xf32>
    %118 = vector.shape_cast %117 : vector<8xf32> to vector<8x1xf32>
    %119 = vector.broadcast %118 : vector<8x1xf32> to vector<8x8xf32>
    %120 = arith.subf %116, %119 : vector<8x8xf32>
    %121 = math.exp %120 : vector<8x8xf32>
    %cst_44 = arith.constant dense<0.000000e+00> : vector<8xf32>
    %122 = vector.multi_reduction <add>, %121, %cst_44 [1] : vector<8x8xf32> to vector<8xf32>
    %123 = vector.shape_cast %122 : vector<8xf32> to vector<8x1xf32>
    %124 = tpu.reciprocal %123 : vector<8x1xf32> -> vector<8x1xf32>
    %125 = vector.broadcast %124 : vector<8x1xf32> to vector<8x8xf32>
    %126 = arith.mulf %121, %125 : vector<8x8xf32>
    %cst_45 = arith.constant dense<0.000000e+00> : vector<8x8xf32>
    %127 = tpu.matmul %126, %107, %cst_45 {dimension_numbers = #tpu.dot_dimension_numbers<[1], [0], [0], [1], [0, 0, 1, 1], [], []>, precision = #tpu.contract_precision<fp32>} : vector<8x8xf32>, vector<8x8xf32>, vector<8x8xf32> -> vector<8x8xf32>
    %128 = tpu.concatenate %58, %81, %104, %127 in 1 : vector<8x8xf32>, vector<8x8xf32>, vector<8x8xf32>, vector<8x8xf32> -> vector<8x32xf32>
    %129 = vector.extract_strided_slice %29 {offsets = [8, 0], sizes = [8, 96], strides = [1, 1]} : vector<16x96xf32> to vector<8x96xf32>
    %130 = vector.extract_strided_slice %129 {offsets = [0, 0], sizes = [8, 32], strides = [1, 1]} : vector<8x96xf32> to vector<8x32xf32>
    %131 = vector.extract_strided_slice %129 {offsets = [0, 32], sizes = [8, 32], strides = [1, 1]} : vector<8x96xf32> to vector<8x32xf32>
    %132 = vector.extract_strided_slice %129 {offsets = [0, 64], sizes = [8, 32], strides = [1, 1]} : vector<8x96xf32> to vector<8x32xf32>
    %c1 = arith.constant 1 : index
    %c0_46 = arith.constant 0 : index
    %c0_47 = arith.constant 0 : index
    %133 = vector.load %arg2[%c1, %c0_46, %c0_47] : memref<2x1x8xf32, #tpu.memory_space<vmem>>, vector<1x1x8xf32>
    %134 = vector.shape_cast %133 : vector<1x1x8xf32> to vector<1x8xf32>
    %135 = vector.extract_strided_slice %130 {offsets = [0, 0], sizes = [8, 8], strides = [1, 1]} : vector<8x32xf32> to vector<8x8xf32>
    %136 = vector.extract_strided_slice %131 {offsets = [0, 0], sizes = [8, 8], strides = [1, 1]} : vector<8x32xf32> to vector<8x8xf32>
    %137 = vector.extract_strided_slice %132 {offsets = [0, 0], sizes = [8, 8], strides = [1, 1]} : vector<8x32xf32> to vector<8x8xf32>
    %cst_48 = arith.constant dense<0.000000e+00> : vector<8x8xf32>
    %138 = tpu.matmul %135, %136, %cst_48 {dimension_numbers = #tpu.dot_dimension_numbers<[1], [1], [0], [0], [0, 0, 1, 0], [], []>, precision = #tpu.contract_precision<fp32>} : vector<8x8xf32>, vector<8x8xf32>, vector<8x8xf32> -> vector<8x8xf32>
    %cst_49 = arith.constant 0.353553385 : f32
    %139 = vector.broadcast %cst_49 : f32 to vector<8x8xf32>
    %140 = arith.mulf %138, %139 : vector<8x8xf32>
    %cst_50 = arith.constant 0.000000e+00 : f32
    %141 = vector.broadcast %cst_50 : f32 to vector<1x8xf32>
    %142 = arith.cmpf ogt, %134, %141 : vector<1x8xf32>
    %cst_51 = arith.constant -1.000000e+09 : f32
    %143 = vector.shape_cast %142 : vector<1x8xi1> to vector<1x8xi1>
    %144 = vector.broadcast %143 : vector<1x8xi1> to vector<8x8xi1>
    %145 = vector.broadcast %cst_51 : f32 to vector<8x8xf32>
    %146 = arith.select %144, %140, %145 : vector<8x8xi1>, vector<8x8xf32>
    %cst_52 = arith.constant dense<0xFF800000> : vector<8xf32>
    %147 = vector.multi_reduction <maximumf>, %146, %cst_52 [1] : vector<8x8xf32> to vector<8xf32>
    %148 = vector.shape_cast %147 : vector<8xf32> to vector<8x1xf32>
    %149 = vector.broadcast %148 : vector<8x1xf32> to vector<8x8xf32>
    %150 = arith.subf %146, %149 : vector<8x8xf32>
    %151 = math.exp %150 : vector<8x8xf32>
    %cst_53 = arith.constant dense<0.000000e+00> : vector<8xf32>
    %152 = vector.multi_reduction <add>, %151, %cst_53 [1] : vector<8x8xf32> to vector<8xf32>
    %153 = vector.shape_cast %152 : vector<8xf32> to vector<8x1xf32>
    %154 = tpu.reciprocal %153 : vector<8x1xf32> -> vector<8x1xf32>
    %155 = vector.broadcast %154 : vector<8x1xf32> to vector<8x8xf32>
    %156 = arith.mulf %151, %155 : vector<8x8xf32>
    %cst_54 = arith.constant dense<0.000000e+00> : vector<8x8xf32>
    %157 = tpu.matmul %156, %137, %cst_54 {dimension_numbers = #tpu.dot_dimension_numbers<[1], [0], [0], [1], [0, 0, 1, 1], [], []>, precision = #tpu.contract_precision<fp32>} : vector<8x8xf32>, vector<8x8xf32>, vector<8x8xf32> -> vector<8x8xf32>
    %158 = vector.extract_strided_slice %130 {offsets = [0, 8], sizes = [8, 8], strides = [1, 1]} : vector<8x32xf32> to vector<8x8xf32>
    %159 = vector.extract_strided_slice %131 {offsets = [0, 8], sizes = [8, 8], strides = [1, 1]} : vector<8x32xf32> to vector<8x8xf32>
    %160 = vector.extract_strided_slice %132 {offsets = [0, 8], sizes = [8, 8], strides = [1, 1]} : vector<8x32xf32> to vector<8x8xf32>
    %cst_55 = arith.constant dense<0.000000e+00> : vector<8x8xf32>
    %161 = tpu.matmul %158, %159, %cst_55 {dimension_numbers = #tpu.dot_dimension_numbers<[1], [1], [0], [0], [0, 0, 1, 0], [], []>, precision = #tpu.contract_precision<fp32>} : vector<8x8xf32>, vector<8x8xf32>, vector<8x8xf32> -> vector<8x8xf32>
    %cst_56 = arith.constant 0.353553385 : f32
    %162 = vector.broadcast %cst_56 : f32 to vector<8x8xf32>
    %163 = arith.mulf %161, %162 : vector<8x8xf32>
    %cst_57 = arith.constant 0.000000e+00 : f32
    %164 = vector.broadcast %cst_57 : f32 to vector<1x8xf32>
    %165 = arith.cmpf ogt, %134, %164 : vector<1x8xf32>
    %cst_58 = arith.constant -1.000000e+09 : f32
    %166 = vector.shape_cast %165 : vector<1x8xi1> to vector<1x8xi1>
    %167 = vector.broadcast %166 : vector<1x8xi1> to vector<8x8xi1>
    %168 = vector.broadcast %cst_58 : f32 to vector<8x8xf32>
    %169 = arith.select %167, %163, %168 : vector<8x8xi1>, vector<8x8xf32>
    %cst_59 = arith.constant dense<0xFF800000> : vector<8xf32>
    %170 = vector.multi_reduction <maximumf>, %169, %cst_59 [1] : vector<8x8xf32> to vector<8xf32>
    %171 = vector.shape_cast %170 : vector<8xf32> to vector<8x1xf32>
    %172 = vector.broadcast %171 : vector<8x1xf32> to vector<8x8xf32>
    %173 = arith.subf %169, %172 : vector<8x8xf32>
    %174 = math.exp %173 : vector<8x8xf32>
    %cst_60 = arith.constant dense<0.000000e+00> : vector<8xf32>
    %175 = vector.multi_reduction <add>, %174, %cst_60 [1] : vector<8x8xf32> to vector<8xf32>
    %176 = vector.shape_cast %175 : vector<8xf32> to vector<8x1xf32>
    %177 = tpu.reciprocal %176 : vector<8x1xf32> -> vector<8x1xf32>
    %178 = vector.broadcast %177 : vector<8x1xf32> to vector<8x8xf32>
    %179 = arith.mulf %174, %178 : vector<8x8xf32>
    %cst_61 = arith.constant dense<0.000000e+00> : vector<8x8xf32>
    %180 = tpu.matmul %179, %160, %cst_61 {dimension_numbers = #tpu.dot_dimension_numbers<[1], [0], [0], [1], [0, 0, 1, 1], [], []>, precision = #tpu.contract_precision<fp32>} : vector<8x8xf32>, vector<8x8xf32>, vector<8x8xf32> -> vector<8x8xf32>
    %181 = vector.extract_strided_slice %130 {offsets = [0, 16], sizes = [8, 8], strides = [1, 1]} : vector<8x32xf32> to vector<8x8xf32>
    %182 = vector.extract_strided_slice %131 {offsets = [0, 16], sizes = [8, 8], strides = [1, 1]} : vector<8x32xf32> to vector<8x8xf32>
    %183 = vector.extract_strided_slice %132 {offsets = [0, 16], sizes = [8, 8], strides = [1, 1]} : vector<8x32xf32> to vector<8x8xf32>
    %cst_62 = arith.constant dense<0.000000e+00> : vector<8x8xf32>
    %184 = tpu.matmul %181, %182, %cst_62 {dimension_numbers = #tpu.dot_dimension_numbers<[1], [1], [0], [0], [0, 0, 1, 0], [], []>, precision = #tpu.contract_precision<fp32>} : vector<8x8xf32>, vector<8x8xf32>, vector<8x8xf32> -> vector<8x8xf32>
    %cst_63 = arith.constant 0.353553385 : f32
    %185 = vector.broadcast %cst_63 : f32 to vector<8x8xf32>
    %186 = arith.mulf %184, %185 : vector<8x8xf32>
    %cst_64 = arith.constant 0.000000e+00 : f32
    %187 = vector.broadcast %cst_64 : f32 to vector<1x8xf32>
    %188 = arith.cmpf ogt, %134, %187 : vector<1x8xf32>
    %cst_65 = arith.constant -1.000000e+09 : f32
    %189 = vector.shape_cast %188 : vector<1x8xi1> to vector<1x8xi1>
    %190 = vector.broadcast %189 : vector<1x8xi1> to vector<8x8xi1>
    %191 = vector.broadcast %cst_65 : f32 to vector<8x8xf32>
    %192 = arith.select %190, %186, %191 : vector<8x8xi1>, vector<8x8xf32>
    %cst_66 = arith.constant dense<0xFF800000> : vector<8xf32>
    %193 = vector.multi_reduction <maximumf>, %192, %cst_66 [1] : vector<8x8xf32> to vector<8xf32>
    %194 = vector.shape_cast %193 : vector<8xf32> to vector<8x1xf32>
    %195 = vector.broadcast %194 : vector<8x1xf32> to vector<8x8xf32>
    %196 = arith.subf %192, %195 : vector<8x8xf32>
    %197 = math.exp %196 : vector<8x8xf32>
    %cst_67 = arith.constant dense<0.000000e+00> : vector<8xf32>
    %198 = vector.multi_reduction <add>, %197, %cst_67 [1] : vector<8x8xf32> to vector<8xf32>
    %199 = vector.shape_cast %198 : vector<8xf32> to vector<8x1xf32>
    %200 = tpu.reciprocal %199 : vector<8x1xf32> -> vector<8x1xf32>
    %201 = vector.broadcast %200 : vector<8x1xf32> to vector<8x8xf32>
    %202 = arith.mulf %197, %201 : vector<8x8xf32>
    %cst_68 = arith.constant dense<0.000000e+00> : vector<8x8xf32>
    %203 = tpu.matmul %202, %183, %cst_68 {dimension_numbers = #tpu.dot_dimension_numbers<[1], [0], [0], [1], [0, 0, 1, 1], [], []>, precision = #tpu.contract_precision<fp32>} : vector<8x8xf32>, vector<8x8xf32>, vector<8x8xf32> -> vector<8x8xf32>
    %204 = vector.extract_strided_slice %130 {offsets = [0, 24], sizes = [8, 8], strides = [1, 1]} : vector<8x32xf32> to vector<8x8xf32>
    %205 = vector.extract_strided_slice %131 {offsets = [0, 24], sizes = [8, 8], strides = [1, 1]} : vector<8x32xf32> to vector<8x8xf32>
    %206 = vector.extract_strided_slice %132 {offsets = [0, 24], sizes = [8, 8], strides = [1, 1]} : vector<8x32xf32> to vector<8x8xf32>
    %cst_69 = arith.constant dense<0.000000e+00> : vector<8x8xf32>
    %207 = tpu.matmul %204, %205, %cst_69 {dimension_numbers = #tpu.dot_dimension_numbers<[1], [1], [0], [0], [0, 0, 1, 0], [], []>, precision = #tpu.contract_precision<fp32>} : vector<8x8xf32>, vector<8x8xf32>, vector<8x8xf32> -> vector<8x8xf32>
    %cst_70 = arith.constant 0.353553385 : f32
    %208 = vector.broadcast %cst_70 : f32 to vector<8x8xf32>
    %209 = arith.mulf %207, %208 : vector<8x8xf32>
    %cst_71 = arith.constant 0.000000e+00 : f32
    %210 = vector.broadcast %cst_71 : f32 to vector<1x8xf32>
    %211 = arith.cmpf ogt, %134, %210 : vector<1x8xf32>
    %cst_72 = arith.constant -1.000000e+09 : f32
    %212 = vector.shape_cast %211 : vector<1x8xi1> to vector<1x8xi1>
    %213 = vector.broadcast %212 : vector<1x8xi1> to vector<8x8xi1>
    %214 = vector.broadcast %cst_72 : f32 to vector<8x8xf32>
    %215 = arith.select %213, %209, %214 : vector<8x8xi1>, vector<8x8xf32>
    %cst_73 = arith.constant dense<0xFF800000> : vector<8xf32>
    %216 = vector.multi_reduction <maximumf>, %215, %cst_73 [1] : vector<8x8xf32> to vector<8xf32>
    %217 = vector.shape_cast %216 : vector<8xf32> to vector<8x1xf32>
    %218 = vector.broadcast %217 : vector<8x1xf32> to vector<8x8xf32>
    %219 = arith.subf %215, %218 : vector<8x8xf32>
    %220 = math.exp %219 : vector<8x8xf32>
    %cst_74 = arith.constant dense<0.000000e+00> : vector<8xf32>
    %221 = vector.multi_reduction <add>, %220, %cst_74 [1] : vector<8x8xf32> to vector<8xf32>
    %222 = vector.shape_cast %221 : vector<8xf32> to vector<8x1xf32>
    %223 = tpu.reciprocal %222 : vector<8x1xf32> -> vector<8x1xf32>
    %224 = vector.broadcast %223 : vector<8x1xf32> to vector<8x8xf32>
    %225 = arith.mulf %220, %224 : vector<8x8xf32>
    %cst_75 = arith.constant dense<0.000000e+00> : vector<8x8xf32>
    %226 = tpu.matmul %225, %206, %cst_75 {dimension_numbers = #tpu.dot_dimension_numbers<[1], [0], [0], [1], [0, 0, 1, 1], [], []>, precision = #tpu.contract_precision<fp32>} : vector<8x8xf32>, vector<8x8xf32>, vector<8x8xf32> -> vector<8x8xf32>
    %227 = tpu.concatenate %157, %180, %203, %226 in 1 : vector<8x8xf32>, vector<8x8xf32>, vector<8x8xf32>, vector<8x8xf32> -> vector<8x32xf32>
    %228 = tpu.concatenate %128, %227 in 0 : vector<8x32xf32>, vector<8x32xf32> -> vector<16x32xf32>
    %c0_76 = arith.constant 0 : index
    %c0_77 = arith.constant 0 : index
    %229 = vector.load %arg7[%c0_76, %c0_77] : memref<32x32xf32, #tpu.memory_space<vmem>>, vector<32x32xf32>
    %cst_78 = arith.constant dense<0.000000e+00> : vector<16x32xf32>
    %230 = tpu.matmul %228, %229, %cst_78 {dimension_numbers = #tpu.dot_dimension_numbers<[1], [0], [0], [1], [0, 0, 1, 1], [], []>, precision = #tpu.contract_precision<fp32>} : vector<16x32xf32>, vector<32x32xf32>, vector<16x32xf32> -> vector<16x32xf32>
    %c0_79 = arith.constant 0 : index
    %c0_80 = arith.constant 0 : index
    %231 = vector.load %arg8[%c0_79, %c0_80] : memref<1x32xf32, #tpu.memory_space<vmem>>, vector<1x32xf32>
    %232 = vector.broadcast %231 : vector<1x32xf32> to vector<16x32xf32>
    %233 = arith.addf %230, %232 : vector<16x32xf32>
    %234 = arith.addf %1, %233 : vector<16x32xf32>
    %c0_81 = arith.constant 0 : index
    %c0_82 = arith.constant 0 : index
    %235 = vector.load %arg9[%c0_81, %c0_82] : memref<1x32xf32, #tpu.memory_space<vmem>>, vector<1x32xf32>
    %c0_83 = arith.constant 0 : index
    %c0_84 = arith.constant 0 : index
    %236 = vector.load %arg10[%c0_83, %c0_84] : memref<1x32xf32, #tpu.memory_space<vmem>>, vector<1x32xf32>
    %cst_85 = arith.constant dense<0.000000e+00> : vector<16xf32>
    %237 = vector.multi_reduction <add>, %234, %cst_85 [1] : vector<16x32xf32> to vector<16xf32>
    %238 = vector.shape_cast %237 : vector<16xf32> to vector<16x1xf32>
    %cst_86 = arith.constant 3.200000e+01 : f32
    %239 = vector.broadcast %cst_86 : f32 to vector<16x1xf32>
    %240 = arith.divf %238, %239 : vector<16x1xf32>
    %241 = vector.broadcast %240 : vector<16x1xf32> to vector<16x32xf32>
    %242 = arith.subf %234, %241 : vector<16x32xf32>
    %243 = arith.mulf %242, %242 : vector<16x32xf32>
    %cst_87 = arith.constant dense<0.000000e+00> : vector<16xf32>
    %244 = vector.multi_reduction <add>, %243, %cst_87 [1] : vector<16x32xf32> to vector<16xf32>
    %245 = vector.shape_cast %244 : vector<16xf32> to vector<16x1xf32>
    %cst_88 = arith.constant 0.0322580636 : f32
    %246 = vector.broadcast %cst_88 : f32 to vector<16x1xf32>
    %247 = arith.mulf %245, %246 : vector<16x1xf32>
    %248 = math.sqrt %247 : vector<16x1xf32>
    %cst_89 = arith.constant 9.99999997E-7 : f32
    %249 = vector.broadcast %cst_89 : f32 to vector<16x1xf32>
    %250 = arith.addf %248, %249 : vector<16x1xf32>
    %251 = tpu.reciprocal %250 : vector<16x1xf32> -> vector<16x1xf32>
    %252 = vector.broadcast %251 : vector<16x1xf32> to vector<16x32xf32>
    %253 = arith.mulf %242, %252 : vector<16x32xf32>
    %254 = vector.broadcast %235 : vector<1x32xf32> to vector<16x32xf32>
    %255 = arith.mulf %254, %253 : vector<16x32xf32>
    %256 = vector.broadcast %236 : vector<1x32xf32> to vector<16x32xf32>
    %257 = arith.addf %255, %256 : vector<16x32xf32>
    %c0_90 = arith.constant 0 : index
    %c0_91 = arith.constant 0 : index
    %258 = vector.load %arg11[%c0_90, %c0_91] : memref<32x128xf32, #tpu.memory_space<vmem>>, vector<32x128xf32>
    %cst_92 = arith.constant dense<0.000000e+00> : vector<16x128xf32>
    %259 = tpu.matmul %257, %258, %cst_92 {dimension_numbers = #tpu.dot_dimension_numbers<[1], [0], [0], [1], [0, 0, 1, 1], [], []>, precision = #tpu.contract_precision<fp32>} : vector<16x32xf32>, vector<32x128xf32>, vector<16x128xf32> -> vector<16x128xf32>
    %c0_93 = arith.constant 0 : index
    %c0_94 = arith.constant 0 : index
    %260 = vector.load %arg12[%c0_93, %c0_94] : memref<1x128xf32, #tpu.memory_space<vmem>>, vector<1x128xf32>
    %261 = vector.broadcast %260 : vector<1x128xf32> to vector<16x128xf32>
    %262 = arith.addf %259, %261 : vector<16x128xf32>
    %cst_95 = arith.constant 0.000000e+00 : f32
    %263 = vector.broadcast %cst_95 : f32 to vector<16x128xf32>
    %264 = arith.maximumf %262, %263 : vector<16x128xf32>
    %c0_96 = arith.constant 0 : index
    %c0_97 = arith.constant 0 : index
    %265 = vector.load %arg13[%c0_96, %c0_97] : memref<128x32xf32, #tpu.memory_space<vmem>>, vector<128x32xf32>
    %cst_98 = arith.constant dense<0.000000e+00> : vector<16x32xf32>
    %266 = tpu.matmul %264, %265, %cst_98 {dimension_numbers = #tpu.dot_dimension_numbers<[1], [0], [0], [1], [0, 0, 1, 1], [], []>, precision = #tpu.contract_precision<fp32>} : vector<16x128xf32>, vector<128x32xf32>, vector<16x32xf32> -> vector<16x32xf32>
    %c0_99 = arith.constant 0 : index
    %c0_100 = arith.constant 0 : index
    %267 = vector.load %arg14[%c0_99, %c0_100] : memref<1x32xf32, #tpu.memory_space<vmem>>, vector<1x32xf32>
    %268 = vector.broadcast %267 : vector<1x32xf32> to vector<16x32xf32>
    %269 = arith.addf %266, %268 : vector<16x32xf32>
    %270 = arith.addf %234, %269 : vector<16x32xf32>
    %271 = vector.shape_cast %270 : vector<16x32xf32> to vector<2x8x32xf32>
    %c0_101 = arith.constant 0 : index
    %c0_102 = arith.constant 0 : index
    %c0_103 = arith.constant 0 : index
    %272 = vector.load %arg15[%c0_101, %c0_102, %c0_103] : memref<2x8x32xf32, #tpu.memory_space<vmem>>, vector<2x8x32xf32>
    tpu.vector_store %arg15[%c0_101, %c0_102, %c0_103], %271 {strides = array<i32>} : memref<2x8x32xf32, #tpu.memory_space<vmem>>, vector<2x8x32xf32>,
    return
  }
  func.func @transform_0(%arg0: i32) -> (i32, i32, i32) {
    %c0_i32 = arith.constant 0 : i32
    %c0_i32_0 = arith.constant 0 : i32
    %c0_i32_1 = arith.constant 0 : i32
    return %arg0, %c0_i32, %c0_i32_0 : i32, i32, i32
  }
  func.func @transform_1(%arg0: i32) -> (i32, i32, i32) {
    %c0_i32 = arith.constant 0 : i32
    %c0_i32_0 = arith.constant 0 : i32
    %c0_i32_1 = arith.constant 0 : i32
    return %arg0, %c0_i32, %c0_i32_0 : i32, i32, i32
  }
  func.func @transform_2(%arg0: i32) -> (i32, i32) {
    %c0_i32 = arith.constant 0 : i32
    %c0_i32_0 = arith.constant 0 : i32
    %c0_i32_1 = arith.constant 0 : i32
    return %c0_i32, %c0_i32_0 : i32, i32
  }
  func.func @transform_3(%arg0: i32) -> (i32, i32) {
    %c0_i32 = arith.constant 0 : i32
    %c0_i32_0 = arith.constant 0 : i32
    %c0_i32_1 = arith.constant 0 : i32
    return %c0_i32, %c0_i32_0 : i32, i32
  }
  func.func @transform_4(%arg0: i32) -> (i32, i32) {
    %c0_i32 = arith.constant 0 : i32
    %c0_i32_0 = arith.constant 0 : i32
    %c0_i32_1 = arith.constant 0 : i32
    return %c0_i32, %c0_i32_0 : i32, i32
  }
  func.func @transform_5(%arg0: i32) -> (i32, i32) {
    %c0_i32 = arith.constant 0 : i32
    %c0_i32_0 = arith.constant 0 : i32
    %c0_i32_1 = arith.constant 0 : i32
    return %c0_i32, %c0_i32_0 : i32, i32
  }
  func.func @transform_6(%arg0: i32) -> (i32, i32) {
    %c0_i32 = arith.constant 0 : i32
    %c0_i32_0 = arith.constant 0 : i32
    %c0_i32_1 = arith.constant 0 : i32
    return %c0_i32, %c0_i32_0 : i32, i32
  }
  func.func @transform_7(%arg0: i32) -> (i32, i32) {
    %c0_i32 = arith.constant 0 : i32
    %c0_i32_0 = arith.constant 0 : i32
    %c0_i32_1 = arith.constant 0 : i32
    return %c0_i32, %c0_i32_0 : i32, i32
  }
  func.func @transform_8(%arg0: i32) -> (i32, i32) {
    %c0_i32 = arith.constant 0 : i32
    %c0_i32_0 = arith.constant 0 : i32
    %c0_i32_1 = arith.constant 0 : i32
    return %c0_i32, %c0_i32_0 : i32, i32
  }
  func.func @transform_9(%arg0: i32) -> (i32, i32) {
    %c0_i32 = arith.constant 0 : i32
    %c0_i32_0 = arith.constant 0 : i32
    %c0_i32_1 = arith.constant 0 : i32
    return %c0_i32, %c0_i32_0 : i32, i32
  }
  func.func @transform_10(%arg0: i32) -> (i32, i32) {
    %c0_i32 = arith.constant 0 : i32
    %c0_i32_0 = arith.constant 0 : i32
    %c0_i32_1 = arith.constant 0 : i32
    return %c0_i32, %c0_i32_0 : i32, i32
  }
  func.func @transform_11(%arg0: i32) -> (i32, i32) {
    %c0_i32 = arith.constant 0 : i32
    %c0_i32_0 = arith.constant 0 : i32
    %c0_i32_1 = arith.constant 0 : i32
    return %c0_i32, %c0_i32_0 : i32, i32
  }
  func.func @transform_12(%arg0: i32) -> (i32, i32) {
    %c0_i32 = arith.constant 0 : i32
    %c0_i32_0 = arith.constant 0 : i32
    %c0_i32_1 = arith.constant 0 : i32
    return %c0_i32, %c0_i32_0 : i32, i32
  }
  func.func @transform_13(%arg0: i32) -> (i32, i32) {
    %c0_i32 = arith.constant 0 : i32
    %c0_i32_0 = arith.constant 0 : i32
    %c0_i32_1 = arith.constant 0 : i32
    return %c0_i32, %c0_i32_0 : i32, i32
  }
  func.func @transform_14(%arg0: i32) -> (i32, i32, i32) {
    %c0_i32 = arith.constant 0 : i32
    %c0_i32_0 = arith.constant 0 : i32
    %c0_i32_1 = arith.constant 0 : i32
    return %arg0, %c0_i32, %c0_i32_0 : i32, i32, i32
  }
}

</mosaic_0001>

<bundles_post_ra>
// kernel: tpu_custom_call.1
= control target key start
LH: loop header
LB: loop body
LE: loop exit
PB: predicated region body
PF: predicated region fallthrough
CT: control target
= control target key end

     0   :  { %vm52_vm0 = vcmask 261120   ;;  %s4987_s0 = inlined_call_operand.vmem [shape: f32[2,8,32], index: 0, kind: input, shape index: {}]   ;;  %s4988_s1 = inlined_call_operand.vmem [shape: f32[2,1,8], index: 1, kind: input, shape index: {}]   ;;  %s4989_s2 = inlined_call_operand.vmem [shape: f32[1,32], index: 2, kind: input, shape index: {}]   ;;  %s4990_s3 = inlined_call_operand.vmem [shape: f32[1,32], index: 3, kind: input, shape index: {}]   ;;  %s4991_s4 = inlined_call_operand.vmem [shape: f32[32,96], index: 4, kind: input, shape index: {}]   ;;  %s4992_s5 = inlined_call_operand.vmem [shape: f32[1,96], index: 5, kind: input, shape index: {}]   ;;  %s4993_s6 = inlined_call_operand.vmem [shape: f32[32,32], index: 6, kind: input, shape index: {}]   ;;  %s4994_s7 = inlined_call_operand.vmem [shape: f32[1,32], index: 7, kind: input, shape index: {}]   ;;  %s4995_s8 = inlined_call_operand.vmem [shape: f32[1,32], index: 8, kind: input, shape index: {}]   ;;  %s4996_s9 = inlined_call_operand.vmem [shape: f32[1,32], index: 9, kind: input, shape index: {}]   ;;  %s4997_s10 = inlined_call_operand.vmem [shape: f32[32,128], index: 10, kind: input, shape index: {}]   ;;  %s4998_s11 = inlined_call_operand.vmem [shape: f32[1,128], index: 11, kind: input, shape index: {}]   ;;  %s4999_s12 = inlined_call_operand.vmem [shape: f32[128,32], index: 12, kind: input, shape index: {}]   ;;  %s5000_s13 = inlined_call_operand.vmem [shape: f32[1,32], index: 13, kind: input, shape index: {}]   ;;  %s5001_s14 = inlined_call_operand.hbm [shape: f32[2,8,32], index: 14, kind: output, shape index: {}]  }
   0x1   :  { %v48_v0 = vld [vmem:[%s4987_s0] sm:$0xff] }
   0x2   :  { %v53_v1 = vsel %vm52_vm0, %v48_v0, 0.0 }
   0x3   :  { %54 = vadd.xlane.f32.xlu0 %v53_v1 }
   0x4   :  { %19 = vsyncpa [#allocation3], 0  ;;  %v49_v2 = vld [vmem:[%s4987_s0 + $0x8] sm:$0xff]  ;;  %v4145_v4 = vmov 32.0   ;;  %v149_v23 = vld [vmem:[%s4991_s4 + $0x18] sm:$0xff]  ;;  %s4146_s28 = smov 64  }
   0x5   :  { %v56_v3 = vsel %vm52_vm0, %v49_v2, 0.0  ;;  %4067 = vrcp.f32 %v4145_v4  ;;  %v148_v24 = vld [vmem:[%s4991_s4 + $0x10] sm:$0xff]  ;;  %v147_v25 = vld [vmem:[%s4991_s4 + $0x8] sm:$0xff]  ;;  %v146_v26 = vld [vmem:[%s4991_s4] sm:$0xff]  ;;  %v172_v27 = vand.u32 4294901760, %v149_v23  ;;  %s4148_s29 = smov 120  }
   0x6   :  { %v174_v28 = vand.u32 4294901760, %v148_v24  ;;  %v176_v29 = vand.u32 4294901760, %v147_v25  ;;  %v4275_v30 = vand.u32 4294901760, %v146_v26  ;;  %vm380_vm14 = vcmask 64512   ;;  %s4150_s16 = smov 56   ;;  %s4151_s17 = smov 80  }
   0x7   :  { %v210_v31 = vsub.f32 %v149_v23, %v172_v27  ;;  %360 = vmatpush.msra.mxu1 %v172_v27  ;;  %173 = vmatpush.msra.mxu2 %v172_v27  ;;  %s4152_s18 = smov 112   ;;  %s4153_s19 = smov 88  }
   0x8   :  { %v216_v32 = vsub.f32 %v148_v24, %v174_v28  ;;  %v222_v33 = vsub.f32 %v147_v25, %v176_v29  ;;  %v228_v34 = vsub.f32 %v146_v26, %v4275_v30  ;;  %v4060_v24 = vld [vmem:[%s4990_s3] ss:$0 sm:$0xff]  ;;  %s4154_s20 = smov 48   ;;  %s4155_s21 = smov 72  }
   0x9   :  { %v211_v36 = vand.u32 4294901760, %v210_v31  ;;  %362 = vmatpush.msra.mxu1 %v174_v28  ;;  %175 = vmatpush.msra.mxu2 %v174_v28  ;;  %s4156_s22 = smov 104   ;;  %s4157_s23 = smov 40  }
   0xa   :  { %v217_v37 = vand.u32 4294901760, %v216_v32  ;;  %v223_v38 = vand.u32 4294901760, %v222_v33  ;;  %v229_v41 = vand.u32 4294901760, %v228_v34  ;;  %s4159_s25 = smov 24   ;;  %s4160_s26 = smov 16  }
   0xb   :  { %57 = vadd.xlane.f32.xlu0 %v56_v3  ;;  %v4068_v5 = vpop.eup %4067  ;;  %v212_v43 = vsub.f32 %v210_v31, %v211_v36  ;;  %325 = vmatpush.msra.mxu0 %v211_v36 }
   0xc   :  { %v60_v6 = vmul.f32 32.0, %v4068_v5  ;;  %vm64_vm1 = vweird.f32 %v4068_v5  ;;  %v218_v44 = vsub.f32 %v216_v32, %v217_v37  ;;  %v224_v45 = vsub.f32 %v222_v33, %v223_v38  ;;  %364 = vmatpush.msra.mxu1 %v176_v29  ;;  %177 = vmatpush.msra.mxu2 %v176_v29 }
   0xd   :  { %v213_v47 = vand.u32 4294901760, %v212_v43  ;;  %329 = vmatpush.msra.mxu0 %v217_v37  ;;  %v230_v49 = vsub.f32 %v228_v34, %v229_v41 }
   0xe   :  { %v61_v7 = vsub.f32 1.0, %v60_v6  ;;  %v219_v48 = vand.u32 4294901760, %v218_v44  ;;  %366 = vmatpush.msra.mxu1 %v4275_v30  ;;  %179 = vmatpush.msra.mxu2 %v4275_v30  ;;  %v225_v51 = vand.u32 4294901760, %v224_v45 }
   0xf   :  { %214 = vmatpush.msra.mxu3 %v213_v47  ;;  %333 = vmatpush.msra.mxu0 %v223_v38  ;;  %v231_v53 = vand.u32 4294901760, %v230_v49 }
  0x10   :  { %v62_v8 = vmul.f32 %v4068_v5, %v61_v7  ;;  %256 = vmatpush.msrb.mxu2 %v210_v31 }
  0x11   :  { %220 = vmatpush.msra.mxu3 %v219_v48  ;;  %337 = vmatpush.msra.mxu0 %v229_v41 }
  0x12   :  { %v63_v9 = vadd.f32 %v4068_v5, %v62_v8  ;;  %259 = vmatpush.msrb.mxu2 %v216_v32 }
  0x13   :  { %226 = vmatpush.msra.mxu3 %v225_v51 }
  0x14   :  { %v4246_v10 = vsel %vm64_vm1, %v4068_v5, %v63_v9  ;;  %262 = vmatpush.msrb.mxu2 %v222_v33 }
  0x15   :  { %232 = vmatpush.msra.mxu3 %v231_v53 }
  0x16   :  { %265 = vmatpush.msrb.mxu2 %v228_v34 }
  0x17   :  { %290 = vmatpush.msrb.mxu3 %v172_v27 }
  0x19   :  { %292 = vmatpush.msrb.mxu3 %v174_v28 }
  0x1b   :  { %294 = vmatpush.msrb.mxu3 %v176_v29 }
  0x1d   :  { %296 = vmatpush.msrb.mxu3 %v4275_v30 }
  0x76   :  { %v55_v11 = vpop.xlane.xlu0 %54 }
  0x77   :  { %v66_v12 = vmul.f32 %v4246_v10, %v55_v11 }
  0x79   :  { %v4249_v13 = vsub.f32 %v48_v0, %v66_v12 }
  0x7b   :  { %v70_v14 = vmul.f32 %v4249_v13, %v4249_v13 }
  0x7d   :  { %v72_v15 = vsel %vm52_vm0, %v70_v14, 0.0 }
  0x7e   :  { %73 = vadd.xlane.f32.xlu1 %v72_v15  ;;  %v58_v16 = vpop.xlane.xlu0 %57 }
  0x7f   :  { %v67_v17 = vmul.f32 %v4246_v10, %v58_v16 }
  0x81   :  { %v4255_v18 = vsub.f32 %v49_v2, %v67_v17 }
  0x83   :  { %v71_v19 = vmul.f32 %v4255_v18, %v4255_v18 }
  0x85   :  { %v75_v20 = vsel %vm52_vm0, %v71_v19, 0.0 }
  0x86   :  { %76 = vadd.xlane.f32.xlu1 %v75_v20  ;;  %v4059_v20 = vld [vmem:[%s4989_s2] ss:$0 sm:$0xff] }
  0xf1   :  { %v74_v21 = vpop.xlane.xlu1 %73 }
  0xf2   :  { %v4260_v22 = vmul.f32 0.032258064, %v74_v21 }
  0xf4   :  { %4069 = vrsqrt.f32 %v4260_v22  ;;  %vm87_vm2 = vcmp.eq.f32.partialorder %v4260_v22, inf  ;;  %v90_v59 = vand.u32 2147483648, %v4260_v22  ;;  %vm89_vm3 = vcmp.eq.f32.partialorder %v4260_v22, 0.0 }
  0xf9   :  { %v77_v35 = vpop.xlane.xlu1 %76 }
  0xfa   :  { %v4070_v39 = vpop.eup %4069  ;;  %v79_v40 = vmul.f32 0.032258064, %v77_v35 }
  0xfb   :  { %v81_v42 = vmul.f32 %v4070_v39, %v4260_v22 }
  0xfc   :  { %4071 = vrsqrt.f32 %v79_v40  ;;  %vm99_vm4 = vcmp.eq.f32.partialorder %v79_v40, inf  ;;  %v102_v3 = vand.u32 2147483648, %v79_v40  ;;  %vm101_vm5 = vcmp.eq.f32.partialorder %v79_v40, 0.0 }
  0xfd   :  { %v82_v46 = vmul.f32 %v4070_v39, %v81_v42 }
  0xff   :  { %v83_v50 = vmul.f32 0.5, %v82_v46 }
 0x101   :  { %v84_v52 = vsub.f32 1.5, %v83_v50  ;;  %v4300_v50 = vld [vmem:[%s4992_s5] ss:$0 sm:$0xff]  ;;  %s4147_s5 = smov 96  }
 0x102   :  { %v4072_v54 = vpop.eup %4071 }
 0x103   :  { %v85_v55 = vmul.f32 %v4070_v39, %v84_v52  ;;  %v93_v56 = vmul.f32 %v4072_v54, %v79_v40 }
 0x105   :  { %v86_v57 = vmul.f32 %v85_v55, %v4260_v22  ;;  %v94_v58 = vmul.f32 %v4072_v54, %v93_v56 }
 0x107   :  { %v88_v60 = vsel %vm87_vm2, %v4260_v22, %v86_v57  ;;  %v95_v61 = vmul.f32 0.5, %v94_v58 }
 0x108   :  { %v91_v62 = vsel %vm89_vm3, %v90_v59, %v88_v60 }
 0x109   :  { %v104_v63 = vadd.f32 1e-06, %v91_v62  ;;  %v96_v0 = vsub.f32 1.5, %v95_v61 }
 0x10b   :  { %4073 = vrcp.f32 %v104_v63  ;;  %v97_v1 = vmul.f32 %v4072_v54, %v96_v0  ;;  %v117_v11 = vand.u32 2147483648, %v104_v63  ;;  %v115_v14 = vand.u32 2147483647, %v104_v63 }
 0x10c   :  { %vm111_vm7 = vweird.f32 %v104_v63 }
 0x10d   :  { %v98_v2 = vmul.f32 %v97_v1, %v79_v40  ;;  %v118_v17 = vor.u32 1.1754944e-38, %v117_v11  ;;  %vm116_vm9 = vcmp.eq.f32.partialorder %v115_v14, 8.507059e+37 }
 0x10f   :  { %v100_v4 = vsel %vm99_vm4, %v79_v40, %v98_v2 }
 0x110   :  { %v103_v5 = vsel %vm101_vm5, %v102_v3, %v100_v4 }
 0x111   :  { %v4074_v6 = vpop.eup %4073  ;;  %v105_v7 = vadd.f32 1e-06, %v103_v5 }
 0x112   :  { %v107_v8 = vmul.f32 %v4074_v6, %v104_v63  ;;  %vm112_vm6 = vweird.f32 %v4074_v6 }
 0x113   :  { %4075 = vrcp.f32 %v105_v7  ;;  %vm113_vm8 = vmor %vm111_vm7, %vm112_vm6  ;;  %v131_v26 = vand.u32 2147483648, %v105_v7  ;;  %v129_v29 = vand.u32 2147483647, %v105_v7  ;;  %vm125_vm11 = vweird.f32 %v105_v7 }
 0x114   :  { %v108_v9 = vsub.f32 1.0, %v107_v8 }
 0x115   :  { %v132_v32 = vor.u32 1.1754944e-38, %v131_v26  ;;  %vm130_vm13 = vcmp.eq.f32.partialorder %v129_v29, 8.507059e+37 }
 0x116   :  { %v109_v12 = vmul.f32 %v4074_v6, %v108_v9 }
 0x118   :  { %v110_v15 = vadd.f32 %v4074_v6, %v109_v12 }
 0x119   :  { %v4076_v16 = vpop.eup %4075 }
 0x11a   :  { %v114_v19 = vsel %vm113_vm8, %v4074_v6, %v110_v15  ;;  %v121_v21 = vmul.f32 %v4076_v16, %v105_v7  ;;  %vm126_vm10 = vweird.f32 %v4076_v16 }
 0x11b   :  { %v119_v22 = vsel %vm116_vm9, %v118_v17, %v114_v19  ;;  %vm127_vm12 = vmor %vm125_vm11, %vm126_vm10 }
 0x11c   :  { %v134_v23 = vmul.f32 %v119_v22, %v4249_v13  ;;  %v122_v25 = vsub.f32 1.0, %v121_v21 }
 0x11e   :  { %v139_v27 = vmul.f32 %v4059_v20, %v134_v23  ;;  %v123_v28 = vmul.f32 %v4076_v16, %v122_v25  ;;  %v376_v25 = vld [vmem:[%s4988_s1] sm:$0x1] }
 0x11f   :  { %vm532_vm15 = vcmp.gt.f32.partialorder %v376_v25, 0.0 }
 0x120   :  { %v144_v30 = vadd.f32 %v4060_v24, %v139_v27  ;;  %v124_v31 = vadd.f32 %v4076_v16, %v123_v28 }
 0x122   :  { %v155_v33 = vsel %vm52_vm0, %v144_v30, 0  ;;  %v128_v34 = vsel %vm127_vm12, %v4076_v16, %v124_v31  ;;  %v4149_v31 = vmov 0  }
 0x123   :  { %v180_v13 = vand.u32 4294901760, %v155_v33  ;;  %v133_v35 = vsel %vm130_vm13, %v132_v32, %v128_v34  ;;  %v533_v32 = vsel %vm532_vm15, 1, %v4149_v31 }
 0x124   :  { %v135_v36 = vmul.f32 %v133_v35, %v4255_v18  ;;  %v534_v35 = vperm.slane %v533_v32, 0 }
 0x125   :  { %234 = vmatmul.f32.vlgmr.msra.gmra.mxu3 %v180_v13  ;;  %339 = vmatmul.f32.vlgmr.msra.gmra.mxu0 %v180_v13  ;;  %v181_v37 = vsub.f32 %v155_v33, %v180_v13 }
 0x126   :  { %368 = vmatmul.f32.vlgmr.msra.gmra.mxu1 %v180_v13  ;;  %v140_v38 = vmul.f32 %v4059_v20, %v135_v36  ;;  %vm4330_vm1 = vcmp.eq.s32.totalorder %v534_v35, 1 }
 0x127   :  { %v182_v39 = vand.u32 4294901760, %v181_v37 }
 0x128   :  { %v145_v40 = vadd.f32 %v4060_v24, %v140_v38 }
 0x129   :  { %v183_v41 = vsub.f32 %v181_v37, %v182_v39 }
 0x12a   :  { %v158_v42 = vsel %vm52_vm0, %v145_v40, 0 }
 0x12b   :  { %v184_v43 = vand.u32 4294901760, %v183_v41  ;;  %v188_v44 = vand.u32 4294901760, %v158_v42 }
 0x12d   :  { %185 = vmatmul.f32.vlgmr.msra.gmra.mxu2 %v184_v43  ;;  %238 = vmatmul.f32.gmra.mxu3 %v188_v44  ;;  %v189_v45 = vsub.f32 %v158_v42, %v188_v44 }
 0x12e   :  { %343 = vmatmul.f32.gmra.mxu0 %v188_v44  ;;  %372 = vmatmul.f32.gmra.mxu1 %v188_v44 }
 0x12f   :  { %v190_v46 = vand.u32 4294901760, %v189_v45 }
 0x131   :  { %v191_v47 = vsub.f32 %v189_v45, %v190_v46 }
 0x133   :  { %v192_v18 = vand.u32 4294901760, %v191_v47 }
 0x135   :  { %193 = vmatmul.f32.gmra.mxu2 %v192_v18  ;;  %300 = vmatmul.f32.vlgmr.msrb.gmra.mxu3 %v182_v39 }
 0x13d   :  { %268 = vmatmul.f32.vlgmr.msrb.gmra.mxu2 %v181_v37  ;;  %306 = vmatmul.f32.gmra.mxu3 %v190_v46 }
 0x145   :  { %273 = vmatmul.f32.gmra.mxu2 %v189_v45 }
 0x1a2   :  { %v340_v59 = vpop.f32.mrf.mxu0 }
 0x1a3   :  { %v369_v61 = vpop.f32.mrf.mxu1 }
 0x1a8   :  { %v235_v48 = vpop.f32.mrf.mxu3 }
 0x1ab   :  { %v4325_v26 = vpop.f32.mrf.mxu0  ;;  %v4327_v28 = vpop.f32.mrf.mxu1 }
 0x1b0   :  { %v186_v49 = vpop.f32.mrf.mxu2  ;;  %v4302_v51 = vpop.f32.mrf.mxu3 }
 0x1b1   :  { %v187_v53 = vadd.f32 %v4300_v50, %v186_v49 }
 0x1b3   :  { %v236_v54 = vadd.f32 %v235_v48, %v187_v53 }
 0x1b8   :  { %v4304_v52 = vpop.f32.mrf.mxu2  ;;  %v301_v57 = vpop.f32.mrf.mxu3 }
 0x1c0   :  { %v269_v55 = vpop.f32.mrf.mxu2  ;;  %v4320_v22 = vpop.f32.mrf.mxu3 }
 0x1c1   :  { %v270_v56 = vadd.f32 %v269_v55, %v236_v54 }
 0x1c3   :  { %v302_v58 = vadd.f32 %v301_v57, %v270_v56 }
 0x1c5   :  { %v341_v60 = vadd.f32 %v340_v59, %v302_v58 }
 0x1c7   :  { %v4307_v62 = vadd.f32 %v369_v61, %v341_v60 }
 0x1c8   :  { %v4318_v21 = vpop.f32.mrf.mxu2 }
 0x1c9   :  { %561 = vrot.lane.b32.xlu1 %v4307_v62, %s4146_s28  ;;  %378 = vrot.lane.b32.xlu2 %v4307_v62, %s4147_s5  ;;  %v381_v63 = vsel %vm380_vm14, %v4307_v62, 0 }
 0x1ca   :  { %v402_v0 = vand.u32 4294901760, %v381_v63 }
 0x1cc   :  { %v403_v1 = vsub.f32 %v381_v63, %v402_v0 }
 0x1ce   :  { %v404_v2 = vand.u32 4294901760, %v403_v1 }
 0x1d0   :  { %v405_v5 = vsub.f32 %v403_v1, %v404_v2 }
 0x1d1   :  { %713 = vrot.lane.b32.xlu1 %v4307_v62, %s4148_s29 }
 0x1d2   :  { %v406_v8 = vand.u32 4294901760, %v405_v5 }
 0x223   :  { %v379_v3 = vpop.permute.xlu2 %378 }
 0x224   :  { %v383_v4 = vsel %vm380_vm14, %v379_v3, 0 }
 0x225   :  { %v400_v6 = vand.u32 4294901760, %v383_v4 }
 0x227   :  { %v427_v7 = vsub.f32 %v383_v4, %v400_v6  ;;  %401 = vmatpush.xpose.msra.mxu2 %v400_v6  ;;  %525 = vmatpush.xpose.msrb.mxu1 %v400_v6 }
 0x229   :  { %v428_v9 = vand.u32 4294901760, %v427_v7 }
 0x22a   :  { %407 = vmatmul.f32.vlgmr.msra.gmra.mxu2 %v406_v8  ;;  %527 = vmatmul.f32.vlgmr.msrb.gmra.mxu1 %v402_v0 }
 0x22b   :  { %454 = vmatpush.xpose.msrb.mxu2 %v427_v7  ;;  %v429_v11 = vsub.f32 %v427_v7, %v428_v9  ;;  %503 = vmatpush.xpose.msrb.mxu0 %v428_v9 }
 0x22d   :  { %v430_v12 = vand.u32 4294901760, %v429_v11 }
 0x22e   :  { %505 = vmatmul.f32.vlgmr.msrb.gmra.mxu0 %v402_v0 }
 0x22f   :  { %431 = vmatpush.xpose.msra.mxu3 %v430_v12 }
 0x232   :  { %433 = vmatmul.f32.vlgmr.msra.gmra.mxu3 %v402_v0  ;;  %457 = vmatmul.f32.vlgmr.msrb.gmra.mxu2 %v403_v1 }
 0x233   :  { %477 = vmatpush.xpose.msrb.mxu3 %v400_v6 }
 0x23a   :  { %481 = vmatmul.f32.vlgmr.msrb.gmra.mxu3 %v404_v2 }
 0x23b   :  { %v562_v14 = vpop.permute.xlu1 %561 }
 0x23c   :  { %v582_v15 = vand.u32 4294901760, %v562_v14 }
 0x23e   :  { %v609_v16 = vsub.f32 %v562_v14, %v582_v15  ;;  %583 = vmatpush.msra.mxu2 %v582_v15  ;;  %659 = vmatpush.msra.mxu1 %v582_v15 }
 0x240   :  { %v610_v17 = vand.u32 4294901760, %v609_v16  ;;  %636 = vmatpush.msra.mxu0 %v609_v16 }
 0x242   :  { %v611_v19 = vsub.f32 %v609_v16, %v610_v17  ;;  %685 = vmatpush.msrb.mxu2 %v610_v17 }
 0x243   :  { %v714_v53 = vpop.permute.xlu1 %713 }
 0x244   :  { %v612_v20 = vand.u32 4294901760, %v611_v19  ;;  %v717_v59 = vsel %vm380_vm14, %v714_v53, 0 }
 0x245   :  { %v738_v0 = vand.u32 4294901760, %v717_v59 }
 0x246   :  { %613 = vmatpush.msra.mxu3 %v612_v20 }
 0x247   :  { %v739_v6 = vsub.f32 %v717_v59, %v738_v0 }
 0x248   :  { %707 = vmatpush.msrb.mxu3 %v582_v15 }
 0x249   :  { %v740_v19 = vand.u32 4294901760, %v739_v6 }
 0x2a7   :  { %v528_v37 = vpop.f32.mrf.mxu1 }
 0x2ab   :  { %v506_v13 = vpop.f32.mrf.mxu0 }
 0x2ad   :  { %v408_v23 = vpop.f32.mrf.mxu2 }
 0x2b5   :  { %v434_v24 = vpop.f32.mrf.mxu3  ;;  %v458_v29 = vpop.f32.mrf.mxu2 }
 0x2b6   :  { %v435_v27 = vadd.f32 %v434_v24, %v408_v23 }
 0x2b8   :  { %v459_v30 = vadd.f32 %v458_v29, %v435_v27 }
 0x2bd   :  { %v482_v33 = vpop.f32.mrf.mxu3 }
 0x2be   :  { %v483_v34 = vadd.f32 %v482_v33, %v459_v30  ;;  %v741_v30 = vsub.f32 %v739_v6, %v740_v19 }
 0x2c0   :  { %v507_v36 = vadd.f32 %v506_v13, %v483_v34  ;;  %v742_v35 = vand.u32 4294901760, %v741_v30 }
 0x2c2   :  { %v529_v38 = vadd.f32 %v528_v37, %v507_v36 }
 0x2c4   :  { %v531_v40 = vmul.f32 0.35355338, %v529_v38 }
 0x2c6   :  { %v536_v41 = vsel %vm4330_vm1, %v531_v40, -1e+09 }
 0x2c7   :  { %v537_v42 = vsel %vm380_vm14, %v536_v41, -inf }
 0x2c8   :  { %538 = vmax.xlane.f32.xlu2 %v537_v42 }
 0x2e0   :  { %893 = vrot.lane.b32.xlu2 %v4307_v62, %s4150_s16 }
 0x2e8   :  { %1047 = vrot.lane.b32.xlu2 %v4307_v62, %s4151_s17 }
 0x2f0   :  { %1045 = vrot.lane.b32.xlu2 %v4307_v62, %s4152_s18 }
 0x33b   :  { %v539_v43 = vpop.xlane.xlu2 %538 }
 0x33c   :  { %v540_v44 = vsub.f32 %v536_v41, %v539_v43 }
 0x33e   :  { %v541_v45 = vmul.f32 1.442695, %v540_v44 }
 0x340   :  { %4077 = vpow2.f32 %v541_v45 }
 0x343   :  { %v894_v54 = vpop.permute.xlu2 %893 }
 0x344   :  { %v914_v61 = vand.u32 4294901760, %v894_v54 }
 0x346   :  { %v4078_v46 = vpop.eup %4077  ;;  %v941_v4 = vsub.f32 %v894_v54, %v914_v61 }
 0x347   :  { %v543_v47 = vsel %vm380_vm14, %v4078_v46, 0.0 }
 0x348   :  { %544 = vadd.xlane.f32.xlu0 %v543_v47  ;;  %v942_v14 = vand.u32 4294901760, %v941_v4 }
 0x34a   :  { %v943_v25 = vsub.f32 %v941_v4, %v942_v14 }
 0x34b   :  { %v1048_v7 = vpop.permute.xlu2 %1047 }
 0x34c   :  { %v1051_v15 = vsel %vm380_vm14, %v1048_v7, 0  ;;  %v944_v13 = vand.u32 4294901760, %v943_v25 }
 0x34d   :  { %v4350_v24 = vand.u32 4294901760, %v1051_v15 }
 0x34f   :  { %v4353_v34 = vsub.f32 %v1051_v15, %v4350_v24 }
 0x351   :  { %v1096_v36 = vand.u32 4294901760, %v4353_v34 }
 0x353   :  { %v1097_v37 = vsub.f32 %v4353_v34, %v1096_v36  ;;  %v1046_v7 = vpop.permute.xlu2 %1045 }
 0x355   :  { %v1098_v38 = vand.u32 4294901760, %v1097_v37 }
 0x35c   :  { %715 = vrot.lane.b32.xlu0 %v4307_v62, %s4153_s19 }
 0x3bb   :  { %v545_v18 = vpop.xlane.xlu0 %544 }
 0x3bc   :  { %4079 = vrcp.f32 %v545_v18  ;;  %v557_v56 = vand.u32 2147483648, %v545_v18  ;;  %v555_v58 = vand.u32 2147483647, %v545_v18  ;;  %vm551_vm3 = vweird.f32 %v545_v18 }
 0x3be   :  { %v558_v63 = vor.u32 1.1754944e-38, %v557_v56  ;;  %vm556_vm5 = vcmp.eq.f32.partialorder %v555_v58, 8.507059e+37 }
 0x3c2   :  { %v4080_v48 = vpop.eup %4079 }
 0x3c3   :  { %v547_v49 = vmul.f32 %v4080_v48, %v545_v18  ;;  %vm552_vm2 = vweird.f32 %v4080_v48 }
 0x3c4   :  { %vm553_vm4 = vmor %vm551_vm3, %vm552_vm2 }
 0x3c5   :  { %v548_v55 = vsub.f32 1.0, %v547_v49 }
 0x3c7   :  { %v549_v57 = vmul.f32 %v4080_v48, %v548_v55 }
 0x3c9   :  { %v550_v60 = vadd.f32 %v4080_v48, %v549_v57 }
 0x3cb   :  { %v554_v1 = vsel %vm553_vm4, %v4080_v48, %v550_v60 }
 0x3cc   :  { %v559_v2 = vsel %vm556_vm5, %v558_v63, %v554_v1 }
 0x3cd   :  { %v560_v3 = vmul.f32 %v4078_v46, %v559_v2 }
 0x3ce   :  { %v716_v5 = vpop.permute.xlu0 %715 }
 0x3cf   :  { %v719_v8 = vsel %vm380_vm14, %v716_v5, 0  ;;  %v565_v9 = vsel %vm380_vm14, %v560_v3, 0 }
 0x3d0   :  { %v736_v11 = vand.u32 4294901760, %v719_v8  ;;  %v584_v12 = vand.u32 4294901760, %v565_v9 }
 0x3d2   :  { %v763_v16 = vsub.f32 %v719_v8, %v736_v11  ;;  %615 = vmatmul.f32.vlgmr.msra.gmra.mxu3 %v584_v12  ;;  %737 = vmatpush.xpose.msrb.mxu0 %v736_v11  ;;  %v585_v17 = vsub.f32 %v565_v9, %v584_v12 }
 0x3d3   :  { %813 = vmatpush.xpose.msra.mxu3 %v736_v11 }
 0x3d4   :  { %v764_v20 = vand.u32 4294901760, %v763_v16  ;;  %639 = vmatmul.f32.vlgmr.msra.gmra.mxu0 %v585_v17  ;;  %v586_v23 = vand.u32 4294901760, %v585_v17 }
 0x3d6   :  { %v765_v27 = vsub.f32 %v763_v16, %v764_v20  ;;  %663 = vmatmul.f32.vlgmr.msra.gmra.mxu1 %v586_v23  ;;  %839 = vmatpush.xpose.msra.mxu0 %v764_v20  ;;  %v587_v29 = vsub.f32 %v585_v17, %v586_v23 }
 0x3d8   :  { %v766_v32 = vand.u32 4294901760, %v765_v27  ;;  %v588_v33 = vand.u32 4294901760, %v587_v29 }
 0x3da   :  { %589 = vmatmul.f32.vlgmr.msra.gmra.mxu2 %v588_v33  ;;  %709 = vmatmul.f32.vlgmr.msrb.gmra.mxu3 %v584_v12 }
 0x3db   :  { %767 = vmatpush.xpose.msrb.mxu1 %v766_v32  ;;  %790 = vmatpush.xpose.msra.mxu2 %v763_v16 }
 0x3dc   :  { %945 = vmatpush.msrb.mxu3 %v944_v13  ;;  %743 = vmatmul.f32.vlgmr.msrb.gmra.mxu0 %v742_v35 }
 0x3dd   :  { %968 = vmatpush.msrb.mxu0 %v941_v4 }
 0x3de   :  { %769 = vmatmul.f32.vlgmr.msrb.gmra.mxu1 %v738_v0 }
 0x3df   :  { %861 = vmatpush.xpose.msra.mxu1 %v736_v11  ;;  %v1049_v11 = vsel %vm380_vm14, %v1046_v7, 0 }
 0x3e0   :  { %v1070_v16 = vand.u32 4294901760, %v1049_v11 }
 0x3e2   :  { %687 = vmatmul.f32.vlgmr.msrb.gmra.mxu2 %v584_v12  ;;  %817 = vmatmul.f32.vlgmr.msra.gmra.mxu3 %v740_v19  ;;  %v1071_v25 = vsub.f32 %v1049_v11, %v1070_v16 }
 0x3e3   :  { %991 = vmatpush.msrb.mxu1 %v914_v61  ;;  %915 = vmatpush.msrb.mxu2 %v914_v61 }
 0x3e4   :  { %1039 = vmatpush.msra.mxu3 %v914_v61  ;;  %841 = vmatmul.f32.vlgmr.msra.gmra.mxu0 %v738_v0  ;;  %v1072_v30 = vand.u32 4294901760, %v1071_v25 }
 0x3e5   :  { %1069 = vmatpush.xpose.msra.mxu0 %v4350_v24 }
 0x3e6   :  { %863 = vmatmul.f32.vlgmr.msra.gmra.mxu1 %v738_v0  ;;  %v1073_v37 = vsub.f32 %v1071_v25, %v1072_v30 }
 0x3e7   :  { %1099 = vmatpush.xpose.msra.mxu1 %v1098_v38 }
 0x3ea   :  { %793 = vmatmul.f32.vlgmr.msra.gmra.mxu2 %v739_v6 }
 0x3eb   :  { %1017 = vmatpush.msra.mxu2 %v942_v14 }
 0x451   :  { %v4362_v41 = vpop.f32.mrf.mxu0 }
 0x453   :  { %v4366_v43 = vpop.f32.mrf.mxu1 }
 0x455   :  { %v4360_v40 = vpop.f32.mrf.mxu3 }
 0x459   :  { %v744_v46 = vpop.f32.mrf.mxu0 }
 0x45b   :  { %v770_v47 = vpop.f32.mrf.mxu1 }
 0x45c   :  { %v771_v18 = vadd.f32 %v770_v47, %v744_v46 }
 0x45d   :  { %v4364_v42 = vpop.f32.mrf.mxu2  ;;  %v4368_v44 = vpop.f32.mrf.mxu3 }
 0x461   :  { %v842_v55 = vpop.f32.mrf.mxu0 }
 0x463   :  { %v864_v57 = vpop.f32.mrf.mxu1 }
 0x465   :  { %v4370_v45 = vpop.f32.mrf.mxu2  ;;  %v818_v53 = vpop.f32.mrf.mxu3 }
 0x46d   :  { %v794_v48 = vpop.f32.mrf.mxu2 }
 0x46e   :  { %v795_v49 = vadd.f32 %v794_v48, %v771_v18  ;;  %v1074_v48 = vand.u32 4294901760, %v1073_v37 }
 0x470   :  { %v819_v54 = vadd.f32 %v818_v53, %v795_v49 }
 0x472   :  { %v843_v56 = vadd.f32 %v842_v55, %v819_v54 }
 0x474   :  { %v865_v58 = vadd.f32 %v864_v57, %v843_v56 }
 0x476   :  { %v867_v59 = vmul.f32 0.35355338, %v865_v58 }
 0x478   :  { %v868_v60 = vsel %vm4330_vm1, %v867_v59, -1e+09 }
 0x479   :  { %v869_v61 = vsel %vm380_vm14, %v868_v60, -inf }
 0x47a   :  { %870 = vmax.xlane.f32.xlu0 %v869_v61 }
 0x4ed   :  { %v871_v63 = vpop.xlane.xlu0 %870 }
 0x4ee   :  { %v872_v0 = vsub.f32 %v868_v60, %v871_v63 }
 0x4f0   :  { %v873_v1 = vmul.f32 1.442695, %v872_v0 }
 0x4f2   :  { %4081 = vpow2.f32 %v873_v1 }
 0x4f8   :  { %v4082_v2 = vpop.eup %4081 }
 0x4f9   :  { %v875_v3 = vsel %vm380_vm14, %v4082_v2, 0.0 }
 0x4fa   :  { %876 = vadd.xlane.f32.xlu1 %v875_v3 }
 0x513   :  { %1225 = vrot.lane.b32.xlu1 %v4307_v62, %s4154_s20 }
 0x56d   :  { %v877_v4 = vpop.xlane.xlu1 %876 }
 0x56e   :  { %4083 = vrcp.f32 %v877_v4  ;;  %v889_v9 = vand.u32 2147483648, %v877_v4  ;;  %v887_v14 = vand.u32 2147483647, %v877_v4  ;;  %vm883_vm7 = vweird.f32 %v877_v4 }
 0x570   :  { %v890_v17 = vor.u32 1.1754944e-38, %v889_v9  ;;  %vm888_vm9 = vcmp.eq.f32.partialorder %v887_v14, 8.507059e+37 }
 0x574   :  { %v4084_v5 = vpop.eup %4083 }
 0x575   :  { %v879_v6 = vmul.f32 %v4084_v5, %v877_v4  ;;  %vm884_vm6 = vweird.f32 %v4084_v5 }
 0x576   :  { %vm885_vm8 = vmor %vm883_vm7, %vm884_vm6 }
 0x577   :  { %v880_v8 = vsub.f32 1.0, %v879_v6 }
 0x579   :  { %v881_v12 = vmul.f32 %v4084_v5, %v880_v8 }
 0x57b   :  { %v882_v15 = vadd.f32 %v4084_v5, %v881_v12 }
 0x57d   :  { %v886_v19 = vsel %vm885_vm8, %v4084_v5, %v882_v15 }
 0x57e   :  { %v891_v20 = vsel %vm888_vm9, %v890_v17, %v886_v19 }
 0x57f   :  { %v892_v23 = vmul.f32 %v4082_v2, %v891_v20  ;;  %v195_v20 = vadd.f32 %v4300_v50, %v4304_v52 }
 0x581   :  { %v897_v27 = vsel %vm380_vm14, %v892_v23, 0 }
 0x582   :  { %v916_v29 = vand.u32 4294901760, %v897_v27 }
 0x584   :  { %947 = vmatmul.f32.vlgmr.msrb.gmra.mxu3 %v916_v29  ;;  %v917_v32 = vsub.f32 %v897_v27, %v916_v29  ;;  %v240_v27 = vadd.f32 %v4302_v51, %v195_v20 }
 0x585   :  { %1145 = vmatpush.xpose.msrb.mxu3 %v4350_v24  ;;  %v1226_v33 = vpop.permute.xlu1 %1225 }
 0x586   :  { %v1246_v13 = vand.u32 4294901760, %v1226_v33  ;;  %971 = vmatmul.f32.vlgmr.msrb.gmra.mxu0 %v917_v32  ;;  %v918_v35 = vand.u32 4294901760, %v917_v32 }
 0x587   :  { %1171 = vmatpush.xpose.msrb.mxu0 %v1096_v36 }
 0x588   :  { %v1273_v38 = vsub.f32 %v1226_v33, %v1246_v13  ;;  %995 = vmatmul.f32.vlgmr.msrb.gmra.mxu1 %v918_v35  ;;  %v919_v46 = vsub.f32 %v917_v32, %v918_v35 }
 0x589   :  { %1193 = vmatpush.xpose.msrb.mxu1 %v4350_v24 }
 0x58a   :  { %v1274_v47 = vand.u32 4294901760, %v1273_v38  ;;  %v920_v18 = vand.u32 4294901760, %v919_v46 }
 0x58c   :  { %v1275_v49 = vsub.f32 %v1273_v38, %v1274_v47  ;;  %921 = vmatmul.f32.vlgmr.msrb.gmra.mxu2 %v920_v18  ;;  %1041 = vmatmul.f32.vlgmr.msra.gmra.mxu3 %v916_v29 }
 0x58d   :  { %1122 = vmatpush.xpose.msrb.mxu2 %v4353_v34 }
 0x58e   :  { %v1276_v53 = vand.u32 4294901760, %v1275_v49  ;;  %1075 = vmatmul.f32.vlgmr.msra.gmra.mxu0 %v1074_v48 }
 0x58f   :  { %1300 = vmatpush.msra.mxu0 %v1273_v38 }
 0x590   :  { %1101 = vmatmul.f32.vlgmr.msra.gmra.mxu1 %v1070_v16  ;;  %1277 = vmatpush.msra.mxu3 %v1276_v53 }
 0x591   :  { %1323 = vmatpush.msra.mxu1 %v1246_v13 }
 0x594   :  { %1019 = vmatmul.f32.vlgmr.msra.gmra.mxu2 %v916_v29  ;;  %1149 = vmatmul.f32.vlgmr.msrb.gmra.mxu3 %v1072_v30  ;;  %v275_v30 = vadd.f32 %v4318_v21, %v240_v27 }
 0x595   :  { %1247 = vmatpush.msra.mxu2 %v1246_v13  ;;  %1371 = vmatpush.msrb.mxu3 %v1246_v13 }
 0x596   :  { %1173 = vmatmul.f32.vlgmr.msrb.gmra.mxu0 %v1070_v16  ;;  %v308_v32 = vadd.f32 %v4320_v22, %v275_v30 }
 0x598   :  { %1195 = vmatmul.f32.vlgmr.msrb.gmra.mxu1 %v1070_v16  ;;  %v345_v33 = vadd.f32 %v4325_v26, %v308_v32 }
 0x59a   :  { %v4415_v13 = vadd.f32 %v4327_v28, %v345_v33 }
 0x59c   :  { %1125 = vmatmul.f32.vlgmr.msrb.gmra.mxu2 %v1071_v25 }
 0x59d   :  { %1349 = vmatpush.msrb.mxu2 %v1274_v47 }
 0x603   :  { %v4387_v36 = vpop.f32.mrf.mxu0 }
 0x605   :  { %v4391_v34 = vpop.f32.mrf.mxu1 }
 0x607   :  { %v4385_v24 = vpop.f32.mrf.mxu3 }
 0x60b   :  { %v1076_v57 = vpop.f32.mrf.mxu0 }
 0x60d   :  { %v1102_v58 = vpop.f32.mrf.mxu1 }
 0x60e   :  { %v1103_v59 = vadd.f32 %v1102_v58, %v1076_v57 }
 0x60f   :  { %v4389_v54 = vpop.f32.mrf.mxu2  ;;  %v4393_v55 = vpop.f32.mrf.mxu3 }
 0x613   :  { %v1174_v1 = vpop.f32.mrf.mxu0 }
 0x615   :  { %v1196_v3 = vpop.f32.mrf.mxu1 }
 0x617   :  { %v4395_v56 = vpop.f32.mrf.mxu2  ;;  %v1150_v63 = vpop.f32.mrf.mxu3 }
 0x61f   :  { %v1126_v60 = vpop.f32.mrf.mxu2 }
 0x620   :  { %v1127_v61 = vadd.f32 %v1126_v60, %v1103_v59 }
 0x622   :  { %v1151_v0 = vadd.f32 %v1150_v63, %v1127_v61 }
 0x624   :  { %v1175_v2 = vadd.f32 %v1174_v1, %v1151_v0 }
 0x626   :  { %v1197_v4 = vadd.f32 %v1196_v3, %v1175_v2 }
 0x628   :  { %v1199_v5 = vmul.f32 0.35355338, %v1197_v4 }
 0x62a   :  { %v1200_v6 = vsel %vm4330_vm1, %v1199_v5, -1e+09 }
 0x62b   :  { %v1201_v7 = vsel %vm380_vm14, %v1200_v6, -inf }
 0x62c   :  { %1202 = vmax.xlane.f32.xlu0 %v1201_v7 }
 0x640   :  { %1379 = vrot.lane.b32.xlu0 %v4307_v62, %s4155_s21 }
 0x648   :  { %1377 = vrot.lane.b32.xlu0 %v4307_v62, %s4156_s22 }
 0x69f   :  { %v1203_v8 = vpop.xlane.xlu0 %1202 }
 0x6a0   :  { %v1204_v9 = vsub.f32 %v1200_v6, %v1203_v8 }
 0x6a2   :  { %v1205_v11 = vmul.f32 1.442695, %v1204_v9 }
 0x6a4   :  { %4085 = vpow2.f32 %v1205_v11 }
 0x6aa   :  { %v4086_v12 = vpop.eup %4085 }
 0x6ab   :  { %v1207_v14 = vsel %vm380_vm14, %v4086_v12, 0.0 }
 0x6ac   :  { %1208 = vadd.xlane.f32.xlu2 %v1207_v14 }
 0x6b2   :  { %v1380_v15 = vpop.permute.xlu0 %1379 }
 0x6b3   :  { %v1383_v16 = vsel %vm380_vm14, %v1380_v15, 0 }
 0x6b4   :  { %v1400_v17 = vand.u32 4294901760, %v1383_v16 }
 0x6b6   :  { %v1427_v19 = vsub.f32 %v1383_v16, %v1400_v17  ;;  %1401 = vmatpush.xpose.msrb.mxu0 %v1400_v17 }
 0x6b8   :  { %v1428_v23 = vand.u32 4294901760, %v1427_v19 }
 0x6ba   :  { %v1429_v25 = vsub.f32 %v1427_v19, %v1428_v23  ;;  %v1378_v21 = vpop.permute.xlu0 %1377 }
 0x6bb   :  { %v1381_v38 = vsel %vm380_vm14, %v1378_v21, 0 }
 0x6bc   :  { %v1430_v29 = vand.u32 4294901760, %v1429_v25  ;;  %v1402_v47 = vand.u32 4294901760, %v1381_v38 }
 0x6be   :  { %1431 = vmatpush.xpose.msrb.mxu1 %v1430_v29  ;;  %v1403_v58 = vsub.f32 %v1381_v38, %v1402_v47 }
 0x6c0   :  { %v1404_v0 = vand.u32 4294901760, %v1403_v58 }
 0x6c2   :  { %v1405_v6 = vsub.f32 %v1403_v58, %v1404_v0 }
 0x6c4   :  { %1557 = vrot.lane.b32.xlu2 %v4307_v62, %s4157_s23 }
 0x6cc   :  { %1729 = vrot.lane.b32.xlu2 %v4415_v13, %s4147_s5 }
 0x71f   :  { %v1209_v50 = vpop.xlane.xlu2 %1208 }
 0x720   :  { %4087 = vrcp.f32 %v1209_v50  ;;  %v1221_v22 = vand.u32 2147483648, %v1209_v50  ;;  %v1219_v62 = vand.u32 2147483647, %v1209_v50  ;;  %vm1215_vm11 = vweird.f32 %v1209_v50 }
 0x722   :  { %v1222_v18 = vor.u32 1.1754944e-38, %v1221_v22  ;;  %vm1220_vm13 = vcmp.eq.f32.partialorder %v1219_v62, 8.507059e+37 }
 0x726   :  { %v4088_v51 = vpop.eup %4087 }
 0x727   :  { %v1211_v52 = vmul.f32 %v4088_v51, %v1209_v50  ;;  %v1558_v37 = vpop.permute.xlu2 %1557  ;;  %vm1216_vm10 = vweird.f32 %v4088_v51 }
 0x728   :  { %v1578_v28 = vand.u32 4294901760, %v1558_v37  ;;  %vm1217_vm12 = vmor %vm1215_vm11, %vm1216_vm10 }
 0x729   :  { %v1212_v35 = vsub.f32 1.0, %v1211_v52 }
 0x72a   :  { %v1605_v53 = vsub.f32 %v1558_v37, %v1578_v28 }
 0x72b   :  { %v1213_v46 = vmul.f32 %v4088_v51, %v1212_v35 }
 0x72c   :  { %v1606_v63 = vand.u32 4294901760, %v1605_v53 }
 0x72d   :  { %v1214_v26 = vadd.f32 %v4088_v51, %v1213_v46 }
 0x72e   :  { %v1607_v4 = vsub.f32 %v1605_v53, %v1606_v63 }
 0x72f   :  { %v1218_v48 = vsel %vm1217_vm12, %v4088_v51, %v1214_v26  ;;  %v1730_v59 = vpop.permute.xlu2 %1729 }
 0x730   :  { %v1223_v49 = vsel %vm1220_vm13, %v1222_v18, %v1218_v48  ;;  %v1733_v1 = vsel %vm380_vm14, %v1730_v59, 0  ;;  %v1608_v9 = vand.u32 4294901760, %v1607_v4 }
 0x731   :  { %v1224_v57 = vmul.f32 %v4086_v12, %v1223_v49  ;;  %v4422_v5 = vand.u32 4294901760, %v1733_v1  ;;  %v1406_v12 = vand.u32 4294901760, %v1405_v6 }
 0x733   :  { %v1229_v60 = vsel %vm380_vm14, %v1224_v57, 0  ;;  %v4425_v11 = vsub.f32 %v1733_v1, %v4422_v5 }
 0x734   :  { %v1248_v61 = vand.u32 4294901760, %v1229_v60 }
 0x735   :  { %v1778_v14 = vand.u32 4294901760, %v4425_v11 }
 0x736   :  { %1279 = vmatmul.f32.vlgmr.msra.gmra.mxu3 %v1248_v61  ;;  %v1249_v2 = vsub.f32 %v1229_v60, %v1248_v61 }
 0x737   :  { %1477 = vmatpush.xpose.msra.mxu3 %v1400_v17  ;;  %v1779_v15 = vsub.f32 %v4425_v11, %v1778_v14 }
 0x738   :  { %1303 = vmatmul.f32.vlgmr.msra.gmra.mxu0 %v1249_v2  ;;  %v1250_v3 = vand.u32 4294901760, %v1249_v2 }
 0x739   :  { %1503 = vmatpush.xpose.msra.mxu0 %v1428_v23  ;;  %v1780_v16 = vand.u32 4294901760, %v1779_v15 }
 0x73a   :  { %1327 = vmatmul.f32.vlgmr.msra.gmra.mxu1 %v1250_v3  ;;  %v1251_v7 = vsub.f32 %v1249_v2, %v1250_v3  ;;  %v1731_v3 = vsel %vm380_vm14, %v4415_v13, 0 }
 0x73b   :  { %1525 = vmatpush.xpose.msra.mxu1 %v1400_v17 }
 0x73c   :  { %v1252_v8 = vand.u32 4294901760, %v1251_v7  ;;  %v1752_v7 = vand.u32 4294901760, %v1731_v3 }
 0x73e   :  { %1253 = vmatmul.f32.vlgmr.msra.gmra.mxu2 %v1252_v8  ;;  %1373 = vmatmul.f32.vlgmr.msrb.gmra.mxu3 %v1248_v61 }
 0x73f   :  { %1454 = vmatpush.xpose.msra.mxu2 %v1427_v19  ;;  %1609 = vmatpush.msrb.mxu3 %v1608_v9 }
 0x740   :  { %1407 = vmatmul.f32.vlgmr.msrb.gmra.mxu0 %v1406_v12 }
 0x741   :  { %1632 = vmatpush.msrb.mxu0 %v1605_v53 }
 0x742   :  { %1433 = vmatmul.f32.vlgmr.msrb.gmra.mxu1 %v1402_v47 }
 0x743   :  { %1655 = vmatpush.msrb.mxu1 %v1578_v28 }
 0x746   :  { %1351 = vmatmul.f32.vlgmr.msrb.gmra.mxu2 %v1248_v61  ;;  %1481 = vmatmul.f32.vlgmr.msra.gmra.mxu3 %v1404_v0 }
 0x747   :  { %1579 = vmatpush.msrb.mxu2 %v1578_v28  ;;  %1703 = vmatpush.msra.mxu3 %v1578_v28 }
 0x748   :  { %1505 = vmatmul.f32.vlgmr.msra.gmra.mxu0 %v1402_v47 }
 0x749   :  { %1751 = vmatpush.xpose.msra.mxu0 %v4422_v5 }
 0x74a   :  { %1527 = vmatmul.f32.vlgmr.msra.gmra.mxu1 %v1402_v47 }
 0x74b   :  { %1781 = vmatpush.xpose.msra.mxu1 %v1780_v16  ;;  %v1753_v16 = vsub.f32 %v1731_v3, %v1752_v7  ;;  %v3077_v3 = vld [vmem:[%s4993_s6 + $0x18] sm:$0xff] }
 0x74e   :  { %1457 = vmatmul.f32.vlgmr.msra.gmra.mxu2 %v1403_v58 }
 0x74f   :  { %1681 = vmatpush.msra.mxu2 %v1606_v63 }
 0x7b5   :  { %v1304_v19 = vpop.f32.mrf.mxu0 }
 0x7b7   :  { %v1328_v25 = vpop.f32.mrf.mxu1 }
 0x7b9   :  { %v1280_v17 = vpop.f32.mrf.mxu3 }
 0x7bd   :  { %v1408_v50 = vpop.f32.mrf.mxu0 }
 0x7bf   :  { %v1434_v52 = vpop.f32.mrf.mxu1 }
 0x7c0   :  { %v1435_v21 = vadd.f32 %v1434_v52, %v1408_v50 }
 0x7c1   :  { %v1254_v20 = vpop.f32.mrf.mxu2  ;;  %v1374_v30 = vpop.f32.mrf.mxu3 }
 0x7c2   :  { %v1281_v23 = vadd.f32 %v1280_v17, %v1254_v20 }
 0x7c4   :  { %v1305_v27 = vadd.f32 %v1304_v19, %v1281_v23 }
 0x7c5   :  { %v1506_v46 = vpop.f32.mrf.mxu0 }
 0x7c6   :  { %v1329_v29 = vadd.f32 %v1328_v25, %v1305_v27  ;;  %v1754_v27 = vand.u32 4294901760, %v1753_v16 }
 0x7c7   :  { %v1528_v26 = vpop.f32.mrf.mxu1 }
 0x7c8   :  { %v1755_v50 = vsub.f32 %v1753_v16, %v1754_v27 }
 0x7c9   :  { %v1352_v32 = vpop.f32.mrf.mxu2  ;;  %v1482_v22 = vpop.f32.mrf.mxu3 }
 0x7ca   :  { %v1353_v33 = vadd.f32 %v1352_v32, %v1329_v29 }
 0x7cc   :  { %v4432_v51 = vadd.f32 %v1374_v30, %v1353_v33 }
 0x7d1   :  { %v1458_v35 = vpop.f32.mrf.mxu2 }
 0x7d2   :  { %v1459_v37 = vadd.f32 %v1458_v35, %v1435_v21  ;;  %v1756_v35 = vand.u32 4294901760, %v1755_v50 }
 0x7d4   :  { %v1483_v38 = vadd.f32 %v1482_v22, %v1459_v37 }
 0x7d6   :  { %v1507_v62 = vadd.f32 %v1506_v46, %v1483_v38 }
 0x7d8   :  { %v1529_v28 = vadd.f32 %v1528_v26, %v1507_v62 }
 0x7da   :  { %v1531_v47 = vmul.f32 0.35355338, %v1529_v28 }
 0x7dc   :  { %v1532_v18 = vsel %vm4330_vm1, %v1531_v47, -1e+09 }
 0x7dd   :  { %v1533_v48 = vsel %vm380_vm14, %v1532_v18, -inf }
 0x7de   :  { %1534 = vmax.xlane.f32.xlu1 %v1533_v48  ;;  %v4040_v48 = vld [vmem:[%s4988_s1 + $0x1] sm:$0x1]  ;;  %s4158_s1 = smov 8  }
 0x7df   :  { %vm1882_vm4 = vcmp.gt.f32.partialorder %v4040_v48, 0.0 }
 0x851   :  { %v1535_v49 = vpop.xlane.xlu1 %1534 }
 0x852   :  { %v1536_v53 = vsub.f32 %v1532_v18, %v1535_v49 }
 0x854   :  { %v1537_v57 = vmul.f32 1.442695, %v1536_v53 }
 0x856   :  { %4089 = vpow2.f32 %v1537_v57 }
 0x85c   :  { %v4090_v58 = vpop.eup %4089 }
 0x85d   :  { %v1539_v59 = vsel %vm380_vm14, %v4090_v58, 0.0 }
 0x85e   :  { %1540 = vadd.xlane.f32.xlu0 %v1539_v59  ;;  %v1883_v59 = vsel %vm1882_vm4, 1, %v4149_v31  ;;  %vm1722_vm4 = vcmask 130048  }
 0x872   :  { %1911 = vrot.lane.b32.xlu0 %v4415_v13, %s4146_s28 }
 0x87a   :  { %2063 = vrot.lane.b32.xlu0 %v4415_v13, %s4148_s29 }
 0x8d1   :  { %v1541_v60 = vpop.xlane.xlu0 %1540 }
 0x8d2   :  { %4091 = vrcp.f32 %v1541_v60  ;;  %v1553_v0 = vand.u32 2147483648, %v1541_v60  ;;  %v1551_v2 = vand.u32 2147483647, %v1541_v60  ;;  %vm1547_vm1 = vweird.f32 %v1541_v60 }
 0x8d4   :  { %v1554_v6 = vor.u32 1.1754944e-38, %v1553_v0  ;;  %vm1552_vm3 = vcmp.eq.f32.partialorder %v1551_v2, 8.507059e+37 }
 0x8d8   :  { %v4092_v39 = vpop.eup %4091 }
 0x8d9   :  { %v1543_v61 = vmul.f32 %v4092_v39, %v1541_v60  ;;  %vm1548_vm15 = vweird.f32 %v4092_v39 }
 0x8da   :  { %vm1549_vm2 = vmor %vm1547_vm1, %vm1548_vm15 }
 0x8db   :  { %v1544_v63 = vsub.f32 1.0, %v1543_v61 }
 0x8dd   :  { %v1545_v1 = vmul.f32 %v4092_v39, %v1544_v63  ;;  %v1884_v63 = vperm.slane %v1883_v59, 0 }
 0x8df   :  { %v1546_v4 = vadd.f32 %v4092_v39, %v1545_v1  ;;  %vm4456_vm5 = vcmp.eq.s32.totalorder %v1884_v63, 1 }
 0x8e1   :  { %v1550_v8 = vsel %vm1549_vm2, %v4092_v39, %v1546_v4 }
 0x8e2   :  { %v1555_v9 = vsel %vm1552_vm3, %v1554_v6, %v1550_v8 }
 0x8e3   :  { %v1556_v12 = vmul.f32 %v4090_v58, %v1555_v9 }
 0x8e4   :  { %v1912_v15 = vpop.permute.xlu0 %1911 }
 0x8e5   :  { %v1932_v17 = vand.u32 4294901760, %v1912_v15  ;;  %v1561_v19 = vsel %vm380_vm14, %v1556_v12, 0 }
 0x8e6   :  { %v1580_v20 = vand.u32 4294901760, %v1561_v19 }
 0x8e7   :  { %v1959_v23 = vsub.f32 %v1912_v15, %v1932_v17 }
 0x8e8   :  { %1611 = vmatmul.f32.vlgmr.msrb.gmra.mxu3 %v1580_v20  ;;  %v1581_v25 = vsub.f32 %v1561_v19, %v1580_v20 }
 0x8e9   :  { %v1960_v29 = vand.u32 4294901760, %v1959_v23  ;;  %1827 = vmatpush.xpose.msrb.mxu3 %v4422_v5 }
 0x8ea   :  { %1635 = vmatmul.f32.vlgmr.msrb.gmra.mxu0 %v1581_v25  ;;  %v1582_v30 = vand.u32 4294901760, %v1581_v25 }
 0x8eb   :  { %v1961_v32 = vsub.f32 %v1959_v23, %v1960_v29  ;;  %1853 = vmatpush.xpose.msrb.mxu0 %v1778_v14 }
 0x8ec   :  { %1659 = vmatmul.f32.vlgmr.msrb.gmra.mxu1 %v1582_v30  ;;  %v1583_v33 = vsub.f32 %v1581_v25, %v1582_v30 }
 0x8ed   :  { %v1962_v52 = vand.u32 4294901760, %v1961_v32  ;;  %1875 = vmatpush.xpose.msrb.mxu1 %v4422_v5 }
 0x8ee   :  { %v1584_v21 = vand.u32 4294901760, %v1583_v33  ;;  %v2064_v33 = vpop.permute.xlu0 %2063 }
 0x8f0   :  { %1585 = vmatmul.f32.vlgmr.msrb.gmra.mxu2 %v1584_v21  ;;  %1705 = vmatmul.f32.vlgmr.msra.gmra.mxu3 %v1580_v20 }
 0x8f1   :  { %1804 = vmatpush.xpose.msrb.mxu2 %v4425_v11  ;;  %1963 = vmatpush.msra.mxu3 %v1962_v52 }
 0x8f2   :  { %1757 = vmatmul.f32.vlgmr.msra.gmra.mxu0 %v1756_v35  ;;  %v2067_v35 = vsel %vm380_vm14, %v2064_v33, 0 }
 0x8f3   :  { %1986 = vmatpush.msra.mxu0 %v1959_v23 }
 0x8f4   :  { %1783 = vmatmul.f32.vlgmr.msra.gmra.mxu1 %v1752_v7 }
 0x8f5   :  { %2009 = vmatpush.msra.mxu1 %v1932_v17 }
 0x8f8   :  { %1683 = vmatmul.f32.vlgmr.msra.gmra.mxu2 %v1580_v20  ;;  %1831 = vmatmul.f32.vlgmr.msrb.gmra.mxu3 %v1754_v27 }
 0x8f9   :  { %1933 = vmatpush.msra.mxu2 %v1932_v17  ;;  %2057 = vmatpush.msrb.mxu3 %v1932_v17 }
 0x8fa   :  { %1855 = vmatmul.f32.vlgmr.msrb.gmra.mxu0 %v1752_v7 }
 0x8fc   :  { %1877 = vmatmul.f32.vlgmr.msrb.gmra.mxu1 %v1752_v7 }
 0x900   :  { %1807 = vmatmul.f32.vlgmr.msrb.gmra.mxu2 %v1753_v16 }
 0x901   :  { %2035 = vmatpush.msrb.mxu2 %v1960_v29 }
 0x967   :  { %v1636_v14 = vpop.f32.mrf.mxu0 }
 0x969   :  { %v1660_v38 = vpop.f32.mrf.mxu1 }
 0x96b   :  { %v1612_v5 = vpop.f32.mrf.mxu3 }
 0x96f   :  { %v1758_v47 = vpop.f32.mrf.mxu0 }
 0x971   :  { %v1784_v49 = vpop.f32.mrf.mxu1 }
 0x972   :  { %v1785_v53 = vadd.f32 %v1784_v49, %v1758_v47 }
 0x973   :  { %v1586_v37 = vpop.f32.mrf.mxu2  ;;  %v1706_v62 = vpop.f32.mrf.mxu3 }
 0x974   :  { %v1613_v22 = vadd.f32 %v1612_v5, %v1586_v37 }
 0x976   :  { %v1637_v46 = vadd.f32 %v1636_v14, %v1613_v22 }
 0x977   :  { %v1856_v61 = vpop.f32.mrf.mxu0 }
 0x978   :  { %v1661_v11 = vadd.f32 %v1660_v38, %v1637_v46  ;;  %v2088_v38 = vand.u32 4294901760, %v2067_v35 }
 0x979   :  { %v1878_v1 = vpop.f32.mrf.mxu1 }
 0x97a   :  { %v2089_v47 = vsub.f32 %v2067_v35, %v2088_v38 }
 0x97b   :  { %v1684_v26 = vpop.f32.mrf.mxu2  ;;  %v1832_v60 = vpop.f32.mrf.mxu3 }
 0x97c   :  { %v1685_v28 = vadd.f32 %v1684_v26, %v1661_v11 }
 0x97e   :  { %v4450_v18 = vadd.f32 %v1706_v62, %v1685_v28 }
 0x983   :  { %v1808_v57 = vpop.f32.mrf.mxu2 }
 0x984   :  { %v1809_v58 = vadd.f32 %v1808_v57, %v1785_v53 }
 0x986   :  { %v1833_v39 = vadd.f32 %v1832_v60, %v1809_v58  ;;  %v2090_v58 = vand.u32 4294901760, %v2089_v47 }
 0x988   :  { %v1857_v0 = vadd.f32 %v1856_v61, %v1833_v39 }
 0x98a   :  { %v1879_v2 = vadd.f32 %v1878_v1, %v1857_v0  ;;  %v2091_v0 = vsub.f32 %v2089_v47, %v2090_v58 }
 0x98c   :  { %v1881_v4 = vmul.f32 0.35355338, %v1879_v2 }
 0x98e   :  { %v1886_v6 = vsel %vm4456_vm5, %v1881_v4, -1e+09 }
 0x98f   :  { %v1887_v7 = vsel %vm380_vm14, %v1886_v6, -inf }
 0x990   :  { %1888 = vmax.xlane.f32.xlu1 %v1887_v7  ;;  %v2092_v7 = vand.u32 4294901760, %v2091_v0 }
 0x9a9   :  { %2065 = vrot.lane.b32.xlu1 %v4415_v13, %s4153_s19 }
 0xa03   :  { %v1889_v31 = vpop.xlane.xlu1 %1888 }
 0xa04   :  { %v1890_v8 = vsub.f32 %v1886_v6, %v1889_v31 }
 0xa06   :  { %v1891_v9 = vmul.f32 1.442695, %v1890_v8 }
 0xa08   :  { %4093 = vpow2.f32 %v1891_v9 }
 0xa0e   :  { %v4094_v12 = vpop.eup %4093 }
 0xa0f   :  { %v1893_v15 = vsel %vm380_vm14, %v4094_v12, 0.0 }
 0xa10   :  { %1894 = vadd.xlane.f32.xlu2 %v1893_v15 }
 0xa1b   :  { %v2066_v16 = vpop.permute.xlu1 %2065 }
 0xa1c   :  { %v2069_v17 = vsel %vm380_vm14, %v2066_v16, 0 }
 0xa1d   :  { %v2086_v19 = vand.u32 4294901760, %v2069_v17 }
 0xa1f   :  { %v2113_v20 = vsub.f32 %v2069_v17, %v2086_v19  ;;  %2087 = vmatpush.xpose.msrb.mxu0 %v2086_v19 }
 0xa21   :  { %v2114_v23 = vand.u32 4294901760, %v2113_v20 }
 0xa23   :  { %v2115_v25 = vsub.f32 %v2113_v20, %v2114_v23 }
 0xa25   :  { %v2116_v27 = vand.u32 4294901760, %v2115_v25 }
 0xa27   :  { %2117 = vmatpush.xpose.msrb.mxu1 %v2116_v27 }
 0xa28   :  { %2243 = vrot.lane.b32.xlu2 %v4415_v13, %s4150_s16  ;;  %s4028_s16 = sshll.u32 %s5001_s14, 4  ;;  %s4029_s16 = int_to_ptr.hbm [resolvable:$true] %s4028_s16 }
 0xa30   :  { %2397 = vrot.lane.b32.xlu2 %v4415_v13, %s4151_s17  ;;  %s4161_s17 = smov [#allocation2]  }
 0xa83   :  { %v1895_v29 = vpop.xlane.xlu2 %1894 }
 0xa84   :  { %4095 = vrcp.f32 %v1895_v29  ;;  %v1907_v21 = vand.u32 2147483648, %v1895_v29  ;;  %v1905_v14 = vand.u32 2147483647, %v1895_v29  ;;  %vm1901_vm7 = vweird.f32 %v1895_v29 }
 0xa86   :  { %v1908_v46 = vor.u32 1.1754944e-38, %v1907_v21  ;;  %vm1906_vm9 = vcmp.eq.f32.partialorder %v1905_v14, 8.507059e+37 }
 0xa8a   :  { %v4096_v30 = vpop.eup %4095 }
 0xa8b   :  { %v1897_v32 = vmul.f32 %v4096_v30, %v1895_v29  ;;  %v2244_v52 = vpop.permute.xlu2 %2243  ;;  %vm1902_vm6 = vweird.f32 %v4096_v30 }
 0xa8c   :  { %v2264_v22 = vand.u32 4294901760, %v2244_v52  ;;  %vm1903_vm8 = vmor %vm1901_vm7, %vm1902_vm6 }
 0xa8d   :  { %v1898_v50 = vsub.f32 1.0, %v1897_v32 }
 0xa8e   :  { %v2291_v26 = vsub.f32 %v2244_v52, %v2264_v22 }
 0xa8f   :  { %v1899_v5 = vmul.f32 %v4096_v30, %v1898_v50 }
 0xa90   :  { %v2292_v57 = vand.u32 4294901760, %v2291_v26 }
 0xa91   :  { %v1900_v37 = vadd.f32 %v4096_v30, %v1899_v5 }
 0xa92   :  { %v2293_v61 = vsub.f32 %v2291_v26, %v2292_v57 }
 0xa93   :  { %v1904_v11 = vsel %vm1903_vm8, %v4096_v30, %v1900_v37  ;;  %v2398_v48 = vpop.permute.xlu2 %2397 }
 0xa94   :  { %v1909_v62 = vsel %vm1906_vm9, %v1908_v46, %v1904_v11  ;;  %v2401_v59 = vsel %vm380_vm14, %v2398_v48, 0  ;;  %v2294_v4 = vand.u32 4294901760, %v2293_v61 }
 0xa95   :  { %v1910_v28 = vmul.f32 %v4094_v12, %v1909_v62  ;;  %v4474_v63 = vand.u32 4294901760, %v2401_v59 }
 0xa97   :  { %v1915_v49 = vsel %vm380_vm14, %v1910_v28, 0  ;;  %v4477_v6 = vsub.f32 %v2401_v59, %v4474_v63 }
 0xa98   :  { %v1934_v53 = vand.u32 4294901760, %v1915_v49 }
 0xa99   :  { %v2446_v31 = vand.u32 4294901760, %v4477_v6 }
 0xa9a   :  { %1965 = vmatmul.f32.vlgmr.msra.gmra.mxu3 %v1934_v53  ;;  %v1935_v60 = vsub.f32 %v1915_v49, %v1934_v53 }
 0xa9b   :  { %2163 = vmatpush.xpose.msra.mxu3 %v2086_v19  ;;  %v2447_v8 = vsub.f32 %v4477_v6, %v2446_v31 }
 0xa9c   :  { %1989 = vmatmul.f32.vlgmr.msra.gmra.mxu0 %v1935_v60  ;;  %v1936_v39 = vand.u32 4294901760, %v1935_v60 }
 0xa9d   :  { %2189 = vmatpush.xpose.msra.mxu0 %v2114_v23  ;;  %v2448_v9 = vand.u32 4294901760, %v2447_v8 }
 0xa9e   :  { %2013 = vmatmul.f32.vlgmr.msra.gmra.mxu1 %v1936_v39  ;;  %v1937_v1 = vsub.f32 %v1935_v60, %v1936_v39 }
 0xa9f   :  { %2211 = vmatpush.xpose.msra.mxu1 %v2086_v19 }
 0xaa0   :  { %v1938_v2 = vand.u32 4294901760, %v1937_v1 }
 0xaa2   :  { %1939 = vmatmul.f32.vlgmr.msra.gmra.mxu2 %v1938_v2  ;;  %2059 = vmatmul.f32.vlgmr.msrb.gmra.mxu3 %v1934_v53 }
 0xaa3   :  { %2140 = vmatpush.xpose.msra.mxu2 %v2113_v20  ;;  %2295 = vmatpush.msrb.mxu3 %v2294_v4 }
 0xaa4   :  { %2093 = vmatmul.f32.vlgmr.msrb.gmra.mxu0 %v2092_v7 }
 0xaa5   :  { %2318 = vmatpush.msrb.mxu0 %v2291_v26 }
 0xaa6   :  { %2119 = vmatmul.f32.vlgmr.msrb.gmra.mxu1 %v2088_v38 }
 0xaa7   :  { %2341 = vmatpush.msrb.mxu1 %v2264_v22 }
 0xaaa   :  { %2037 = vmatmul.f32.vlgmr.msrb.gmra.mxu2 %v1934_v53  ;;  %2167 = vmatmul.f32.vlgmr.msra.gmra.mxu3 %v2090_v58 }
 0xaab   :  { %2265 = vmatpush.msrb.mxu2 %v2264_v22  ;;  %2389 = vmatpush.msra.mxu3 %v2264_v22 }
 0xaac   :  { %2191 = vmatmul.f32.vlgmr.msra.gmra.mxu0 %v2088_v38 }
 0xaad   :  { %2419 = vmatpush.xpose.msra.mxu0 %v4474_v63 }
 0xaae   :  { %2213 = vmatmul.f32.vlgmr.msra.gmra.mxu1 %v2088_v38 }
 0xaaf   :  { %2449 = vmatpush.xpose.msra.mxu1 %v2448_v9 }
 0xab2   :  { %2143 = vmatmul.f32.vlgmr.msra.gmra.mxu2 %v2089_v47 }
 0xab3   :  { %2367 = vmatpush.msra.mxu2 %v2292_v57 }
 0xb19   :  { %v1990_v15 = vpop.f32.mrf.mxu0 }
 0xb1b   :  { %v2014_v19 = vpop.f32.mrf.mxu1 }
 0xb1d   :  { %v1966_v12 = vpop.f32.mrf.mxu3 }
 0xb21   :  { %v2094_v30 = vpop.f32.mrf.mxu0 }
 0xb23   :  { %v2120_v33 = vpop.f32.mrf.mxu1 }
 0xb24   :  { %v2121_v50 = vadd.f32 %v2120_v33, %v2094_v30 }
 0xb25   :  { %v1940_v16 = vpop.f32.mrf.mxu2  ;;  %v2060_v25 = vpop.f32.mrf.mxu3 }
 0xb26   :  { %v1967_v17 = vadd.f32 %v1966_v12, %v1940_v16 }
 0xb28   :  { %v1991_v20 = vadd.f32 %v1990_v15, %v1967_v17 }
 0xb29   :  { %v2192_v14 = vpop.f32.mrf.mxu0 }
 0xb2a   :  { %v2015_v23 = vadd.f32 %v2014_v19, %v1991_v20 }
 0xb2b   :  { %v2214_v22 = vpop.f32.mrf.mxu1 }
 0xb2d   :  { %v2038_v27 = vpop.f32.mrf.mxu2  ;;  %v2168_v35 = vpop.f32.mrf.mxu3 }
 0xb2e   :  { %v2039_v29 = vadd.f32 %v2038_v27, %v2015_v23 }
 0xb30   :  { %v4484_v32 = vadd.f32 %v2060_v25, %v2039_v29 }
 0xb35   :  { %v2144_v52 = vpop.f32.mrf.mxu2 }
 0xb36   :  { %v2145_v21 = vadd.f32 %v2144_v52, %v2121_v50 }
 0xb38   :  { %v2169_v5 = vadd.f32 %v2168_v35, %v2145_v21 }
 0xb3a   :  { %v2193_v37 = vadd.f32 %v2192_v14, %v2169_v5 }
 0xb3c   :  { %v2215_v38 = vadd.f32 %v2214_v22, %v2193_v37 }
 0xb3e   :  { %v2217_v46 = vmul.f32 0.35355338, %v2215_v38 }
 0xb40   :  { %v2218_v11 = vsel %vm4456_vm5, %v2217_v46, -1e+09 }
 0xb41   :  { %v2219_v62 = vsel %vm380_vm14, %v2218_v11, -inf }
 0xb42   :  { %2220 = vmax.xlane.f32.xlu1 %v2219_v62 }
 0xb5b   :  { %2395 = vrot.lane.b32.xlu1 %v4415_v13, %s4152_s18  ;;  %s4026_s18 = sshll.u32 %s4161_s17, 4  ;;  %s4027_s18 = int_to_ptr.vmem [resolvable:$true] %s4026_s18 }
 0xb63   :  { %2729 = vrot.lane.b32.xlu1 %v4415_v13, %s4155_s21 }
 0xbb5   :  { %v2221_v26 = vpop.xlane.xlu1 %2220 }
 0xbb6   :  { %v2222_v28 = vsub.f32 %v2218_v11, %v2221_v26 }
 0xbb8   :  { %v2223_v47 = vmul.f32 1.442695, %v2222_v28 }
 0xbba   :  { %4097 = vpow2.f32 %v2223_v47 }
 0xbc0   :  { %v4098_v48 = vpop.eup %4097 }
 0xbc1   :  { %v2225_v49 = vsel %vm380_vm14, %v4098_v48, 0.0 }
 0xbc2   :  { %2226 = vadd.xlane.f32.xlu0 %v2225_v49 }
 0xbcd   :  { %v2396_v59 = vpop.permute.xlu1 %2395 }
 0xbce   :  { %v2399_v61 = vsel %vm380_vm14, %v2396_v59, 0 }
 0xbcf   :  { %v2420_v4 = vand.u32 4294901760, %v2399_v61 }
 0xbd1   :  { %v2421_v15 = vsub.f32 %v2399_v61, %v2420_v4 }
 0xbd3   :  { %v2422_v19 = vand.u32 4294901760, %v2421_v15 }
 0xbd5   :  { %v2423_v25 = vsub.f32 %v2421_v15, %v2422_v19 }
 0xbd7   :  { %v2424_v30 = vand.u32 4294901760, %v2423_v25 }
 0xc35   :  { %v2227_v53 = vpop.xlane.xlu0 %2226 }
 0xc36   :  { %4099 = vrcp.f32 %v2227_v53  ;;  %v2239_v39 = vand.u32 2147483648, %v2227_v53  ;;  %v2237_v1 = vand.u32 2147483647, %v2227_v53  ;;  %vm2233_vm11 = vweird.f32 %v2227_v53 }
 0xc38   :  { %v2240_v7 = vor.u32 1.1754944e-38, %v2239_v39  ;;  %vm2238_vm13 = vcmp.eq.f32.partialorder %v2237_v1, 8.507059e+37 }
 0xc3c   :  { %v4100_v57 = vpop.eup %4099 }
 0xc3d   :  { %v2229_v58 = vmul.f32 %v4100_v57, %v2227_v53  ;;  %vm2234_vm10 = vweird.f32 %v4100_v57 }
 0xc3e   :  { %vm2235_vm12 = vmor %vm2233_vm11, %vm2234_vm10 }
 0xc3f   :  { %v2230_v60 = vsub.f32 1.0, %v2229_v58 }
 0xc41   :  { %v2231_v0 = vmul.f32 %v4100_v57, %v2230_v60  ;;  %v2730_v60 = vpop.permute.xlu1 %2729 }
 0xc43   :  { %v2232_v2 = vadd.f32 %v4100_v57, %v2231_v0  ;;  %v2733_v0 = vsel %vm380_vm14, %v2730_v60, 0 }
 0xc45   :  { %v2236_v8 = vsel %vm2235_vm12, %v4100_v57, %v2232_v2  ;;  %v4511_v2 = vand.u32 4294901760, %v2733_v0 }
 0xc46   :  { %v2241_v9 = vsel %vm2238_vm13, %v2240_v7, %v2236_v8 }
 0xc47   :  { %v2242_v12 = vmul.f32 %v4098_v48, %v2241_v9 }
 0xc49   :  { %v2247_v16 = vsel %vm380_vm14, %v2242_v12, 0 }
 0xc4a   :  { %v2266_v17 = vand.u32 4294901760, %v2247_v16 }
 0xc4c   :  { %2297 = vmatmul.f32.vlgmr.msrb.gmra.mxu3 %v2266_v17  ;;  %v2267_v20 = vsub.f32 %v2247_v16, %v2266_v17 }
 0xc4d   :  { %2495 = vmatpush.xpose.msrb.mxu3 %v4474_v63 }
 0xc4e   :  { %2321 = vmatmul.f32.vlgmr.msrb.gmra.mxu0 %v2267_v20  ;;  %v2268_v23 = vand.u32 4294901760, %v2267_v20 }
 0xc4f   :  { %2521 = vmatpush.xpose.msrb.mxu0 %v2446_v31 }
 0xc50   :  { %2345 = vmatmul.f32.vlgmr.msrb.gmra.mxu1 %v2268_v23  ;;  %v2269_v27 = vsub.f32 %v2267_v20, %v2268_v23 }
 0xc51   :  { %2543 = vmatpush.xpose.msrb.mxu1 %v4474_v63 }
 0xc52   :  { %v2270_v29 = vand.u32 4294901760, %v2269_v27  ;;  %v949_v27 = vadd.f32 %v4385_v24, %v4389_v54 }
 0xc54   :  { %2271 = vmatmul.f32.vlgmr.msrb.gmra.mxu2 %v2270_v29  ;;  %2391 = vmatmul.f32.vlgmr.msra.gmra.mxu3 %v2266_v17  ;;  %v973_v29 = vadd.f32 %v4387_v36, %v949_v27 }
 0xc55   :  { %2472 = vmatpush.xpose.msrb.mxu2 %v4477_v6 }
 0xc56   :  { %2425 = vmatmul.f32.vlgmr.msra.gmra.mxu0 %v2424_v30  ;;  %v997_v30 = vadd.f32 %v4391_v34, %v973_v29 }
 0xc58   :  { %2451 = vmatmul.f32.vlgmr.msra.gmra.mxu1 %v2420_v4 }
 0xc5c   :  { %2369 = vmatmul.f32.vlgmr.msra.gmra.mxu2 %v2266_v17  ;;  %2499 = vmatmul.f32.vlgmr.msrb.gmra.mxu3 %v2422_v19 }
 0xc5e   :  { %2523 = vmatmul.f32.vlgmr.msrb.gmra.mxu0 %v2420_v4 }
 0xc60   :  { %2545 = vmatmul.f32.vlgmr.msrb.gmra.mxu1 %v2420_v4  ;;  %v4514_v4 = vsub.f32 %v2733_v0, %v4511_v2 }
 0xc62   :  { %v2778_v9 = vand.u32 4294901760, %v4514_v4 }
 0xc64   :  { %2475 = vmatmul.f32.vlgmr.msrb.gmra.mxu2 %v2421_v15  ;;  %v2779_v12 = vsub.f32 %v4514_v4, %v2778_v9 }
 0xc66   :  { %v2780_v17 = vand.u32 4294901760, %v2779_v12 }
 0xccb   :  { %v2322_v31 = vpop.f32.mrf.mxu0 }
 0xccd   :  { %v2346_v21 = vpop.f32.mrf.mxu1 }
 0xccf   :  { %v2298_v33 = vpop.f32.mrf.mxu3 }
 0xcd3   :  { %v2426_v22 = vpop.f32.mrf.mxu0 }
 0xcd5   :  { %v2452_v6 = vpop.f32.mrf.mxu1 }
 0xcd6   :  { %v2453_v46 = vadd.f32 %v2452_v6, %v2426_v22 }
 0xcd7   :  { %v2272_v50 = vpop.f32.mrf.mxu2  ;;  %v2392_v5 = vpop.f32.mrf.mxu3 }
 0xcd8   :  { %v2299_v52 = vadd.f32 %v2298_v33, %v2272_v50  ;;  %v1021_v33 = vadd.f32 %v4395_v56, %v997_v30 }
 0xcda   :  { %v2323_v35 = vadd.f32 %v2322_v31, %v2299_v52  ;;  %v1043_v31 = vadd.f32 %v4393_v55, %v1021_v33 }
 0xcdb   :  { %v2524_v47 = vpop.f32.mrf.mxu0 }
 0xcdc   :  { %v2347_v63 = vadd.f32 %v2346_v21, %v2323_v35 }
 0xcdd   :  { %v2546_v49 = vpop.f32.mrf.mxu1 }
 0xcdf   :  { %v2370_v14 = vpop.f32.mrf.mxu2  ;;  %v2500_v26 = vpop.f32.mrf.mxu3 }
 0xce0   :  { %v2371_v37 = vadd.f32 %v2370_v14, %v2347_v63 }
 0xce2   :  { %v4501_v38 = vadd.f32 %v2392_v5, %v2371_v37 }
 0xce7   :  { %v2476_v11 = vpop.f32.mrf.mxu2 }
 0xce8   :  { %v2477_v62 = vadd.f32 %v2476_v11, %v2453_v46 }
 0xcea   :  { %v2501_v28 = vadd.f32 %v2500_v26, %v2477_v62 }
 0xcec   :  { %v2525_v48 = vadd.f32 %v2524_v47, %v2501_v28 }
 0xcee   :  { %v2547_v53 = vadd.f32 %v2546_v49, %v2525_v48 }
 0xcf0   :  { %v2549_v57 = vmul.f32 0.35355338, %v2547_v53 }
 0xcf2   :  { %v2550_v58 = vsel %vm4456_vm5, %v2549_v57, -1e+09 }
 0xcf3   :  { %v2551_v59 = vsel %vm380_vm14, %v2550_v58, -inf }
 0xcf4   :  { %2552 = vmax.xlane.f32.xlu0 %v2551_v59 }
 0xd08   :  { %2575 = vrot.lane.b32.xlu0 %v4415_v13, %s4154_s20 }
 0xd10   :  { %2727 = vrot.lane.b32.xlu0 %v4415_v13, %s4156_s22 }
 0xd67   :  { %v2553_v39 = vpop.xlane.xlu0 %2552 }
 0xd68   :  { %v2554_v61 = vsub.f32 %v2550_v58, %v2553_v39 }
 0xd6a   :  { %v2555_v1 = vmul.f32 1.442695, %v2554_v61 }
 0xd6c   :  { %4101 = vpow2.f32 %v2555_v1 }
 0xd72   :  { %v4102_v7 = vpop.eup %4101 }
 0xd73   :  { %v2557_v8 = vsel %vm380_vm14, %v4102_v7, 0.0 }
 0xd74   :  { %2558 = vadd.xlane.f32.xlu2 %v2557_v8 }
 0xd7a   :  { %v2576_v15 = vpop.permute.xlu0 %2575 }
 0xd7b   :  { %v2596_v16 = vand.u32 4294901760, %v2576_v15 }
 0xd7d   :  { %v2623_v19 = vsub.f32 %v2576_v15, %v2596_v16  ;;  %2597 = vmatpush.msra.mxu2 %v2596_v16  ;;  %2673 = vmatpush.msra.mxu1 %v2596_v16 }
 0xd7f   :  { %2781 = vmatpush.xpose.msrb.mxu1 %v2780_v17  ;;  %v2624_v20 = vand.u32 4294901760, %v2623_v19  ;;  %2650 = vmatpush.msra.mxu0 %v2623_v19 }
 0xd81   :  { %2751 = vmatpush.xpose.msrb.mxu0 %v4511_v2  ;;  %v2625_v23 = vsub.f32 %v2623_v19, %v2624_v20  ;;  %2699 = vmatpush.msrb.mxu2 %v2624_v20 }
 0xd82   :  { %v2728_v50 = vpop.permute.xlu0 %2727 }
 0xd83   :  { %v2626_v25 = vand.u32 4294901760, %v2625_v23 }
 0xd85   :  { %2627 = vmatpush.msra.mxu3 %v2626_v25 }
 0xd87   :  { %2721 = vmatpush.msrb.mxu3 %v2596_v16 }
 0xd8c   :  { %2907 = vrot.lane.b32.xlu2 %v4415_v13, %s4157_s23  ;;  %v2731_v13 = vsel %vm380_vm14, %v2728_v50, 0 }
 0xd8d   :  { %v2752_v5 = vand.u32 4294901760, %v2731_v13 }
 0xd8f   :  { %v2753_v46 = vsub.f32 %v2731_v13, %v2752_v5 }
 0xd91   :  { %v2754_v28 = vand.u32 4294901760, %v2753_v46 }
 0xd93   :  { %v2755_v53 = vsub.f32 %v2753_v46, %v2754_v28 }
 0xd94   :  { %1710 = vrot.lane.b32.xlu2 %v1043_v31, %s4158_s1 }
 0xd95   :  { %v2756_v60 = vand.u32 4294901760, %v2755_v53 }
 0xd9c   :  { %1718 = vrot.lane.b32.xlu2 %v4450_v18, %s4159_s25 }
 0xde7   :  { %v2559_v24 = vpop.xlane.xlu2 %2558 }
 0xde8   :  { %4103 = vrcp.f32 %v2559_v24  ;;  %v2571_v52 = vand.u32 2147483648, %v2559_v24  ;;  %v2569_v55 = vand.u32 2147483647, %v2559_v24  ;;  %vm2565_vm1 = vweird.f32 %v2559_v24 }
 0xdea   :  { %v2572_v14 = vor.u32 1.1754944e-38, %v2571_v52  ;;  %vm2570_vm3 = vcmp.eq.f32.partialorder %v2569_v55, 8.507059e+37  ;;  %v3076_v55 = vld [vmem:[%s4993_s6 + $0x10] sm:$0xff] }
 0xdee   :  { %v4104_v54 = vpop.eup %4103 }
 0xdef   :  { %v2561_v36 = vmul.f32 %v4104_v54, %v2559_v24  ;;  %v2908_v21 = vpop.permute.xlu2 %2907  ;;  %vm2566_vm15 = vweird.f32 %v4104_v54 }
 0xdf0   :  { %v2928_v63 = vand.u32 4294901760, %v2908_v21  ;;  %vm2567_vm2 = vmor %vm2565_vm1, %vm2566_vm15 }
 0xdf1   :  { %v2562_v34 = vsub.f32 1.0, %v2561_v36 }
 0xdf2   :  { %v2955_v6 = vsub.f32 %v2908_v21, %v2928_v63 }
 0xdf3   :  { %v2563_v56 = vmul.f32 %v4104_v54, %v2562_v34 }
 0xdf4   :  { %v2956_v26 = vand.u32 4294901760, %v2955_v6 }
 0xdf5   :  { %v2564_v35 = vadd.f32 %v4104_v54, %v2563_v56  ;;  %v4549_v56 = vand.u32 4294901760, %v3077_v3 }
 0xdf6   :  { %v2957_v49 = vsub.f32 %v2955_v6, %v2956_v26 }
 0xdf7   :  { %v2568_v18 = vsel %vm2567_vm2, %v4104_v54, %v2564_v35  ;;  %v4558_v35 = vsub.f32 %v3077_v3, %v4549_v56 }
 0xdf8   :  { %v2573_v37 = vsel %vm2570_vm3, %v2572_v14, %v2568_v18  ;;  %v2958_v59 = vand.u32 4294901760, %v2957_v49  ;;  %v3074_v18 = vld [vmem:[%s4993_s6] sm:$0xff] }
 0xdf9   :  { %v2574_v22 = vmul.f32 %v4102_v7, %v2573_v37 }
 0xdfb   :  { %v2579_v11 = vsel %vm380_vm14, %v2574_v22, 0 }
 0xdfc   :  { %v2598_v62 = vand.u32 4294901760, %v2579_v11 }
 0xdfe   :  { %2629 = vmatmul.f32.vlgmr.msra.gmra.mxu3 %v2598_v62  ;;  %v2599_v47 = vsub.f32 %v2579_v11, %v2598_v62 }
 0xdff   :  { %2827 = vmatpush.xpose.msra.mxu3 %v4511_v2 }
 0xe00   :  { %2653 = vmatmul.f32.vlgmr.msra.gmra.mxu0 %v2599_v47  ;;  %v2600_v48 = vand.u32 4294901760, %v2599_v47 }
 0xe01   :  { %2853 = vmatpush.xpose.msra.mxu0 %v2778_v9 }
 0xe02   :  { %v2601_v57 = vsub.f32 %v2599_v47, %v2600_v48  ;;  %2677 = vmatmul.f32.vlgmr.msra.gmra.mxu1 %v2600_v48  ;;  %v1711_v47 = vpop.permute.xlu2 %1710 }
 0xe03   :  { %2875 = vmatpush.xpose.msra.mxu1 %v4511_v2 }
 0xe04   :  { %v2602_v58 = vand.u32 4294901760, %v2601_v57 }
 0xe06   :  { %2603 = vmatmul.f32.vlgmr.msra.gmra.mxu2 %v2602_v58  ;;  %2723 = vmatmul.f32.vlgmr.msrb.gmra.mxu3 %v2598_v62 }
 0xe07   :  { %2804 = vmatpush.xpose.msra.mxu2 %v4514_v4  ;;  %2959 = vmatpush.msrb.mxu3 %v2958_v59 }
 0xe08   :  { %2757 = vmatmul.f32.vlgmr.msrb.gmra.mxu0 %v2756_v60 }
 0xe09   :  { %2982 = vmatpush.msrb.mxu0 %v2955_v6  ;;  %v4581_v6 = vand.u32 4294901760, %v3074_v18 }
 0xe0a   :  { %2783 = vmatmul.f32.vlgmr.msrb.gmra.mxu1 %v2752_v5 }
 0xe0b   :  { %3005 = vmatpush.msrb.mxu1 %v2928_v63 }
 0xe0e   :  { %2701 = vmatmul.f32.vlgmr.msrb.gmra.mxu2 %v2598_v62  ;;  %2831 = vmatmul.f32.vlgmr.msra.gmra.mxu3 %v2754_v28 }
 0xe0f   :  { %2929 = vmatpush.msrb.mxu2 %v2928_v63  ;;  %3053 = vmatpush.msra.mxu3 %v2928_v63  ;;  %v4560_v63 = vand.u32 4294901760, %v3076_v55 }
 0xe10   :  { %2855 = vmatmul.f32.vlgmr.msra.gmra.mxu0 %v2752_v5 }
 0xe11   :  { %3101 = vmatpush.msra.mxu0 %v4549_v56 }
 0xe12   :  { %2877 = vmatmul.f32.vlgmr.msra.gmra.mxu1 %v2752_v5  ;;  %v3139_v5 = vand.u32 4294901760, %v4558_v35 }
 0xe13   :  { %3103 = vmatpush.msra.mxu0 %v4560_v63 }
 0xe14   :  { %v3140_v37 = vsub.f32 %v4558_v35, %v3139_v5 }
 0xe16   :  { %2807 = vmatmul.f32.vlgmr.msra.gmra.mxu2 %v2753_v46  ;;  %v3141_v11 = vand.u32 4294901760, %v3140_v37 }
 0xe17   :  { %3031 = vmatpush.msra.mxu2 %v2956_v26  ;;  %v4592_v26 = vsub.f32 %v3074_v18, %v4581_v6 }
 0xe18   :  { %3142 = vmatpush.msra.mxu1 %v3141_v11 }
 0xe19   :  { %v3157_v53 = vand.u32 4294901760, %v4592_v26 }
 0xe1b   :  { %v3158_v60 = vsub.f32 %v4592_v26, %v3157_v53 }
 0xe7d   :  { %v2654_v61 = vpop.f32.mrf.mxu0 }
 0xe7f   :  { %v2678_v2 = vpop.f32.mrf.mxu1 }
 0xe81   :  { %v2630_v39 = vpop.f32.mrf.mxu3 }
 0xe85   :  { %v2758_v15 = vpop.f32.mrf.mxu0 }
 0xe87   :  { %v2784_v17 = vpop.f32.mrf.mxu1 }
 0xe88   :  { %v2785_v19 = vadd.f32 %v2784_v17, %v2758_v15 }
 0xe89   :  { %v2604_v0 = vpop.f32.mrf.mxu2  ;;  %v2724_v8 = vpop.f32.mrf.mxu3 }
 0xe8a   :  { %v2631_v1 = vadd.f32 %v2630_v39, %v2604_v0 }
 0xe8c   :  { %v2655_v7 = vadd.f32 %v2654_v61, %v2631_v1 }
 0xe8d   :  { %v2856_v29 = vpop.f32.mrf.mxu0 }
 0xe8e   :  { %v2679_v4 = vadd.f32 %v2678_v2, %v2655_v7  ;;  %v1719_v2 = vpop.permute.xlu2 %1718 }
 0xe8f   :  { %v2878_v33 = vpop.f32.mrf.mxu1 }
 0xe91   :  { %v2702_v9 = vpop.f32.mrf.mxu2  ;;  %v2832_v25 = vpop.f32.mrf.mxu3 }
 0xe92   :  { %v2703_v12 = vadd.f32 %v2702_v9, %v2679_v4 }
 0xe94   :  { %v2725_v16 = vadd.f32 %v2724_v8, %v2703_v12 }
 0xe96   :  { %3064 = vrot.lane.b32.xlu2 %v2725_v16, %s4160_s26 }
 0xe99   :  { %v2808_v20 = vpop.f32.mrf.mxu2 }
 0xe9a   :  { %v2809_v23 = vadd.f32 %v2808_v20, %v2785_v19 }
 0xe9c   :  { %v2833_v27 = vadd.f32 %v2832_v25, %v2809_v23 }
 0xe9e   :  { %v2857_v30 = vadd.f32 %v2856_v29, %v2833_v27 }
 0xea0   :  { %v2879_v31 = vadd.f32 %v2878_v33, %v2857_v30 }
 0xea2   :  { %v2881_v24 = vmul.f32 0.35355338, %v2879_v31 }
 0xea4   :  { %v2882_v54 = vsel %vm4456_vm5, %v2881_v24, -1e+09  ;;  %vm1724_vm5 = vcmask 195584  }
 0xea5   :  { %v2883_v36 = vsel %vm380_vm14, %v2882_v54, -inf }
 0xea6   :  { %2884 = vmax.xlane.f32.xlu1 %v2883_v36 }
 0xebf   :  { %1714 = vrot.lane.b32.xlu1 %v4432_v51, %s4160_s26  ;;  %v617_v51 = vadd.f32 %v4360_v40, %v4364_v42  ;;  %v4570_v42 = vsub.f32 %v3076_v55, %v4560_v63 }
 0xec1   :  { %v641_v14 = vadd.f32 %v4362_v41, %v617_v51  ;;  %v3145_v22 = vand.u32 4294901760, %v4570_v42 }
 0xec3   :  { %v3146_v41 = vsub.f32 %v4570_v42, %v3145_v22  ;;  %v665_v28 = vadd.f32 %v4366_v43, %v641_v14  ;;  %v3159_v43 = vand.u32 4294901760, %v3158_v60 }
 0xec5   :  { %v3147_v48 = vand.u32 4294901760, %v3146_v41  ;;  %v689_v57 = vadd.f32 %v4370_v45, %v665_v28 }
 0xec7   :  { %3148 = vmatpush.msra.mxu1 %v3147_v48  ;;  %v711_v39 = vadd.f32 %v4368_v44, %v689_v57 }
 0xec9   :  { %v1721_v0 = vsel %vm380_vm14, %v711_v39, %v1711_v47  ;;  %v4062_v47 = vld [vmem:[%s4994_s7] ss:$0 sm:$0xff]  ;;  %s4162_s7 = smov 128  }
 0xf19   :  { %v2885_v50 = vpop.xlane.xlu1 %2884 }
 0xf1a   :  { %v2886_v34 = vsub.f32 %v2882_v54, %v2885_v50 }
 0xf1c   :  { %v2887_v52 = vmul.f32 1.442695, %v2886_v34 }
 0xf1e   :  { %4105 = vpow2.f32 %v2887_v52 }
 0xf24   :  { %v4540_v21 = vpop.eup %4105 }
 0xf25   :  { %v2889_v13 = vsel %vm380_vm14, %v4540_v21, 0.0 }
 0xf26   :  { %2890 = vadd.xlane.f32.xlu0 %v2889_v13 }
 0xf31   :  { %v1715_v61 = vpop.permute.xlu1 %1714 }
 0xf32   :  { %v1723_v45 = vsel %vm1722_vm4, %v1721_v0, %v1715_v61 }
 0xf33   :  { %v1725_v4 = vsel %vm1724_vm5, %v1723_v45, %v1719_v2 }
 0xf34   :  { %v3083_v12 = vsel %vm52_vm0, %v1725_v4, 0 }
 0xf35   :  { %v4608_v17 = vand.u32 4294901760, %v3083_v12 }
 0xf37   :  { %v3109_v27 = vsub.f32 %v3083_v12, %v4608_v17 }
 0xf39   :  { %v3110_v33 = vand.u32 4294901760, %v3109_v27 }
 0xf3a   :  { %3060 = vrot.lane.b32.xlu0 %v4501_v38, %s4158_s1  ;;  %v3075_v38 = vld [vmem:[%s4993_s6 + $0x8] sm:$0xff] }
 0xf3b   :  { %v4567_v40 = vand.u32 4294901760, %v3075_v38  ;;  %v3111_v54 = vsub.f32 %v3109_v27, %v3110_v33 }
 0xf3d   :  { %3105 = vmatpush.msra.mxu0 %v4567_v40  ;;  %v4584_v46 = vsub.f32 %v3075_v38, %v4567_v40  ;;  %v3112_v34 = vand.u32 4294901760, %v3111_v54 }
 0xf3f   :  { %3107 = vmatpush.msra.mxu0 %v4581_v6  ;;  %v3151_v62 = vand.u32 4294901760, %v4584_v46 }
 0xf41   :  { %v3152_v49 = vsub.f32 %v4584_v46, %v3151_v62 }
 0xf43   :  { %v3153_v59 = vand.u32 4294901760, %v3152_v49 }
 0xf45   :  { %3154 = vmatpush.msra.mxu1 %v3153_v59 }
 0xf47   :  { %3160 = vmatpush.msra.mxu1 %v3159_v43 }
 0xf99   :  { %v2891_v58 = vpop.xlane.xlu0 %2890 }
 0xf9a   :  { %4107 = vrcp.f32 %v2891_v58  ;;  %v2903_v9 = vand.u32 2147483648, %v2891_v58  ;;  %v2901_v44 = vand.u32 2147483647, %v2891_v58  ;;  %vm2897_vm7 = vweird.f32 %v2891_v58 }
 0xf9c   :  { %v2904_v19 = vor.u32 1.1754944e-38, %v2903_v9  ;;  %vm2902_vm9 = vcmp.eq.f32.partialorder %v2901_v44, 8.507059e+37 }
 0xfa0   :  { %v4108_v1 = vpop.eup %4107 }
 0xfa1   :  { %v2893_v7 = vmul.f32 %v4108_v1, %v2891_v58  ;;  %vm2898_vm6 = vweird.f32 %v4108_v1 }
 0xfa2   :  { %vm2899_vm8 = vmor %vm2897_vm7, %vm2898_vm6 }
 0xfa3   :  { %v2894_v8 = vsub.f32 1.0, %v2893_v7 }
 0xfa5   :  { %v2895_v15 = vmul.f32 %v4108_v1, %v2894_v8  ;;  %v4117_v8 = vld [vmem:[%s4987_s0] sm:$0xff] }
 0xfa7   :  { %v2896_v16 = vadd.f32 %v4108_v1, %v2895_v15 }
 0xfa9   :  { %v2900_v20 = vsel %vm2899_vm8, %v4108_v1, %v2896_v16 }
 0xfaa   :  { %v2905_v23 = vsel %vm2902_vm9, %v2904_v19, %v2900_v20 }
 0xfab   :  { %v2906_v25 = vmul.f32 %v4540_v21, %v2905_v23  ;;  %v4118_v23 = vld [vmem:[%s4987_s0 + $0x8] sm:$0xff] }
 0xfad   :  { %v2911_v29 = vsel %vm380_vm14, %v2906_v25, 0 }
 0xfae   :  { %v2930_v30 = vand.u32 4294901760, %v2911_v29 }
 0xfb0   :  { %2961 = vmatmul.f32.vlgmr.msrb.gmra.mxu3 %v2930_v30  ;;  %v2931_v31 = vsub.f32 %v2911_v29, %v2930_v30 }
 0xfb1   :  { %3218 = vmatpush.msrb.mxu3 %v4549_v56 }
 0xfb2   :  { %2985 = vmatmul.f32.vlgmr.msrb.gmra.mxu0 %v2931_v31  ;;  %v2932_v24 = vand.u32 4294901760, %v2931_v31 }
 0xfb3   :  { %3220 = vmatpush.msrb.mxu3 %v4560_v63  ;;  %3253 = vmatpush.msrb.mxu0 %v3139_v5 }
 0xfb4   :  { %3009 = vmatmul.f32.vlgmr.msrb.gmra.mxu1 %v2932_v24  ;;  %v2933_v36 = vsub.f32 %v2931_v31, %v2932_v24 }
 0xfb5   :  { %3222 = vmatpush.msrb.mxu3 %v4567_v40  ;;  %3288 = vmatpush.msrb.mxu1 %v4549_v56 }
 0xfb6   :  { %v2934_v50 = vand.u32 4294901760, %v2933_v36  ;;  %3257 = vmatpush.msrb.mxu0 %v3145_v22 }
 0xfb7   :  { %3224 = vmatpush.msrb.mxu3 %v4581_v6  ;;  %3290 = vmatpush.msrb.mxu1 %v4560_v63 }
 0xfb8   :  { %2935 = vmatmul.f32.vlgmr.msrb.gmra.mxu2 %v2934_v50  ;;  %3055 = vmatmul.f32.vlgmr.msra.gmra.mxu3 %v2930_v30 }
 0xfb9   :  { %3184 = vmatpush.msrb.mxu2 %v4558_v35  ;;  %3292 = vmatpush.msrb.mxu1 %v4567_v40  ;;  %v3065_v40 = vpop.permute.xlu2 %3064 }
 0xfba   :  { %3113 = vmatmul.f32.vlgmr.msra.gmra.mxu0 %v3112_v34 }
 0xfbb   :  { %3187 = vmatpush.msrb.mxu2 %v4570_v42  ;;  %3294 = vmatpush.msrb.mxu1 %v4581_v6  ;;  %v3061_v42 = vpop.permute.xlu0 %3060 }
 0xfbc   :  { %3162 = vmatmul.f32.vlgmr.msra.gmra.mxu1 %v4608_v17  ;;  %3261 = vmatpush.msrb.mxu0 %v3151_v62  ;;  %v3071_v14 = vsel %vm380_vm14, %v4484_v32, %v3061_v42 }
 0xfbd   :  { %3190 = vmatpush.msrb.mxu2 %v4584_v46  ;;  %v3072_v37 = vsel %vm1722_vm4, %v3071_v14, %v3065_v40 }
 0xfbe   :  { %3265 = vmatpush.msrb.mxu0 %v3157_v53 }
 0xfbf   :  { %3193 = vmatpush.msrb.mxu2 %v4592_v26 }
 0xfc0   :  { %3033 = vmatmul.f32.vlgmr.msra.gmra.mxu2 %v2930_v30  ;;  %3228 = vmatmul.f32.vlgmr.msrb.gmra.mxu3 %v3110_v33 }
 0xfc8   :  { %3196 = vmatmul.f32.vlgmr.msrb.gmra.mxu2 %v3109_v27 }
0x102f   :  { %v2986_v3 = vpop.f32.mrf.mxu0 }
0x1031   :  { %v3010_v51 = vpop.f32.mrf.mxu1 }
0x1033   :  { %v2962_v52 = vpop.f32.mrf.mxu3 }
0x1037   :  { %v3114_v28 = vpop.f32.mrf.mxu0 }
0x1038   :  { %v3115_v48 = vadd.f32 %v4062_v47, %v3114_v28 }
0x1039   :  { %v3163_v32 = vpop.f32.mrf.mxu1 }
0x103a   :  { %v3164_v58 = vadd.f32 %v3163_v32, %v3115_v48 }
0x103b   :  { %v2936_v21 = vpop.f32.mrf.mxu2  ;;  %v3056_v38 = vpop.f32.mrf.mxu3 }
0x103c   :  { %v2963_v13 = vadd.f32 %v2962_v52, %v2936_v21 }
0x103e   :  { %v2987_v56 = vadd.f32 %v2986_v3, %v2963_v13  ;;  %v3397_v3 = vld [vmem:[%s4997_s10 + $0x18] sm:$0xff] }
0x1040   :  { %v3011_v55 = vadd.f32 %v3010_v51, %v2987_v56  ;;  %v3395_v56 = vld [vmem:[%s4997_s10 + $0x8] sm:$0xff]  ;;  %v3394_v51 = vld [vmem:[%s4997_s10] sm:$0xff] }
0x1043   :  { %v3034_v35 = vpop.f32.mrf.mxu2  ;;  %v3229_v43 = vpop.f32.mrf.mxu3 }
0x1044   :  { %v3035_v63 = vadd.f32 %v3034_v35, %v3011_v55  ;;  %v3420_v55 = vand.u32 4294901760, %v3397_v3 }
0x1046   :  { %v3057_v5 = vadd.f32 %v3056_v38, %v3035_v63  ;;  %v3424_v63 = vand.u32 4294901760, %v3395_v56  ;;  %v4688_v38 = vand.u32 4294901760, %v3394_v51  ;;  %3538 = vmatpush.msra.mxu1 %v3420_v55  ;;  %3421 = vmatpush.msra.mxu2 %v3420_v55 }
0x1048   :  { %3068 = vrot.lane.b32.xlu2 %v3057_v5, %s4159_s25  ;;  %v3458_v5 = vsub.f32 %v3397_v3, %v3420_v55  ;;  %v3470_v42 = vsub.f32 %v3395_v56, %v3424_v63  ;;  %v3476_v14 = vsub.f32 %v3394_v51, %v4688_v38  ;;  %v4064_v56 = vld [vmem:[%s4996_s9] ss:$0 sm:$0xff] }
0x104a   :  { %3504 = vmatpush.msra.mxu0 %v3458_v5 }
0x104b   :  { %v3197_v53 = vpop.f32.mrf.mxu2 }
0x104c   :  { %v3198_v59 = vadd.f32 %v3197_v53, %v3164_v58 }
0x104e   :  { %v3230_v61 = vadd.f32 %v3229_v43, %v3198_v59 }
0x10a2   :  { %v3069_v18 = vpop.permute.xlu2 %3068 }
0x10a3   :  { %v3073_v22 = vsel %vm1724_vm5, %v3072_v37, %v3069_v18  ;;  %v3459_v37 = vand.u32 4294901760, %v3458_v5 }
0x10a4   :  { %v3086_v6 = vsel %vm52_vm0, %v3073_v22, 0 }
0x10a5   :  { %v3116_v46 = vand.u32 4294901760, %v3086_v6 }
0x10a7   :  { %v3117_v11 = vsub.f32 %v3086_v6, %v3116_v46  ;;  %3166 = vmatmul.f32.gmra.mxu1 %v3116_v46  ;;  %v3471_v6 = vand.u32 4294901760, %v3470_v42 }
0x10a9   :  { %3201 = vmatmul.f32.gmra.mxu2 %v3117_v11  ;;  %v3118_v41 = vand.u32 4294901760, %v3117_v11  ;;  %v3472_v28 = vsub.f32 %v3470_v42, %v3471_v6 }
0x10ab   :  { %3234 = vmatmul.f32.gmra.mxu3 %v3118_v41  ;;  %v3119_v62 = vsub.f32 %v3117_v11, %v3118_v41  ;;  %v3477_v41 = vand.u32 4294901760, %v3476_v14  ;;  %v3473_v58 = vand.u32 4294901760, %v3472_v28  ;;  %v3638_v28 = vld [vmem:[%s4999_s12 + $0x60] sm:$0xff] }
0x10ad   :  { %v3120_v26 = vand.u32 4294901760, %v3119_v62  ;;  %v3478_v53 = vsub.f32 %v3476_v14, %v3477_v41 }
0x10af   :  { %3121 = vmatmul.f32.gmra.mxu0 %v3120_v26  ;;  %3296 = vmatmul.f32.vlgmr.msrb.gmra.mxu1 %v4608_v17  ;;  %v3460_v26 = vsub.f32 %v3458_v5, %v3459_v37 }
0x10b1   :  { %v3461_v48 = vand.u32 4294901760, %v3460_v26 }
0x10b3   :  { %3462 = vmatpush.msra.mxu3 %v3461_v48 }
0x10b7   :  { %3267 = vmatmul.f32.vlgmr.msrb.gmra.mxu0 %v4608_v17  ;;  %3300 = vmatmul.f32.gmra.mxu1 %v3116_v46 }
0x10bf   :  { %3271 = vmatmul.f32.gmra.mxu0 %v3116_v46 }
0x1124   :  { %v3167_v49 = vpop.f32.mrf.mxu1 }
0x112c   :  { %v3122_v57 = vpop.f32.mrf.mxu0  ;;  %v3297_v0 = vpop.f32.mrf.mxu1 }
0x112d   :  { %v3123_v60 = vadd.f32 %v4062_v47, %v3122_v57  ;;  %v3202_v2 = vpop.f32.mrf.mxu2 }
0x112e   :  { %v3235_v12 = vpop.f32.mrf.mxu3 }
0x112f   :  { %v3168_v39 = vadd.f32 %v3167_v49, %v3123_v60  ;;  %v3479_v60 = vand.u32 4294901760, %v3478_v53 }
0x1131   :  { %v3203_v7 = vadd.f32 %v3202_v2, %v3168_v39 }
0x1133   :  { %v3236_v15 = vadd.f32 %v3235_v12, %v3203_v7 }
0x1134   :  { %v3268_v45 = vpop.f32.mrf.mxu0  ;;  %v3301_v19 = vpop.f32.mrf.mxu1 }
0x1135   :  { %v3269_v1 = vadd.f32 %v3268_v45, %v3230_v61 }
0x1137   :  { %v3298_v4 = vadd.f32 %v3297_v0, %v3269_v1 }
0x1139   :  { %v4648_v9 = vadd.f32 %v4117_v8, %v3298_v4 }
0x113b   :  { %v3308_v44 = vsel %vm52_vm0, %v4648_v9, 0.0 }
0x113c   :  { %v3272_v16 = vpop.f32.mrf.mxu0  ;;  %3309 = vadd.xlane.f32.xlu0 %v3308_v44 }
0x113d   :  { %v3273_v17 = vadd.f32 %v3272_v16, %v3236_v15 }
0x113f   :  { %v3302_v20 = vadd.f32 %v3301_v19, %v3273_v17 }
0x1141   :  { %v4655_v25 = vadd.f32 %v4118_v23, %v3302_v20 }
0x1143   :  { %v3311_v27 = vsel %vm52_vm0, %v4655_v25, 0.0 }
0x1144   :  { %3312 = vadd.xlane.f32.xlu2 %v3311_v27 }
0x11af   :  { %v3310_v29 = vpop.xlane.xlu0 %3309 }
0x11b0   :  { %v3314_v30 = vmul.f32 %v3310_v29, %v4246_v10 }
0x11b2   :  { %v4661_v33 = vsub.f32 %v4648_v9, %v3314_v30 }
0x11b4   :  { %v3318_v31 = vmul.f32 %v4661_v33, %v4661_v33 }
0x11b6   :  { %v3320_v24 = vsel %vm52_vm0, %v3318_v31, 0.0 }
0x11b7   :  { %v3313_v54 = vpop.xlane.xlu2 %3312  ;;  %3321 = vadd.xlane.f32.xlu1 %v3320_v24 }
0x11b8   :  { %v3315_v36 = vmul.f32 %v3313_v54, %v4246_v10  ;;  %v3396_v10 = vld [vmem:[%s4997_s10 + $0x10] sm:$0xff] }
0x11b9   :  { %v3422_v35 = vand.u32 4294901760, %v3396_v10 }
0x11ba   :  { %v4668_v50 = vsub.f32 %v4655_v25, %v3315_v36 }
0x11bb   :  { %v3464_v40 = vsub.f32 %v3396_v10, %v3422_v35  ;;  %3540 = vmatpush.msra.mxu1 %v3422_v35  ;;  %3423 = vmatpush.msra.mxu2 %v3422_v35 }
0x11bc   :  { %v3319_v34 = vmul.f32 %v4668_v50, %v4668_v50 }
0x11bd   :  { %v3465_v22 = vand.u32 4294901760, %v3464_v40  ;;  %3507 = vmatpush.msra.mxu0 %v3464_v40  ;;  %3542 = vmatpush.msra.mxu1 %v3424_v63 }
0x11be   :  { %v3323_v52 = vsel %vm52_vm0, %v3319_v34, 0.0  ;;  %3425 = vmatpush.msra.mxu2 %v3424_v63 }
0x11bf   :  { %3324 = vadd.xlane.f32.xlu2 %v3323_v52  ;;  %v3466_v32 = vsub.f32 %v3464_v40, %v3465_v22  ;;  %3510 = vmatpush.msra.mxu0 %v3470_v42 }
0x11c0   :  { %3544 = vmatpush.msra.mxu1 %v4688_v38  ;;  %3427 = vmatpush.msra.mxu2 %v4688_v38 }
0x11c1   :  { %v3467_v49 = vand.u32 4294901760, %v3466_v32  ;;  %3513 = vmatpush.msra.mxu0 %v3476_v14 }
0x11c2   :  { %3573 = vmatpush.msrb.mxu2 %v3459_v37 }
0x11c3   :  { %3468 = vmatpush.msra.mxu3 %v3467_v49  ;;  %v4734_v49 = vand.u32 4294901760, %v3638_v28 }
0x11c4   :  { %3577 = vmatpush.msrb.mxu2 %v3465_v22 }
0x11c5   :  { %3474 = vmatpush.msra.mxu3 %v3473_v58 }
0x11c6   :  { %3581 = vmatpush.msrb.mxu2 %v3471_v6 }
0x11c7   :  { %3480 = vmatpush.msra.mxu3 %v3479_v60 }
0x11c8   :  { %3585 = vmatpush.msrb.mxu2 %v3477_v41  ;;  %v3639_v41 = vld [vmem:[%s4999_s12 + $0x68] sm:$0xff] }
0x11c9   :  { %3608 = vmatpush.msrb.mxu3 %v3420_v55  ;;  %v4726_v32 = vand.u32 4294901760, %v3639_v41 }
0x11cb   :  { %3610 = vmatpush.msrb.mxu3 %v3422_v35  ;;  %v4745_v60 = vsub.f32 %v3639_v41, %v4726_v32 }
0x11cd   :  { %3612 = vmatpush.msrb.mxu3 %v3424_v63 }
0x11cf   :  { %3614 = vmatpush.msrb.mxu3 %v4688_v38 }
0x122a   :  { %v3322_v21 = vpop.xlane.xlu1 %3321 }
0x122b   :  { %v4673_v13 = vmul.f32 0.032258064, %v3322_v21  ;;  %v4063_v21 = vld [vmem:[%s4995_s8] ss:$0 sm:$0xff] }
0x122d   :  { %4109 = vrsqrt.f32 %v4673_v13  ;;  %vm3335_vm14 = vcmp.eq.f32.partialorder %v4673_v13, inf  ;;  %v3338_v1 = vand.u32 2147483648, %v4673_v13  ;;  %vm3337_vm10 = vcmp.eq.f32.partialorder %v4673_v13, 0.0 }
0x1232   :  { %v3325_v18 = vpop.xlane.xlu2 %3324 }
0x1233   :  { %v4110_v46 = vpop.eup %4109  ;;  %v3327_v11 = vmul.f32 0.032258064, %v3325_v18 }
0x1234   :  { %v3329_v62 = vmul.f32 %v4110_v46, %v4673_v13 }
0x1235   :  { %4111 = vrsqrt.f32 %v3327_v11  ;;  %vm3347_vm11 = vcmp.eq.f32.partialorder %v3327_v11, inf  ;;  %v3350_v16 = vand.u32 2147483648, %v3327_v11  ;;  %vm3349_vm12 = vcmp.eq.f32.partialorder %v3327_v11, 0.0 }
0x1236   :  { %v3330_v47 = vmul.f32 %v4110_v46, %v3329_v62 }
0x1238   :  { %v3331_v57 = vmul.f32 0.5, %v3330_v47  ;;  %v3637_v47 = vld [vmem:[%s4999_s12 + $0x58] sm:$0xff] }
0x1239   :  { %v4736_v53 = vand.u32 4294901760, %v3637_v47 }
0x123a   :  { %v3332_v59 = vsub.f32 1.5, %v3331_v57 }
0x123b   :  { %v4112_v43 = vpop.eup %4111 }
0x123c   :  { %v3333_v39 = vmul.f32 %v4110_v46, %v3332_v59  ;;  %v3341_v61 = vmul.f32 %v4112_v43, %v3327_v11  ;;  %v3641_v46 = vld [vmem:[%s4999_s12 + $0x78] sm:$0xff] }
0x123d   :  { %v4722_v26 = vand.u32 4294901760, %v3641_v46 }
0x123e   :  { %v3334_v0 = vmul.f32 %v3333_v39, %v4673_v13  ;;  %v3342_v45 = vmul.f32 %v4112_v43, %v3341_v61  ;;  %v4749_v39 = vsub.f32 %v3638_v28, %v4734_v49  ;;  %v4752_v61 = vsub.f32 %v3637_v47, %v4736_v53  ;;  %v3630_v47 = vld [vmem:[%s4999_s12 + $0x20] sm:$0xff] }
0x123f   :  { %v4739_v58 = vsub.f32 %v3641_v46, %v4722_v26  ;;  %3647 = vmatpush.msrb.mxu0 %v4722_v26 }
0x1240   :  { %v3336_v2 = vsel %vm3335_vm14, %v4673_v13, %v3334_v0  ;;  %v3343_v7 = vmul.f32 0.5, %v3342_v45 }
0x1241   :  { %v3339_v4 = vsel %vm3337_vm10, %v3338_v1, %v3336_v2  ;;  %v3697_v45 = vand.u32 4294901760, %v4739_v58  ;;  %v3709_v2 = vand.u32 4294901760, %v4745_v60 }
0x1242   :  { %v3352_v8 = vadd.f32 1e-06, %v3339_v4  ;;  %v3344_v12 = vsub.f32 1.5, %v3343_v7 }
0x1244   :  { %4113 = vrcp.f32 %v3352_v8  ;;  %v3345_v15 = vmul.f32 %v4112_v43, %v3344_v12  ;;  %v3365_v30 = vand.u32 2147483648, %v3352_v8  ;;  %v3363_v24 = vand.u32 2147483647, %v3352_v8 }
0x1245   :  { %vm3359_vm15 = vweird.f32 %v3352_v8  ;;  %v3698_v12 = vsub.f32 %v4739_v58, %v3697_v45 }
0x1246   :  { %v3346_v44 = vmul.f32 %v3345_v15, %v3327_v11  ;;  %v3366_v34 = vor.u32 1.1754944e-38, %v3365_v30  ;;  %vm3364_vm2 = vcmp.eq.f32.partialorder %v3363_v24, 8.507059e+37 }
0x1248   :  { %v3348_v17 = vsel %vm3347_vm11, %v3327_v11, %v3346_v44  ;;  %v3640_v11 = vld [vmem:[%s4999_s12 + $0x70] sm:$0xff]  ;;  %v3710_v44 = vsub.f32 %v4745_v60, %v3709_v2 }
0x1249   :  { %v3351_v19 = vsel %vm3349_vm12, %v3350_v16, %v3348_v17  ;;  %v3721_v16 = vand.u32 4294901760, %v4752_v61 }
0x124a   :  { %v4114_v20 = vpop.eup %4113  ;;  %v3353_v23 = vadd.f32 1e-06, %v3351_v19  ;;  %v3699_v19 = vand.u32 4294901760, %v3698_v12 }
0x124b   :  { %v3355_v27 = vmul.f32 %v4114_v20, %v3352_v8  ;;  %vm3360_vm13 = vweird.f32 %v4114_v20  ;;  %v3715_v8 = vand.u32 4294901760, %v4749_v39  ;;  %v3722_v30 = vsub.f32 %v4752_v61, %v3721_v16 }
0x124c   :  { %4115 = vrcp.f32 %v3353_v23  ;;  %vm3361_vm1 = vmor %vm3359_vm15, %vm3360_vm13  ;;  %v3379_v55 = vand.u32 2147483648, %v3353_v23  ;;  %v3377_v38 = vand.u32 2147483647, %v3353_v23  ;;  %vm3373_vm4 = vweird.f32 %v3353_v23  ;;  %3700 = vmatpush.msrb.mxu1 %v3699_v19 }
0x124d   :  { %v3356_v29 = vsub.f32 1.0, %v3355_v27 }
0x124e   :  { %v3380_v42 = vor.u32 1.1754944e-38, %v3379_v55  ;;  %vm3378_vm6 = vcmp.eq.f32.partialorder %v3377_v38, 8.507059e+37 }
0x124f   :  { %v3357_v31 = vmul.f32 %v4114_v20, %v3356_v29  ;;  %v3711_v29 = vand.u32 4294901760, %v3710_v44 }
0x1251   :  { %v3358_v54 = vadd.f32 %v4114_v20, %v3357_v31 }
0x1252   :  { %v4116_v36 = vpop.eup %4115 }
0x1253   :  { %v3362_v52 = vsel %vm3361_vm1, %v4114_v20, %v3358_v54  ;;  %v3369_v13 = vmul.f32 %v4116_v36, %v3353_v23  ;;  %vm3374_vm3 = vweird.f32 %v4116_v36  ;;  %v3716_v23 = vsub.f32 %v4749_v39, %v3715_v8 }
0x1254   :  { %v3367_v3 = vsel %vm3364_vm2, %v3366_v34, %v3362_v52  ;;  %vm3375_vm5 = vmor %vm3373_vm4, %vm3374_vm3  ;;  %v3636_v34 = vld [vmem:[%s4999_s12 + $0x50] sm:$0xff] }
0x1255   :  { %v3382_v10 = vmul.f32 %v3367_v3, %v4661_v33  ;;  %v3370_v51 = vsub.f32 1.0, %v3369_v13  ;;  %v3717_v24 = vand.u32 4294901760, %v3716_v23  ;;  %v4794_v52 = vand.u32 4294901760, %v3636_v34 }
0x1257   :  { %v3387_v35 = vmul.f32 %v4063_v21, %v3382_v10  ;;  %v3371_v63 = vmul.f32 %v4116_v36, %v3370_v51  ;;  %v4800_v13 = vsub.f32 %v3636_v34, %v4794_v52  ;;  %v3634_v10 = vld [vmem:[%s4999_s12 + $0x40] sm:$0xff] }
0x1258   :  { %v4813_v55 = vand.u32 4294901760, %v3634_v10 }
0x1259   :  { %v3392_v5 = vadd.f32 %v4064_v56, %v3387_v35  ;;  %v3372_v40 = vadd.f32 %v4116_v36, %v3371_v63  ;;  %v3633_v35 = vld [vmem:[%s4999_s12 + $0x38] sm:$0xff] }
0x125b   :  { %v3403_v14 = vsel %vm52_vm0, %v3392_v5, 0  ;;  %v3376_v18 = vsel %vm3375_vm5, %v4116_v36, %v3372_v40  ;;  %v3723_v36 = vand.u32 4294901760, %v3722_v30  ;;  %v4826_v5 = vsub.f32 %v3634_v10, %v4813_v55 }
0x125c   :  { %v4708_v33 = vand.u32 4294901760, %v3403_v14  ;;  %v3381_v37 = vsel %vm3378_vm6, %v3380_v42, %v3376_v18  ;;  %v4828_v40 = vand.u32 4294901760, %v3633_v35  ;;  %v3632_v42 = vld [vmem:[%s4999_s12 + $0x30] sm:$0xff] }
0x125d   :  { %v3383_v22 = vmul.f32 %v3381_v37, %v4668_v50  ;;  %v4724_v50 = vand.u32 4294901760, %v3640_v11 }
0x125e   :  { %3482 = vmatmul.f32.vlgmr.msra.gmra.mxu3 %v4708_v33  ;;  %v3429_v6 = vsub.f32 %v3403_v14, %v4708_v33  ;;  %v4841_v37 = vsub.f32 %v3633_v35, %v4828_v40  ;;  %v3626_v35 = vld [vmem:[%s4999_s12] sm:$0xff] }
0x125f   :  { %v3388_v62 = vmul.f32 %v4063_v21, %v3383_v22  ;;  %v4742_v59 = vsub.f32 %v3640_v11, %v4724_v50  ;;  %3860 = vmatpush.msra.mxu3 %v4722_v26  ;;  %3649 = vmatpush.msrb.mxu0 %v4724_v50  ;;  %v3635_v21 = vld [vmem:[%s4999_s12 + $0x48] sm:$0xff]  ;;  %v4845_v22 = vand.u32 4294901760, %v3632_v42 }
0x1260   :  { %3516 = vmatmul.f32.vlgmr.msra.gmra.mxu0 %v3429_v6  ;;  %v3430_v48 = vand.u32 4294901760, %v3429_v6  ;;  %v4802_v3 = vand.u32 4294901760, %v3635_v21  ;;  %v3745_v41 = vand.u32 4294901760, %v4841_v37 }
0x1261   :  { %v3393_v57 = vadd.f32 %v4064_v56, %v3388_v62  ;;  %v3703_v1 = vand.u32 4294901760, %v4742_v59  ;;  %3862 = vmatpush.msra.mxu3 %v4724_v50  ;;  %3651 = vmatpush.msrb.mxu0 %v4726_v32  ;;  %v3727_v56 = vand.u32 4294901760, %v4800_v13  ;;  %v4859_v28 = vsub.f32 %v3632_v42, %v4845_v22 }
0x1262   :  { %3548 = vmatmul.f32.vlgmr.msra.gmra.mxu1 %v3430_v48  ;;  %v3431_v43 = vsub.f32 %v3429_v6, %v3430_v48  ;;  %v4811_v51 = vsub.f32 %v3635_v21, %v4802_v3  ;;  %v3631_v6 = vld [vmem:[%s4999_s12 + $0x28] sm:$0xff] }
0x1263   :  { %v3406_v0 = vsel %vm52_vm0, %v3393_v57, 0  ;;  %v3704_v15 = vsub.f32 %v4742_v59, %v3703_v1  ;;  %3653 = vmatpush.msrb.mxu0 %v4734_v49  ;;  %3864 = vmatpush.msra.mxu3 %v4726_v32  ;;  %v3728_v63 = vsub.f32 %v4800_v13, %v3727_v56  ;;  %v4855_v62 = vand.u32 4294901760, %v3631_v6 }
0x1264   :  { %v3432_v7 = vand.u32 4294901760, %v3431_v43  ;;  %v3436_v4 = vand.u32 4294901760, %v3406_v0  ;;  %v3733_v38 = vand.u32 4294901760, %v4811_v51  ;;  %v3746_v57 = vsub.f32 %v4841_v37, %v3745_v41 }
0x1265   :  { %v3705_v20 = vand.u32 4294901760, %v3704_v15  ;;  %3655 = vmatpush.msrb.mxu0 %v4736_v53  ;;  %3866 = vmatpush.msra.mxu3 %v4734_v49  ;;  %v3729_v14 = vand.u32 4294901760, %v3728_v63  ;;  %v4870_v43 = vsub.f32 %v3631_v6, %v4855_v62 }
0x1266   :  { %3433 = vmatmul.f32.vlgmr.msra.gmra.mxu2 %v3432_v7  ;;  %3486 = vmatmul.f32.gmra.mxu3 %v3436_v4  ;;  %v3437_v17 = vsub.f32 %v3406_v0, %v3436_v4  ;;  %v3734_v18 = vsub.f32 %v4811_v51, %v3733_v38  ;;  %v4872_v0 = vand.u32 4294901760, %v3630_v47  ;;  %v3751_v7 = vand.u32 4294901760, %v4859_v28 }
0x1267   :  { %3802 = vmatpush.msra.mxu2 %v4739_v58  ;;  %3706 = vmatpush.msrb.mxu1 %v3705_v20  ;;  %v3747_v12 = vand.u32 4294901760, %v3746_v57  ;;  %v3757_v15 = vand.u32 4294901760, %v4870_v43  ;;  %v3628_v20 = vld [vmem:[%s4999_s12 + $0x10] sm:$0xff] }
0x1268   :  { %3521 = vmatmul.f32.gmra.mxu0 %v3437_v17  ;;  %v3438_v27 = vand.u32 4294901760, %v3437_v17  ;;  %3868 = vmatpush.msra.mxu3 %v4736_v53  ;;  %v3735_v46 = vand.u32 4294901760, %v3734_v18  ;;  %v4882_v44 = vsub.f32 %v3630_v47, %v4872_v0  ;;  %v3752_v19 = vsub.f32 %v4859_v28, %v3751_v7 }
0x1269   :  { %3805 = vmatpush.msra.mxu2 %v4742_v59  ;;  %3712 = vmatpush.msrb.mxu1 %v3711_v29  ;;  %v3758_v23 = vsub.f32 %v4870_v43, %v3757_v15  ;;  %v4902_v30 = vand.u32 4294901760, %v3628_v20  ;;  %v4923_v18 = vand.u32 4294901760, %v3626_v35 }
0x126a   :  { %3554 = vmatmul.f32.gmra.mxu1 %v3438_v27  ;;  %v3439_v31 = vsub.f32 %v3437_v17, %v3438_v27  ;;  %3657 = vmatpush.msrb.mxu0 %v4794_v52  ;;  %v3763_v27 = vand.u32 4294901760, %v4882_v44 }
0x126b   :  { %3808 = vmatpush.msra.mxu2 %v4745_v60  ;;  %3718 = vmatpush.msrb.mxu1 %v3717_v24  ;;  %v3627_v24 = vld [vmem:[%s4999_s12 + $0x8] sm:$0xff]  ;;  %v3774_v21 = vsub.f32 %v3628_v20, %v4902_v30  ;;  %v3786_v47 = vsub.f32 %v3626_v35, %v4923_v18 }
0x126c   :  { %v3440_v54 = vand.u32 4294901760, %v3439_v31  ;;  %3870 = vmatpush.msra.mxu3 %v4794_v52  ;;  %3659 = vmatpush.msrb.mxu0 %v4802_v3  ;;  %v3753_v31 = vand.u32 4294901760, %v3752_v19  ;;  %v4916_v10 = vand.u32 4294901760, %v3627_v24 }
0x126d   :  { %3811 = vmatpush.msra.mxu2 %v4749_v39  ;;  %3724 = vmatpush.msrb.mxu1 %v3723_v36  ;;  %v3764_v36 = vsub.f32 %v4882_v44, %v3763_v27 }
0x126e   :  { %3441 = vmatmul.f32.gmra.mxu2 %v3440_v54  ;;  %3616 = vmatmul.f32.vlgmr.msrb.gmra.mxu3 %v4708_v33  ;;  %v3759_v54 = vand.u32 4294901760, %v3758_v23  ;;  %v3780_v6 = vsub.f32 %v3627_v24, %v4916_v10 }
0x126f   :  { %3814 = vmatpush.msra.mxu2 %v4752_v61  ;;  %3872 = vmatpush.msra.mxu3 %v4802_v3  ;;  %v3765_v63 = vand.u32 4294901760, %v3764_v36 }
0x1270   :  { %3661 = vmatpush.msrb.mxu0 %v4813_v55  ;;  %3730 = vmatpush.msrb.mxu1 %v3729_v14  ;;  %v3775_v14 = vand.u32 4294901760, %v3774_v21 }
0x1271   :  { %3817 = vmatpush.msra.mxu2 %v4800_v13  ;;  %3874 = vmatpush.msra.mxu3 %v4813_v55 }
0x1272   :  { %3663 = vmatpush.msrb.mxu0 %v4828_v40  ;;  %3736 = vmatpush.msrb.mxu1 %v3735_v46 }
0x1273   :  { %3820 = vmatpush.msra.mxu2 %v4811_v51  ;;  %3876 = vmatpush.msra.mxu3 %v4828_v40 }
0x1274   :  { %3665 = vmatpush.msrb.mxu0 %v4845_v22 }
0x1275   :  { %3823 = vmatpush.msra.mxu2 %v4826_v5  ;;  %3878 = vmatpush.msra.mxu3 %v4845_v22 }
0x1276   :  { %3587 = vmatmul.f32.vlgmr.msrb.gmra.mxu2 %v4708_v33  ;;  %3620 = vmatmul.f32.gmra.mxu3 %v3436_v4  ;;  %v3739_v33 = vand.u32 4294901760, %v4826_v5 }
0x1277   :  { %3826 = vmatpush.msra.mxu2 %v4841_v37  ;;  %3667 = vmatpush.msrb.mxu0 %v4855_v62 }
0x1278   :  { %v3740_v11 = vsub.f32 %v4826_v5, %v3739_v33  ;;  %3880 = vmatpush.msra.mxu3 %v4855_v62 }
0x1279   :  { %3829 = vmatpush.msra.mxu2 %v4859_v28  ;;  %3669 = vmatpush.msrb.mxu0 %v4872_v0 }
0x127a   :  { %v3741_v48 = vand.u32 4294901760, %v3740_v11  ;;  %3882 = vmatpush.msra.mxu3 %v4872_v0  ;;  %v3776_v11 = vsub.f32 %v3774_v21, %v3775_v14 }
0x127b   :  { %3832 = vmatpush.msra.mxu2 %v4870_v43 }
0x127c   :  { %3742 = vmatpush.msrb.mxu1 %v3741_v48  ;;  %v3781_v48 = vand.u32 4294901760, %v3780_v6  ;;  %v3777_v57 = vand.u32 4294901760, %v3776_v11 }
0x127d   :  { %3835 = vmatpush.msra.mxu2 %v4882_v44 }
0x127e   :  { %3591 = vmatmul.f32.gmra.mxu2 %v3436_v4  ;;  %v3629_v4 = vld [vmem:[%s4999_s12 + $0x18] sm:$0xff]  ;;  %3748 = vmatpush.msrb.mxu1 %v3747_v12  ;;  %v3782_v12 = vsub.f32 %v3780_v6, %v3781_v48 }
0x127f   :  { %v4884_v17 = vand.u32 4294901760, %v3629_v4 }
0x1280   :  { %3754 = vmatpush.msrb.mxu1 %v3753_v31  ;;  %v3783_v20 = vand.u32 4294901760, %v3782_v12 }
0x1281   :  { %v4900_v29 = vsub.f32 %v3629_v4, %v4884_v17  ;;  %3671 = vmatpush.msrb.mxu0 %v4884_v17  ;;  %3884 = vmatpush.msra.mxu3 %v4884_v17  ;;  %v3787_v4 = vand.u32 4294901760, %v3786_v47 }
0x1282   :  { %3760 = vmatpush.msrb.mxu1 %v3759_v54 }
0x1283   :  { %v3769_v34 = vand.u32 4294901760, %v4900_v29  ;;  %3673 = vmatpush.msrb.mxu0 %v4902_v30  ;;  %3838 = vmatpush.msra.mxu2 %v4900_v29  ;;  %v3788_v19 = vsub.f32 %v3786_v47, %v3787_v4 }
0x1284   :  { %3886 = vmatpush.msra.mxu3 %v4902_v30  ;;  %3766 = vmatpush.msrb.mxu1 %v3765_v63 }
0x1285   :  { %v3770_v42 = vsub.f32 %v4900_v29, %v3769_v34  ;;  %3675 = vmatpush.msrb.mxu0 %v4916_v10  ;;  %3841 = vmatpush.msra.mxu2 %v3774_v21  ;;  %v3789_v23 = vand.u32 4294901760, %v3788_v19 }
0x1286   :  { %3888 = vmatpush.msra.mxu3 %v4916_v10 }
0x1287   :  { %v3771_v46 = vand.u32 4294901760, %v3770_v42  ;;  %3677 = vmatpush.msrb.mxu0 %v4923_v18  ;;  %3844 = vmatpush.msra.mxu2 %v3780_v6 }
0x1288   :  { %3890 = vmatpush.msra.mxu3 %v4923_v18 }
0x1289   :  { %3907 = vmatpush.msra.mxu0 %v3697_v45  ;;  %3772 = vmatpush.msrb.mxu1 %v3771_v46 }
0x128a   :  { %3847 = vmatpush.msra.mxu2 %v3786_v47 }
0x128b   :  { %3911 = vmatpush.msra.mxu0 %v3703_v1  ;;  %3778 = vmatpush.msrb.mxu1 %v3777_v57 }
0x128d   :  { %3915 = vmatpush.msra.mxu0 %v3709_v2  ;;  %3784 = vmatpush.msrb.mxu1 %v3783_v20 }
0x128f   :  { %3919 = vmatpush.msra.mxu0 %v3715_v8  ;;  %3790 = vmatpush.msrb.mxu1 %v3789_v23 }
0x1291   :  { %3978 = vmatpush.msra.mxu1 %v4722_v26  ;;  %3923 = vmatpush.msra.mxu0 %v3721_v16 }
0x1293   :  { %3980 = vmatpush.msra.mxu1 %v4724_v50  ;;  %3927 = vmatpush.msra.mxu0 %v3727_v56  ;;  %v4065_v50 = vld [vmem:[%s4998_s11] ss:$0 sm:$0xff] }
0x1295   :  { %3982 = vmatpush.msra.mxu1 %v4726_v32  ;;  %3931 = vmatpush.msra.mxu0 %v3733_v38 }
0x1297   :  { %3984 = vmatpush.msra.mxu1 %v4734_v49  ;;  %3935 = vmatpush.msra.mxu0 %v3739_v33 }
0x1299   :  { %3986 = vmatpush.msra.mxu1 %v4736_v53  ;;  %3939 = vmatpush.msra.mxu0 %v3745_v41 }
0x129b   :  { %3988 = vmatpush.msra.mxu1 %v4794_v52  ;;  %3943 = vmatpush.msra.mxu0 %v3751_v7 }
0x129d   :  { %3990 = vmatpush.msra.mxu1 %v4802_v3  ;;  %3947 = vmatpush.msra.mxu0 %v3757_v15 }
0x129f   :  { %3992 = vmatpush.msra.mxu1 %v4813_v55  ;;  %3951 = vmatpush.msra.mxu0 %v3763_v27 }
0x12a1   :  { %3994 = vmatpush.msra.mxu1 %v4828_v40  ;;  %3955 = vmatpush.msra.mxu0 %v3769_v34 }
0x12a3   :  { %3996 = vmatpush.msra.mxu1 %v4845_v22  ;;  %3959 = vmatpush.msra.mxu0 %v3775_v14 }
0x12a5   :  { %3998 = vmatpush.msra.mxu1 %v4855_v62  ;;  %3963 = vmatpush.msra.mxu0 %v3781_v48 }
0x12a7   :  { %4000 = vmatpush.msra.mxu1 %v4872_v0  ;;  %3967 = vmatpush.msra.mxu0 %v3787_v4 }
0x12a9   :  { %4002 = vmatpush.msra.mxu1 %v4884_v17 }
0x12ab   :  { %4004 = vmatpush.msra.mxu1 %v4902_v30  ;;  %v4066_v30 = vld [vmem:[%s5000_s13] ss:$0 sm:$0xff] }
0x12ad   :  { %4006 = vmatpush.msra.mxu1 %v4916_v10 }
0x12af   :  { %4008 = vmatpush.msra.mxu1 %v4923_v18 }
0x12dd   :  { %v3517_v59 = vpop.f32.mrf.mxu0 }
0x12df   :  { %v3549_v45 = vpop.f32.mrf.mxu1 }
0x12e1   :  { %v3483_v26 = vpop.f32.mrf.mxu3 }
0x12e5   :  { %v3522_v13 = vpop.f32.mrf.mxu0 }
0x12e7   :  { %v3555_v55 = vpop.f32.mrf.mxu1 }
0x12e9   :  { %v3434_v32 = vpop.f32.mrf.mxu2  ;;  %v3487_v53 = vpop.f32.mrf.mxu3 }
0x12ea   :  { %v3435_v49 = vadd.f32 %v4065_v50, %v3434_v32 }
0x12ec   :  { %v3484_v58 = vadd.f32 %v3483_v26, %v3435_v49 }
0x12ee   :  { %v3518_v61 = vadd.f32 %v3517_v59, %v3484_v58 }
0x12f0   :  { %v3550_v2 = vadd.f32 %v3549_v45, %v3518_v61 }
0x12f1   :  { %v3442_v60 = vpop.f32.mrf.mxu2  ;;  %v3617_v8 = vpop.f32.mrf.mxu3 }
0x12f2   :  { %v3443_v39 = vadd.f32 %v4065_v50, %v3442_v60 }
0x12f4   :  { %v3488_v1 = vadd.f32 %v3487_v53, %v3443_v39 }
0x12f6   :  { %v3523_v56 = vadd.f32 %v3522_v13, %v3488_v1 }
0x12f8   :  { %v3556_v5 = vadd.f32 %v3555_v55, %v3523_v56 }
0x12f9   :  { %v3588_v16 = vpop.f32.mrf.mxu2  ;;  %v3621_v22 = vpop.f32.mrf.mxu3 }
0x12fa   :  { %v3589_v52 = vadd.f32 %v3588_v16, %v3550_v2 }
0x12fc   :  { %v3618_v3 = vadd.f32 %v3617_v8, %v3589_v52 }
0x12fe   :  { %v3624_v51 = vmax.f32 %v3618_v3, 0.0 }
0x1300   :  { %v3678_v38 = vand.u32 4294901760, %v3624_v51 }
0x1301   :  { %v3592_v40 = vpop.f32.mrf.mxu2 }
0x1302   :  { %v3679_v33 = vsub.f32 %v3624_v51, %v3678_v38  ;;  %v3593_v37 = vadd.f32 %v3592_v40, %v3556_v5  ;;  %3792 = vmatmul.f32.vlgmr.msrb.gmra.mxu1 %v3678_v38 }
0x1304   :  { %v3680_v41 = vand.u32 4294901760, %v3679_v33  ;;  %v3622_v62 = vadd.f32 %v3621_v22, %v3593_v37  ;;  %3850 = vmatmul.f32.vlgmr.msra.gmra.mxu2 %v3679_v33 }
0x1306   :  { %v3681_v28 = vsub.f32 %v3679_v33, %v3680_v41  ;;  %v3625_v43 = vmax.f32 %v3622_v62, 0.0  ;;  %3894 = vmatmul.f32.vlgmr.msra.gmra.mxu3 %v3680_v41 }
0x1308   :  { %v3682_v0 = vand.u32 4294901760, %v3681_v28  ;;  %v3686_v7 = vand.u32 4294901760, %v3625_v43 }
0x130a   :  { %3683 = vmatmul.f32.vlgmr.msrb.gmra.mxu0 %v3682_v0  ;;  %3796 = vmatmul.f32.gmra.mxu1 %v3686_v7  ;;  %v3687_v15 = vsub.f32 %v3625_v43, %v3686_v7 }
0x130c   :  { %3855 = vmatmul.f32.gmra.mxu2 %v3687_v15  ;;  %v3688_v44 = vand.u32 4294901760, %v3687_v15 }
0x130e   :  { %3900 = vmatmul.f32.gmra.mxu3 %v3688_v44  ;;  %v3689_v17 = vsub.f32 %v3687_v15, %v3688_v44 }
0x1310   :  { %v3690_v27 = vand.u32 4294901760, %v3689_v17 }
0x1312   :  { %3691 = vmatmul.f32.gmra.mxu0 %v3690_v27  ;;  %4010 = vmatmul.f32.vlgmr.msra.gmra.mxu1 %v3678_v38 }
0x131a   :  { %3969 = vmatmul.f32.vlgmr.msra.gmra.mxu0 %v3678_v38  ;;  %4014 = vmatmul.f32.gmra.mxu1 %v3686_v7 }
0x1322   :  { %3973 = vmatmul.f32.gmra.mxu0 %v3686_v7 }
0x137f   :  { %v3793_v29 = vpop.f32.mrf.mxu1 }
0x1387   :  { %v3684_v31 = vpop.f32.mrf.mxu0  ;;  %v3797_v54 = vpop.f32.mrf.mxu1 }
0x1388   :  { %v3685_v24 = vadd.f32 %v4066_v30, %v3684_v31  ;;  %v3851_v34 = vpop.f32.mrf.mxu2 }
0x1389   :  { %v3895_v63 = vpop.f32.mrf.mxu3 }
0x138a   :  { %v3794_v36 = vadd.f32 %v3793_v29, %v3685_v24 }
0x138c   :  { %v3852_v10 = vadd.f32 %v3851_v34, %v3794_v36 }
0x138e   :  { %v3896_v42 = vadd.f32 %v3895_v63, %v3852_v10 }
0x138f   :  { %v3692_v21 = vpop.f32.mrf.mxu0  ;;  %v4011_v18 = vpop.f32.mrf.mxu1 }
0x1390   :  { %v3693_v35 = vadd.f32 %v4066_v30, %v3692_v21  ;;  %v3856_v11 = vpop.f32.mrf.mxu2 }
0x1391   :  { %v3901_v4 = vpop.f32.mrf.mxu3 }
0x1392   :  { %v3798_v14 = vadd.f32 %v3797_v54, %v3693_v35 }
0x1394   :  { %v3857_v47 = vadd.f32 %v3856_v11, %v3798_v14 }
0x1396   :  { %v3902_v12 = vadd.f32 %v3901_v4, %v3857_v47 }
0x1397   :  { %v3970_v6 = vpop.f32.mrf.mxu0  ;;  %v4015_v23 = vpop.f32.mrf.mxu1 }
0x1398   :  { %v3971_v46 = vadd.f32 %v3970_v6, %v3896_v42 }
0x139a   :  { %v4012_v48 = vadd.f32 %v4011_v18, %v3971_v46 }
0x139c   :  { %v4018_v57 = vadd.f32 %v4012_v48, %v4648_v9 }
0x139e   :  { %4020 = vst.msk [vmem:[#allocation2] sm:$0xff] %vm52_vm0, %v4018_v57 }
0x139f   :  { %v3974_v19 = vpop.f32.mrf.mxu0 }
0x13a0   :  { %v3975_v20 = vadd.f32 %v3974_v19, %v3902_v12 }
0x13a2   :  { %v4016_v26 = vadd.f32 %v4015_v23, %v3975_v20 }
0x13a4   :  { %v4019_v50 = vadd.f32 %v4016_v26, %v4655_v25 }
0x13a6   :  { %4021 = vst.msk [vmem:[#allocation2 + $0x8] sm:$0xff] %vm52_vm0, %v4019_v50 }
0x13a7   :  { %4034 = dma.vmem_to_hbm [thread:$0]  %s4027_s18, 256, %s4029_s16, [#allocation3], %s4162_s7, %s4162_s7, %s4158_s1  }
0x13a8   :  { %4143 = dma.done.wait [#allocation3], 256  }
0x13a9   :  { %4144 = vsyncadd [#allocation3], 4294967040 }
0x13aa   :  { %4039 = vsyncpa [#allocation3], 1 }

</bundles_post_ra>
